<compile_context>
chip_gen: v7x
topology: tpu7x:2x2x1
jax: 0.10.0
libtpu: 0.0.40
codegen_flags: <defaults>
</compile_context>

<pallas_src>
import math

import jax
import jax.numpy as jnp
from jax import lax
from jax.experimental import pallas as pl
from jax.experimental.pallas import tpu as pltpu  # noqa: F401  (TPU backend)

# ---------------- configuration (small, consistent with the module) ----------
N_SAMPLES = 8            # rows fed through the model (= attention length)
N_ENC_IN = 6             # n_encoder_inputs
N_OUTPUTS = 2            # n_outputs -> final view(-1, 4) needs n_outputs + 2 == 4
N_DEC_IN = N_ENC_IN + N_OUTPUTS   # n_decoder_inputs (implied by forward's concat)
CHANNELS = 32            # d_model
N_HEADS = 4
HEAD_DIM = CHANNELS // N_HEADS
N_LAYERS = 2             # TransformerEncoder depth (small for the test)
FFN_DIM = 4 * CHANNELS
LN_EPS = 1e-5
LANES = 128              # slab lane width


# --------------------- parameter-slab layout (static, lane-dense) ------------
def _make_layout():
    """Row/lane layout of the single packed (rows, 128) f32 parameter slab.

    Each entry: name -> (row_off, n_rows, lane_off, n_cols). Matrix segments
    are 8-row aligned; 1-row vectors are packed densely inside an 8-row group.
    """
    layout = {}
    row = 0

    # --- global 1-row vectors, densely packed into one 8-row group ---
    vecs = [("in_b", CHANNELS), ("a_b", CHANNELS), ("b_b", CHANNELS),
            ("pos", CHANNELS), ("fc1_b", 64), ("head_b", 24)]
    for i, (name, width) in enumerate(vecs):
        layout[name] = (row + i, 1, 0, width)
    row += 8

    # --- small input/decoder projections side-by-side (4 x 32 lanes = 128) ---
    layout["in_w"] = (row, N_ENC_IN, 0, CHANNELS)
    layout["aw_x"] = (row, N_ENC_IN, 32, CHANNELS)
    layout["aw_t"] = (row, 8, 64, CHANNELS)
    layout["bw_x"] = (row, N_ENC_IN, 96, CHANNELS)
    row += 8
    layout["bw_t"] = (row, 8, 0, CHANNELS)
    row += 8

    layout["fc1_w"] = (row, CHANNELS, 0, 64)
    row += CHANNELS
    # fc2 / fc3(pass b) / fc3(pass c) packed into ONE (64, 24) segment:
    # pass p uses lanes [p*8, p*8+8).
    layout["head_w"] = (row, 64, 0, 24)
    row += 64

    for li in range(N_LAYERS):
        layout[f"wqkv{li}"] = (row, CHANNELS, 0, 3 * CHANNELS); row += CHANNELS
        layout[f"wo{li}"] = (row, CHANNELS, 0, CHANNELS);       row += CHANNELS
        layout[f"w1{li}"] = (row, CHANNELS, 0, FFN_DIM);        row += CHANNELS
        layout[f"w2t{li}"] = (row, CHANNELS, 0, FFN_DIM);       row += CHANNELS  # w2 transposed
        lvecs = [(f"bqkv{li}", 3 * CHANNELS), (f"bo{li}", CHANNELS),
                 (f"b1{li}", FFN_DIM), (f"b2{li}", CHANNELS),
                 (f"ln1w{li}", CHANNELS), (f"ln1b{li}", CHANNELS),
                 (f"ln2w{li}", CHANNELS), (f"ln2b{li}", CHANNELS)]
        for i, (name, width) in enumerate(lvecs):
            layout[name] = (row + i, 1, 0, width)
        row += 8
    return layout, row


_LAYOUT, _SLAB_ROWS = _make_layout()     # 392 rows (~196 KiB) vs ~864 before


# ------------------------------ fused kernel ---------------------------------
def _spec2hrd_kernel(x_ref, w_ref, o_ref):
    n = x_ref.shape[0]

    def seg(name):
        r0, nr, c0, nc = _LAYOUT[name]
        return w_ref[r0:r0 + nr, c0:c0 + nc]      # static slice of the slab

    def layer_norm(y, w, b):
        # two INDEPENDENT reductions (overlap on the XLUs); var = E[x^2]-mean^2
        mean = jnp.mean(y, axis=-1, keepdims=True)
        meansq = jnp.mean(y * y, axis=-1, keepdims=True)
        var = meansq - mean * mean
        return (y - mean) * lax.rsqrt(var + LN_EPS) * w + b

    def encoder_layer(h, li):
        # --- fused QKV projection: one (n,32)@(32,96) MXU push ---
        # (1/sqrt(head_dim) already folded into the Q columns/bias at pack time)
        qkv = jnp.dot(h, seg(f"wqkv{li}"),
                      preferred_element_type=jnp.float32) + seg(f"bqkv{li}")
        ctx = []
        for hd in range(N_HEADS):                                  # static unroll
            lo = hd * HEAD_DIM
            qh = qkv[:, lo:lo + HEAD_DIM]
            kh = qkv[:, CHANNELS + lo:CHANNELS + lo + HEAD_DIM]
            vh = qkv[:, 2 * CHANNELS + lo:2 * CHANNELS + lo + HEAD_DIM]
            # q @ k.T via trans-B contraction (no materialized transpose)
            s = lax.dot_general(qh, kh, (((1,), (1,)), ((), ())),
                                preferred_element_type=jnp.float32)
            s = s - jnp.max(s, axis=-1, keepdims=True)
            p = jnp.exp(s)
            p = p * pl.reciprocal(jnp.sum(p, axis=-1, keepdims=True), approx=True)
            ctx.append(jnp.dot(p, vh, preferred_element_type=jnp.float32))
        # lane-merge 4x(8,8) -> (8,32), then ONE output-projection matmul
        attn = jnp.dot(jnp.concatenate(ctx, axis=1), seg(f"wo{li}"),
                       preferred_element_type=jnp.float32) + seg(f"bo{li}")
        # --- post-norm residual blocks (dropout = identity) ---
        y = layer_norm(h + attn, seg(f"ln1w{li}"), seg(f"ln1b{li}"))
        ff = jnp.dot(y, seg(f"w1{li}"),
                     preferred_element_type=jnp.float32) + seg(f"b1{li}")
        ff = jnp.maximum(ff, 0.0)
        # w2 stored transposed (32,128): contract on the last dim of both
        ff = lax.dot_general(ff, seg(f"w2t{li}"), (((1,), (1,)), ((), ())),
                             preferred_element_type=jnp.float32) + seg(f"b2{li}")
        return layer_norm(y + ff, seg(f"ln2w{li}"), seg(f"ln2b{li}"))

    pos = seg("pos")

    def encode(src_start):                        # encode_src / decode_src body
        s = src_start + pos
        for li in range(N_LAYERS):                # shared encoder, static unroll
            s = encoder_layer(s, li)
        return s + src_start

    fc1_w, fc1_b = seg("fc1_w"), seg("fc1_b")
    head_w, head_b = seg("head_w"), seg("head_b")     # (64,24), (1,24)

    def head(enc, p_idx):                         # fcX(relu(fc1(enc))) -> (n, 8)
        s = jnp.dot(enc, fc1_w, preferred_element_type=jnp.float32) + fc1_b
        s = jnp.maximum(s, 0.0)
        lo = p_idx * 8
        return (jnp.dot(s, head_w[:, lo:lo + 8],
                        preferred_element_type=jnp.float32)
                + head_b[:, lo:lo + 8])

    x = x_ref[...]                                                 # (n, n_enc_in)

    # pass 1: encode_src(x) -> fc2(relu(fc1(.)))  => tgt_a in lanes [0, 2)
    enc = encode(jnp.dot(x, seg("in_w"), preferred_element_type=jnp.float32)
                 + seg("in_b"))
    ra = head(enc, 0)                                              # (n, 8)

    # pass 2: decode_src(concat(x, tgt_a)) via output_projection_a
    #         (concat replaced by split matmuls; ra is zero outside lanes [0,2))
    enc = encode(jnp.dot(x, seg("aw_x"), preferred_element_type=jnp.float32)
                 + jnp.dot(ra, seg("aw_t"), preferred_element_type=jnp.float32)
                 + seg("a_b"))
    rb = head(enc, 1)                                              # tgt_b in lane 2

    # pass 3: decode_src(concat(x, tgt_a, tgt_b)) via output_projection_b
    enc = encode(jnp.dot(x, seg("bw_x"), preferred_element_type=jnp.float32)
                 + jnp.dot(ra + rb, seg("bw_t"), preferred_element_type=jnp.float32)
                 + seg("b_b"))
    rc = head(enc, 2)                                              # tgt_c in lane 3

    # lane-dense, full-128-lane output tile (unmasked store); lanes [0,2)=tgt_a,
    # 2=tgt_b, 3=tgt_c, rest zero.
    res = ra + rb + rc                                             # (n, 8)
    o_ref[...] = jnp.concatenate(
        [res, jnp.zeros((n, LANES - 8), jnp.float32)], axis=1)


@jax.jit
def forward(x, slab):
    n = x.shape[0]
    x2d = x.reshape(n, N_ENC_IN)
    y = pl.pallas_call(
        _spec2hrd_kernel,
        out_shape=jax.ShapeDtypeStruct((n, LANES), jnp.float32),
    )(x2d, slab)
    return y[:, :N_OUTPUTS + 2].reshape(-1, N_OUTPUTS + 2)


# ------------------------- parameter initialization --------------------------
def _lin_params(key, fan_in, fan_out, scale=0.05):
    kw, kb = jax.random.split(key)
    w_t = jax.random.normal(kw, (fan_in, fan_out), jnp.float32) * scale
    b = jax.random.normal(kb, (1, fan_out), jnp.float32) * scale
    return w_t, b


def init_params(key):
    keys = jax.random.split(key, 16 + N_LAYERS)
    p = {}
    p["in_proj_wt"], p["in_proj_b"] = _lin_params(keys[0], N_ENC_IN, CHANNELS)
    p["out_proj_a_wt"], p["out_proj_a_b"] = _lin_params(keys[1], N_DEC_IN, CHANNELS)
    p["out_proj_b_wt"], p["out_proj_b_b"] = _lin_params(keys[2], N_DEC_IN + 1, CHANNELS)
    p["fc1_wt"], p["fc1_b"] = _lin_params(keys[3], CHANNELS, 64)
    p["fc2_wt"], p["fc2_b"] = _lin_params(keys[4], 64, N_OUTPUTS)
    p["fc3_wt"], p["fc3_b"] = _lin_params(keys[5], 64, 1)
    # nn.Embedding(1024, channels); only row 0 is used (sequence length 1).
    p["pos_emb"] = jax.random.normal(keys[6], (1024, CHANNELS), jnp.float32) * 0.05
    # TODO(synk): target_pos_embedding exists in __init__ but is unused in forward.

    layers = []
    for li in range(N_LAYERS):
        k = jax.random.split(keys[16 + li], 4)
        lp = {}
        lp["win_t"], lp["bin"] = _lin_params(k[0], CHANNELS, 3 * CHANNELS)
        lp["wo_t"], lp["bo"] = _lin_params(k[1], CHANNELS, CHANNELS)
        lp["w1_t"], lp["b1"] = _lin_params(k[2], CHANNELS, FFN_DIM)
        lp["w2_t"], lp["b2"] = _lin_params(k[3], FFN_DIM, CHANNELS)
        lp["ln1_w"] = jnp.ones((1, CHANNELS), jnp.float32)
        lp["ln1_b"] = jnp.zeros((1, CHANNELS), jnp.float32)
        lp["ln2_w"] = jnp.ones((1, CHANNELS), jnp.float32)
        lp["ln2_b"] = jnp.zeros((1, CHANNELS), jnp.float32)
        layers.append(lp)
    p["layers"] = layers
    return p


# --------------------------- parameter packing --------------------------------
def pack_params(p):
    """Pack every parameter into one lane-dense (392, 128) f32 slab (one DMA)."""
    C = CHANNELS
    slab = jnp.zeros((_SLAB_ROWS, LANES), jnp.float32)

    def put(s, name, arr):
        r0, nr, c0, nc = _LAYOUT[name]
        arr = jnp.asarray(arr, jnp.float32).reshape(nr, nc)
        return s.at[r0:r0 + nr, c0:c0 + nc].set(arr)

    slab = put(slab, "in_b", p["in_proj_b"])
    slab = put(slab, "a_b", p["out_proj_a_b"])
    slab = put(slab, "b_b", p["out_proj_b_b"])
    slab = put(slab, "pos", p["pos_emb"][0:1, :])
    slab = put(slab, "fc1_b", p["fc1_b"])

    # head biases: one (1, 24) row; pass p occupies relative lanes [p*8, p*8+8),
    # with the final-output lane positions inside each 8-lane window.
    head_b = jnp.zeros((1, 24), jnp.float32)
    head_b = head_b.at[:, 0:N_OUTPUTS].set(p["fc2_b"])                       # tgt_a -> lanes 0:2
    head_b = head_b.at[:, 8 + N_OUTPUTS:8 + N_OUTPUTS + 1].set(p["fc3_b"])   # tgt_b -> lane 2
    head_b = head_b.at[:, 16 + N_OUTPUTS + 1:16 + N_OUTPUTS + 2].set(p["fc3_b"])  # tgt_c -> lane 3
    slab = put(slab, "head_b", head_b)

    slab = put(slab, "in_w", p["in_proj_wt"])

    wa = p["out_proj_a_wt"]                       # (N_DEC_IN, C)
    slab = put(slab, "aw_x", wa[:N_ENC_IN])
    aw_t = jnp.zeros((8, C), jnp.float32).at[0:N_OUTPUTS].set(wa[N_ENC_IN:])
    slab = put(slab, "aw_t", aw_t)

    wb = p["out_proj_b_wt"]                       # (N_DEC_IN + 1, C)
    slab = put(slab, "bw_x", wb[:N_ENC_IN])
    bw_t = (jnp.zeros((8, C), jnp.float32)
            .at[0:N_OUTPUTS].set(wb[N_ENC_IN:N_ENC_IN + N_OUTPUTS])
            .at[N_OUTPUTS].set(wb[N_ENC_IN + N_OUTPUTS]))
    slab = put(slab, "bw_t", bw_t)

    slab = put(slab, "fc1_w", p["fc1_wt"])

    # head weights: one (64, 24) segment, same relative lane scheme as head_b.
    head_w = jnp.zeros((64, 24), jnp.float32)
    head_w = head_w.at[:, 0:N_OUTPUTS].set(p["fc2_wt"])
    head_w = head_w.at[:, 8 + N_OUTPUTS:8 + N_OUTPUTS + 1].set(p["fc3_wt"])
    head_w = head_w.at[:, 16 + N_OUTPUTS + 1:16 + N_OUTPUTS + 2].set(p["fc3_wt"])
    slab = put(slab, "head_w", head_w)

    scale = 1.0 / math.sqrt(HEAD_DIM)
    for li, lp in enumerate(p["layers"]):
        win, bqkv = lp["win_t"], lp["bin"]        # (32, 96), (1, 96)
        # fold attention scale into the Q projection (weights AND bias)
        wqkv = jnp.concatenate([win[:, 0:C] * scale, win[:, C:3 * C]], axis=1)
        bqkv_f = jnp.concatenate([bqkv[:, 0:C] * scale, bqkv[:, C:3 * C]], axis=1)
        slab = put(slab, f"wqkv{li}", wqkv)
        slab = put(slab, f"bqkv{li}", bqkv_f)
        slab = put(slab, f"wo{li}", lp["wo_t"])
        slab = put(slab, f"bo{li}", lp["bo"])
        slab = put(slab, f"w1{li}", lp["w1_t"])
        slab = put(slab, f"b1{li}", lp["b1"])
        slab = put(slab, f"w2t{li}", lp["w2_t"].T)    # stored transposed (32,128)
        slab = put(slab, f"b2{li}", lp["b2"])
        slab = put(slab, f"ln1w{li}", lp["ln1_w"])
        slab = put(slab, f"ln1b{li}", lp["ln1_b"])
        slab = put(slab, f"ln2w{li}", lp["ln2_w"])
        slab = put(slab, f"ln2b{li}", lp["ln2_b"])
    return slab


# -------------------- straightforward jnp reference (check) -------------------
def _ref_layer_norm(y, w, b):
    mu = jnp.mean(y, axis=-1, keepdims=True)
    var = jnp.mean(jnp.square(y - mu), axis=-1, keepdims=True)
    return (y - mu) / jnp.sqrt(var + LN_EPS) * w + b


def _ref_forward(x, p):
    n = x.shape[0]
    x2d = x.reshape(n, N_ENC_IN)

    def enc_layer(h, lp):
        qkv = h @ lp["win_t"] + lp["bin"]
        q, k, v = jnp.split(qkv, 3, axis=1)
        heads = []
        for hd in range(N_HEADS):
            sl = slice(hd * HEAD_DIM, (hd + 1) * HEAD_DIM)
            s = (q[:, sl] @ k[:, sl].T) / math.sqrt(HEAD_DIM)
            heads.append(jax.nn.softmax(s, axis=-1) @ v[:, sl])
        attn = jnp.concatenate(heads, axis=-1) @ lp["wo_t"] + lp["bo"]
        y = _ref_layer_norm(h + attn, lp["ln1_w"], lp["ln1_b"])
        ff = jnp.maximum(y @ lp["w1_t"] + lp["b1"], 0.0) @ lp["w2_t"] + lp["b2"]
        return _ref_layer_norm(y + ff, lp["ln2_w"], lp["ln2_b"])

    def encode(xin, wt, b):
        ss = xin @ wt + b
        s = ss + p["pos_emb"][0:1]
        for lp in p["layers"]:
            s = enc_layer(s, lp)
        return s + ss

    enc = encode(x2d, p["in_proj_wt"], p["in_proj_b"])
    tgt_a = jnp.maximum(enc @ p["fc1_wt"] + p["fc1_b"], 0.0) @ p["fc2_wt"] + p["fc2_b"]
    enc = encode(jnp.concatenate([x2d, tgt_a], axis=1),
                 p["out_proj_a_wt"], p["out_proj_a_b"])
    tgt_b = jnp.maximum(enc @ p["fc1_wt"] + p["fc1_b"], 0.0) @ p["fc3_wt"] + p["fc3_b"]
    enc = encode(jnp.concatenate([x2d, tgt_a, tgt_b], axis=1),
                 p["out_proj_b_wt"], p["out_proj_b_b"])
    tgt_c = jnp.maximum(enc @ p["fc1_wt"] + p["fc1_b"], 0.0) @ p["fc3_wt"] + p["fc3_b"]
    return jnp.concatenate([tgt_a, tgt_b, tgt_c], axis=1).reshape(-1, N_OUTPUTS + 2)


# ---------------------------------- main --------------------------------------
if __name__ == "__main__":
    key = jax.random.PRNGKey(0)
    k_param, k_x = jax.random.split(key)
    params = init_params(k_param)
    slab = pack_params(params)                      # one-time host-side packing
    x = jax.random.normal(k_x, (N_SAMPLES, 1, N_ENC_IN), jnp.float32)

    y = jax.block_until_ready(forward(x, slab))
    assert y.shape == (N_SAMPLES, N_OUTPUTS + 2), y.shape
    assert bool(jnp.all(jnp.isfinite(y)))

    # cross-check the fused kernel against a plain-jnp implementation
    y_ref = _ref_forward(x, params)
    err = float(jnp.max(jnp.abs(y - y_ref)))
    assert err < 2e-2, f"mismatch vs reference: {err}"

    print("KERNEL_OK")
</pallas_src>

<mosaic_0001>
module attributes {stable_mosaic.version = 11 : i64} {
  func.func @_spec2hrd_kernel(%arg0: memref<8x6xf32, #tpu.memory_space<vmem>>, %arg1: memref<392x128xf32, #tpu.memory_space<vmem>>, %arg2: memref<8x128xf32, #tpu.memory_space<vmem>>) attributes {dimension_semantics = [], scalar_prefetch = 0 : i64, scratch_operands = 0 : i64, tpu.core_type = #tpu.core_type<tc>} {
    %c3 = arith.constant 3 : index
    %c0 = arith.constant 0 : index
    %0 = vector.load %arg1[%c3, %c0] : memref<392x128xf32, #tpu.memory_space<vmem>>, vector<1x32xf32>
    %c24 = arith.constant 24 : index
    %c0_0 = arith.constant 0 : index
    %1 = vector.load %arg1[%c24, %c0_0] : memref<392x128xf32, #tpu.memory_space<vmem>>, vector<32x64xf32>
    %c4 = arith.constant 4 : index
    %c0_1 = arith.constant 0 : index
    %2 = vector.load %arg1[%c4, %c0_1] : memref<392x128xf32, #tpu.memory_space<vmem>>, vector<1x64xf32>
    %c56 = arith.constant 56 : index
    %c0_2 = arith.constant 0 : index
    %3 = vector.load %arg1[%c56, %c0_2] : memref<392x128xf32, #tpu.memory_space<vmem>>, vector<64x24xf32>
    %c5 = arith.constant 5 : index
    %c0_3 = arith.constant 0 : index
    %4 = vector.load %arg1[%c5, %c0_3] : memref<392x128xf32, #tpu.memory_space<vmem>>, vector<1x24xf32>
    %c0_4 = arith.constant 0 : index
    %c0_5 = arith.constant 0 : index
    %5 = vector.load %arg0[%c0_4, %c0_5] : memref<8x6xf32, #tpu.memory_space<vmem>>, vector<8x6xf32>
    %c8 = arith.constant 8 : index
    %c0_6 = arith.constant 0 : index
    %6 = vector.load %arg1[%c8, %c0_6] : memref<392x128xf32, #tpu.memory_space<vmem>>, vector<6x32xf32>
    %cst = arith.constant dense<0.000000e+00> : vector<8x32xf32>
    %7 = tpu.matmul %5, %6, %cst {dimension_numbers = #tpu.dot_dimension_numbers<[1], [0], [0], [1], [0, 0, 1, 1], [], []>} : vector<8x6xf32>, vector<6x32xf32>, vector<8x32xf32> -> vector<8x32xf32>
    %c0_7 = arith.constant 0 : index
    %c0_8 = arith.constant 0 : index
    %8 = vector.load %arg1[%c0_7, %c0_8] : memref<392x128xf32, #tpu.memory_space<vmem>>, vector<1x32xf32>
    %9 = vector.broadcast %8 : vector<1x32xf32> to vector<8x32xf32>
    %10 = arith.addf %7, %9 : vector<8x32xf32>
    %11 = vector.broadcast %0 : vector<1x32xf32> to vector<8x32xf32>
    %12 = arith.addf %10, %11 : vector<8x32xf32>
    %c120 = arith.constant 120 : index
    %c0_9 = arith.constant 0 : index
    %13 = vector.load %arg1[%c120, %c0_9] : memref<392x128xf32, #tpu.memory_space<vmem>>, vector<32x96xf32>
    %cst_10 = arith.constant dense<0.000000e+00> : vector<8x96xf32>
    %14 = tpu.matmul %12, %13, %cst_10 {dimension_numbers = #tpu.dot_dimension_numbers<[1], [0], [0], [1], [0, 0, 1, 1], [], []>} : vector<8x32xf32>, vector<32x96xf32>, vector<8x96xf32> -> vector<8x96xf32>
    %c248 = arith.constant 248 : index
    %c0_11 = arith.constant 0 : index
    %15 = vector.load %arg1[%c248, %c0_11] : memref<392x128xf32, #tpu.memory_space<vmem>>, vector<1x96xf32>
    %16 = vector.broadcast %15 : vector<1x96xf32> to vector<8x96xf32>
    %17 = arith.addf %14, %16 : vector<8x96xf32>
    %18 = vector.extract_strided_slice %17 {offsets = [0, 0], sizes = [8, 8], strides = [1, 1]} : vector<8x96xf32> to vector<8x8xf32>
    %19 = vector.extract_strided_slice %17 {offsets = [0, 32], sizes = [8, 8], strides = [1, 1]} : vector<8x96xf32> to vector<8x8xf32>
    %20 = vector.extract_strided_slice %17 {offsets = [0, 64], sizes = [8, 8], strides = [1, 1]} : vector<8x96xf32> to vector<8x8xf32>
    %cst_12 = arith.constant dense<0.000000e+00> : vector<8x8xf32>
    %21 = tpu.matmul %18, %19, %cst_12 {dimension_numbers = #tpu.dot_dimension_numbers<[1], [1], [0], [0], [0, 0, 1, 0], [], []>} : vector<8x8xf32>, vector<8x8xf32>, vector<8x8xf32> -> vector<8x8xf32>
    %cst_13 = arith.constant dense<0xFF800000> : vector<8xf32>
    %22 = vector.multi_reduction <maximumf>, %21, %cst_13 [1] : vector<8x8xf32> to vector<8xf32>
    %23 = vector.shape_cast %22 : vector<8xf32> to vector<8x1xf32>
    %24 = vector.broadcast %23 : vector<8x1xf32> to vector<8x8xf32>
    %25 = arith.subf %21, %24 : vector<8x8xf32>
    %26 = math.exp %25 : vector<8x8xf32>
    %cst_14 = arith.constant dense<0.000000e+00> : vector<8xf32>
    %27 = vector.multi_reduction <add>, %26, %cst_14 [1] : vector<8x8xf32> to vector<8xf32>
    %28 = vector.shape_cast %27 : vector<8xf32> to vector<8x1xf32>
    %29 = tpu.reciprocal %28 {approx = true} : vector<8x1xf32> -> vector<8x1xf32>
    %30 = vector.broadcast %29 : vector<8x1xf32> to vector<8x8xf32>
    %31 = arith.mulf %26, %30 : vector<8x8xf32>
    %cst_15 = arith.constant dense<0.000000e+00> : vector<8x8xf32>
    %32 = tpu.matmul %31, %20, %cst_15 {dimension_numbers = #tpu.dot_dimension_numbers<[1], [0], [0], [1], [0, 0, 1, 1], [], []>} : vector<8x8xf32>, vector<8x8xf32>, vector<8x8xf32> -> vector<8x8xf32>
    %33 = vector.extract_strided_slice %17 {offsets = [0, 8], sizes = [8, 8], strides = [1, 1]} : vector<8x96xf32> to vector<8x8xf32>
    %34 = vector.extract_strided_slice %17 {offsets = [0, 40], sizes = [8, 8], strides = [1, 1]} : vector<8x96xf32> to vector<8x8xf32>
    %35 = vector.extract_strided_slice %17 {offsets = [0, 72], sizes = [8, 8], strides = [1, 1]} : vector<8x96xf32> to vector<8x8xf32>
    %cst_16 = arith.constant dense<0.000000e+00> : vector<8x8xf32>
    %36 = tpu.matmul %33, %34, %cst_16 {dimension_numbers = #tpu.dot_dimension_numbers<[1], [1], [0], [0], [0, 0, 1, 0], [], []>} : vector<8x8xf32>, vector<8x8xf32>, vector<8x8xf32> -> vector<8x8xf32>
    %cst_17 = arith.constant dense<0xFF800000> : vector<8xf32>
    %37 = vector.multi_reduction <maximumf>, %36, %cst_17 [1] : vector<8x8xf32> to vector<8xf32>
    %38 = vector.shape_cast %37 : vector<8xf32> to vector<8x1xf32>
    %39 = vector.broadcast %38 : vector<8x1xf32> to vector<8x8xf32>
    %40 = arith.subf %36, %39 : vector<8x8xf32>
    %41 = math.exp %40 : vector<8x8xf32>
    %cst_18 = arith.constant dense<0.000000e+00> : vector<8xf32>
    %42 = vector.multi_reduction <add>, %41, %cst_18 [1] : vector<8x8xf32> to vector<8xf32>
    %43 = vector.shape_cast %42 : vector<8xf32> to vector<8x1xf32>
    %44 = tpu.reciprocal %43 {approx = true} : vector<8x1xf32> -> vector<8x1xf32>
    %45 = vector.broadcast %44 : vector<8x1xf32> to vector<8x8xf32>
    %46 = arith.mulf %41, %45 : vector<8x8xf32>
    %cst_19 = arith.constant dense<0.000000e+00> : vector<8x8xf32>
    %47 = tpu.matmul %46, %35, %cst_19 {dimension_numbers = #tpu.dot_dimension_numbers<[1], [0], [0], [1], [0, 0, 1, 1], [], []>} : vector<8x8xf32>, vector<8x8xf32>, vector<8x8xf32> -> vector<8x8xf32>
    %48 = vector.extract_strided_slice %17 {offsets = [0, 16], sizes = [8, 8], strides = [1, 1]} : vector<8x96xf32> to vector<8x8xf32>
    %49 = vector.extract_strided_slice %17 {offsets = [0, 48], sizes = [8, 8], strides = [1, 1]} : vector<8x96xf32> to vector<8x8xf32>
    %50 = vector.extract_strided_slice %17 {offsets = [0, 80], sizes = [8, 8], strides = [1, 1]} : vector<8x96xf32> to vector<8x8xf32>
    %cst_20 = arith.constant dense<0.000000e+00> : vector<8x8xf32>
    %51 = tpu.matmul %48, %49, %cst_20 {dimension_numbers = #tpu.dot_dimension_numbers<[1], [1], [0], [0], [0, 0, 1, 0], [], []>} : vector<8x8xf32>, vector<8x8xf32>, vector<8x8xf32> -> vector<8x8xf32>
    %cst_21 = arith.constant dense<0xFF800000> : vector<8xf32>
    %52 = vector.multi_reduction <maximumf>, %51, %cst_21 [1] : vector<8x8xf32> to vector<8xf32>
    %53 = vector.shape_cast %52 : vector<8xf32> to vector<8x1xf32>
    %54 = vector.broadcast %53 : vector<8x1xf32> to vector<8x8xf32>
    %55 = arith.subf %51, %54 : vector<8x8xf32>
    %56 = math.exp %55 : vector<8x8xf32>
    %cst_22 = arith.constant dense<0.000000e+00> : vector<8xf32>
    %57 = vector.multi_reduction <add>, %56, %cst_22 [1] : vector<8x8xf32> to vector<8xf32>
    %58 = vector.shape_cast %57 : vector<8xf32> to vector<8x1xf32>
    %59 = tpu.reciprocal %58 {approx = true} : vector<8x1xf32> -> vector<8x1xf32>
    %60 = vector.broadcast %59 : vector<8x1xf32> to vector<8x8xf32>
    %61 = arith.mulf %56, %60 : vector<8x8xf32>
    %cst_23 = arith.constant dense<0.000000e+00> : vector<8x8xf32>
    %62 = tpu.matmul %61, %50, %cst_23 {dimension_numbers = #tpu.dot_dimension_numbers<[1], [0], [0], [1], [0, 0, 1, 1], [], []>} : vector<8x8xf32>, vector<8x8xf32>, vector<8x8xf32> -> vector<8x8xf32>
    %63 = vector.extract_strided_slice %17 {offsets = [0, 24], sizes = [8, 8], strides = [1, 1]} : vector<8x96xf32> to vector<8x8xf32>
    %64 = vector.extract_strided_slice %17 {offsets = [0, 56], sizes = [8, 8], strides = [1, 1]} : vector<8x96xf32> to vector<8x8xf32>
    %65 = vector.extract_strided_slice %17 {offsets = [0, 88], sizes = [8, 8], strides = [1, 1]} : vector<8x96xf32> to vector<8x8xf32>
    %cst_24 = arith.constant dense<0.000000e+00> : vector<8x8xf32>
    %66 = tpu.matmul %63, %64, %cst_24 {dimension_numbers = #tpu.dot_dimension_numbers<[1], [1], [0], [0], [0, 0, 1, 0], [], []>} : vector<8x8xf32>, vector<8x8xf32>, vector<8x8xf32> -> vector<8x8xf32>
    %cst_25 = arith.constant dense<0xFF800000> : vector<8xf32>
    %67 = vector.multi_reduction <maximumf>, %66, %cst_25 [1] : vector<8x8xf32> to vector<8xf32>
    %68 = vector.shape_cast %67 : vector<8xf32> to vector<8x1xf32>
    %69 = vector.broadcast %68 : vector<8x1xf32> to vector<8x8xf32>
    %70 = arith.subf %66, %69 : vector<8x8xf32>
    %71 = math.exp %70 : vector<8x8xf32>
    %cst_26 = arith.constant dense<0.000000e+00> : vector<8xf32>
    %72 = vector.multi_reduction <add>, %71, %cst_26 [1] : vector<8x8xf32> to vector<8xf32>
    %73 = vector.shape_cast %72 : vector<8xf32> to vector<8x1xf32>
    %74 = tpu.reciprocal %73 {approx = true} : vector<8x1xf32> -> vector<8x1xf32>
    %75 = vector.broadcast %74 : vector<8x1xf32> to vector<8x8xf32>
    %76 = arith.mulf %71, %75 : vector<8x8xf32>
    %cst_27 = arith.constant dense<0.000000e+00> : vector<8x8xf32>
    %77 = tpu.matmul %76, %65, %cst_27 {dimension_numbers = #tpu.dot_dimension_numbers<[1], [0], [0], [1], [0, 0, 1, 1], [], []>} : vector<8x8xf32>, vector<8x8xf32>, vector<8x8xf32> -> vector<8x8xf32>
    %78 = tpu.concatenate %32, %47, %62, %77 in 1 : vector<8x8xf32>, vector<8x8xf32>, vector<8x8xf32>, vector<8x8xf32> -> vector<8x32xf32>
    %c152 = arith.constant 152 : index
    %c0_28 = arith.constant 0 : index
    %79 = vector.load %arg1[%c152, %c0_28] : memref<392x128xf32, #tpu.memory_space<vmem>>, vector<32x32xf32>
    %cst_29 = arith.constant dense<0.000000e+00> : vector<8x32xf32>
    %80 = tpu.matmul %78, %79, %cst_29 {dimension_numbers = #tpu.dot_dimension_numbers<[1], [0], [0], [1], [0, 0, 1, 1], [], []>} : vector<8x32xf32>, vector<32x32xf32>, vector<8x32xf32> -> vector<8x32xf32>
    %c249 = arith.constant 249 : index
    %c0_30 = arith.constant 0 : index
    %81 = vector.load %arg1[%c249, %c0_30] : memref<392x128xf32, #tpu.memory_space<vmem>>, vector<1x32xf32>
    %82 = vector.broadcast %81 : vector<1x32xf32> to vector<8x32xf32>
    %83 = arith.addf %80, %82 : vector<8x32xf32>
    %84 = arith.addf %12, %83 : vector<8x32xf32>
    %c252 = arith.constant 252 : index
    %c0_31 = arith.constant 0 : index
    %85 = vector.load %arg1[%c252, %c0_31] : memref<392x128xf32, #tpu.memory_space<vmem>>, vector<1x32xf32>
    %c253 = arith.constant 253 : index
    %c0_32 = arith.constant 0 : index
    %86 = vector.load %arg1[%c253, %c0_32] : memref<392x128xf32, #tpu.memory_space<vmem>>, vector<1x32xf32>
    %cst_33 = arith.constant dense<0.000000e+00> : vector<8xf32>
    %87 = vector.multi_reduction <add>, %84, %cst_33 [1] : vector<8x32xf32> to vector<8xf32>
    %88 = vector.shape_cast %87 : vector<8xf32> to vector<8x1xf32>
    %cst_34 = arith.constant 3.200000e+01 : f32
    %89 = vector.broadcast %cst_34 : f32 to vector<8x1xf32>
    %90 = arith.divf %88, %89 : vector<8x1xf32>
    %91 = arith.mulf %84, %84 : vector<8x32xf32>
    %cst_35 = arith.constant dense<0.000000e+00> : vector<8xf32>
    %92 = vector.multi_reduction <add>, %91, %cst_35 [1] : vector<8x32xf32> to vector<8xf32>
    %93 = vector.shape_cast %92 : vector<8xf32> to vector<8x1xf32>
    %cst_36 = arith.constant 3.200000e+01 : f32
    %94 = vector.broadcast %cst_36 : f32 to vector<8x1xf32>
    %95 = arith.divf %93, %94 : vector<8x1xf32>
    %96 = arith.mulf %90, %90 : vector<8x1xf32>
    %97 = arith.subf %95, %96 : vector<8x1xf32>
    %98 = vector.broadcast %90 : vector<8x1xf32> to vector<8x32xf32>
    %99 = arith.subf %84, %98 : vector<8x32xf32>
    %cst_37 = arith.constant 9.99999974E-6 : f32
    %100 = vector.broadcast %cst_37 : f32 to vector<8x1xf32>
    %101 = arith.addf %97, %100 : vector<8x1xf32>
    %102 = math.rsqrt %101 : vector<8x1xf32>
    %103 = vector.broadcast %102 : vector<8x1xf32> to vector<8x32xf32>
    %104 = arith.mulf %99, %103 : vector<8x32xf32>
    %105 = vector.broadcast %85 : vector<1x32xf32> to vector<8x32xf32>
    %106 = arith.mulf %104, %105 : vector<8x32xf32>
    %107 = vector.broadcast %86 : vector<1x32xf32> to vector<8x32xf32>
    %108 = arith.addf %106, %107 : vector<8x32xf32>
    %c184 = arith.constant 184 : index
    %c0_38 = arith.constant 0 : index
    %109 = vector.load %arg1[%c184, %c0_38] : memref<392x128xf32, #tpu.memory_space<vmem>>, vector<32x128xf32>
    %cst_39 = arith.constant dense<0.000000e+00> : vector<8x128xf32>
    %110 = tpu.matmul %108, %109, %cst_39 {dimension_numbers = #tpu.dot_dimension_numbers<[1], [0], [0], [1], [0, 0, 1, 1], [], []>} : vector<8x32xf32>, vector<32x128xf32>, vector<8x128xf32> -> vector<8x128xf32>
    %c250 = arith.constant 250 : index
    %c0_40 = arith.constant 0 : index
    %111 = vector.load %arg1[%c250, %c0_40] : memref<392x128xf32, #tpu.memory_space<vmem>>, vector<1x128xf32>
    %112 = vector.broadcast %111 : vector<1x128xf32> to vector<8x128xf32>
    %113 = arith.addf %110, %112 : vector<8x128xf32>
    %cst_41 = arith.constant 0.000000e+00 : f32
    %114 = vector.broadcast %cst_41 : f32 to vector<8x128xf32>
    %115 = arith.maximumf %113, %114 : vector<8x128xf32>
    %c216 = arith.constant 216 : index
    %c0_42 = arith.constant 0 : index
    %116 = vector.load %arg1[%c216, %c0_42] : memref<392x128xf32, #tpu.memory_space<vmem>>, vector<32x128xf32>
    %cst_43 = arith.constant dense<0.000000e+00> : vector<8x32xf32>
    %117 = tpu.matmul %115, %116, %cst_43 {dimension_numbers = #tpu.dot_dimension_numbers<[1], [1], [0], [0], [0, 0, 1, 0], [], []>} : vector<8x128xf32>, vector<32x128xf32>, vector<8x32xf32> -> vector<8x32xf32>
    %c251 = arith.constant 251 : index
    %c0_44 = arith.constant 0 : index
    %118 = vector.load %arg1[%c251, %c0_44] : memref<392x128xf32, #tpu.memory_space<vmem>>, vector<1x32xf32>
    %119 = vector.broadcast %118 : vector<1x32xf32> to vector<8x32xf32>
    %120 = arith.addf %117, %119 : vector<8x32xf32>
    %121 = arith.addf %108, %120 : vector<8x32xf32>
    %c254 = arith.constant 254 : index
    %c0_45 = arith.constant 0 : index
    %122 = vector.load %arg1[%c254, %c0_45] : memref<392x128xf32, #tpu.memory_space<vmem>>, vector<1x32xf32>
    %c255 = arith.constant 255 : index
    %c0_46 = arith.constant 0 : index
    %123 = vector.load %arg1[%c255, %c0_46] : memref<392x128xf32, #tpu.memory_space<vmem>>, vector<1x32xf32>
    %cst_47 = arith.constant dense<0.000000e+00> : vector<8xf32>
    %124 = vector.multi_reduction <add>, %121, %cst_47 [1] : vector<8x32xf32> to vector<8xf32>
    %125 = vector.shape_cast %124 : vector<8xf32> to vector<8x1xf32>
    %cst_48 = arith.constant 3.200000e+01 : f32
    %126 = vector.broadcast %cst_48 : f32 to vector<8x1xf32>
    %127 = arith.divf %125, %126 : vector<8x1xf32>
    %128 = arith.mulf %121, %121 : vector<8x32xf32>
    %cst_49 = arith.constant dense<0.000000e+00> : vector<8xf32>
    %129 = vector.multi_reduction <add>, %128, %cst_49 [1] : vector<8x32xf32> to vector<8xf32>
    %130 = vector.shape_cast %129 : vector<8xf32> to vector<8x1xf32>
    %cst_50 = arith.constant 3.200000e+01 : f32
    %131 = vector.broadcast %cst_50 : f32 to vector<8x1xf32>
    %132 = arith.divf %130, %131 : vector<8x1xf32>
    %133 = arith.mulf %127, %127 : vector<8x1xf32>
    %134 = arith.subf %132, %133 : vector<8x1xf32>
    %135 = vector.broadcast %127 : vector<8x1xf32> to vector<8x32xf32>
    %136 = arith.subf %121, %135 : vector<8x32xf32>
    %cst_51 = arith.constant 9.99999974E-6 : f32
    %137 = vector.broadcast %cst_51 : f32 to vector<8x1xf32>
    %138 = arith.addf %134, %137 : vector<8x1xf32>
    %139 = math.rsqrt %138 : vector<8x1xf32>
    %140 = vector.broadcast %139 : vector<8x1xf32> to vector<8x32xf32>
    %141 = arith.mulf %136, %140 : vector<8x32xf32>
    %142 = vector.broadcast %122 : vector<1x32xf32> to vector<8x32xf32>
    %143 = arith.mulf %141, %142 : vector<8x32xf32>
    %144 = vector.broadcast %123 : vector<1x32xf32> to vector<8x32xf32>
    %145 = arith.addf %143, %144 : vector<8x32xf32>
    %c256 = arith.constant 256 : index
    %c0_52 = arith.constant 0 : index
    %146 = vector.load %arg1[%c256, %c0_52] : memref<392x128xf32, #tpu.memory_space<vmem>>, vector<32x96xf32>
    %cst_53 = arith.constant dense<0.000000e+00> : vector<8x96xf32>
    %147 = tpu.matmul %145, %146, %cst_53 {dimension_numbers = #tpu.dot_dimension_numbers<[1], [0], [0], [1], [0, 0, 1, 1], [], []>} : vector<8x32xf32>, vector<32x96xf32>, vector<8x96xf32> -> vector<8x96xf32>
    %c384 = arith.constant 384 : index
    %c0_54 = arith.constant 0 : index
    %148 = vector.load %arg1[%c384, %c0_54] : memref<392x128xf32, #tpu.memory_space<vmem>>, vector<1x96xf32>
    %149 = vector.broadcast %148 : vector<1x96xf32> to vector<8x96xf32>
    %150 = arith.addf %147, %149 : vector<8x96xf32>
    %151 = vector.extract_strided_slice %150 {offsets = [0, 0], sizes = [8, 8], strides = [1, 1]} : vector<8x96xf32> to vector<8x8xf32>
    %152 = vector.extract_strided_slice %150 {offsets = [0, 32], sizes = [8, 8], strides = [1, 1]} : vector<8x96xf32> to vector<8x8xf32>
    %153 = vector.extract_strided_slice %150 {offsets = [0, 64], sizes = [8, 8], strides = [1, 1]} : vector<8x96xf32> to vector<8x8xf32>
    %cst_55 = arith.constant dense<0.000000e+00> : vector<8x8xf32>
    %154 = tpu.matmul %151, %152, %cst_55 {dimension_numbers = #tpu.dot_dimension_numbers<[1], [1], [0], [0], [0, 0, 1, 0], [], []>} : vector<8x8xf32>, vector<8x8xf32>, vector<8x8xf32> -> vector<8x8xf32>
    %cst_56 = arith.constant dense<0xFF800000> : vector<8xf32>
    %155 = vector.multi_reduction <maximumf>, %154, %cst_56 [1] : vector<8x8xf32> to vector<8xf32>
    %156 = vector.shape_cast %155 : vector<8xf32> to vector<8x1xf32>
    %157 = vector.broadcast %156 : vector<8x1xf32> to vector<8x8xf32>
    %158 = arith.subf %154, %157 : vector<8x8xf32>
    %159 = math.exp %158 : vector<8x8xf32>
    %cst_57 = arith.constant dense<0.000000e+00> : vector<8xf32>
    %160 = vector.multi_reduction <add>, %159, %cst_57 [1] : vector<8x8xf32> to vector<8xf32>
    %161 = vector.shape_cast %160 : vector<8xf32> to vector<8x1xf32>
    %162 = tpu.reciprocal %161 {approx = true} : vector<8x1xf32> -> vector<8x1xf32>
    %163 = vector.broadcast %162 : vector<8x1xf32> to vector<8x8xf32>
    %164 = arith.mulf %159, %163 : vector<8x8xf32>
    %cst_58 = arith.constant dense<0.000000e+00> : vector<8x8xf32>
    %165 = tpu.matmul %164, %153, %cst_58 {dimension_numbers = #tpu.dot_dimension_numbers<[1], [0], [0], [1], [0, 0, 1, 1], [], []>} : vector<8x8xf32>, vector<8x8xf32>, vector<8x8xf32> -> vector<8x8xf32>
    %166 = vector.extract_strided_slice %150 {offsets = [0, 8], sizes = [8, 8], strides = [1, 1]} : vector<8x96xf32> to vector<8x8xf32>
    %167 = vector.extract_strided_slice %150 {offsets = [0, 40], sizes = [8, 8], strides = [1, 1]} : vector<8x96xf32> to vector<8x8xf32>
    %168 = vector.extract_strided_slice %150 {offsets = [0, 72], sizes = [8, 8], strides = [1, 1]} : vector<8x96xf32> to vector<8x8xf32>
    %cst_59 = arith.constant dense<0.000000e+00> : vector<8x8xf32>
    %169 = tpu.matmul %166, %167, %cst_59 {dimension_numbers = #tpu.dot_dimension_numbers<[1], [1], [0], [0], [0, 0, 1, 0], [], []>} : vector<8x8xf32>, vector<8x8xf32>, vector<8x8xf32> -> vector<8x8xf32>
    %cst_60 = arith.constant dense<0xFF800000> : vector<8xf32>
    %170 = vector.multi_reduction <maximumf>, %169, %cst_60 [1] : vector<8x8xf32> to vector<8xf32>
    %171 = vector.shape_cast %170 : vector<8xf32> to vector<8x1xf32>
    %172 = vector.broadcast %171 : vector<8x1xf32> to vector<8x8xf32>
    %173 = arith.subf %169, %172 : vector<8x8xf32>
    %174 = math.exp %173 : vector<8x8xf32>
    %cst_61 = arith.constant dense<0.000000e+00> : vector<8xf32>
    %175 = vector.multi_reduction <add>, %174, %cst_61 [1] : vector<8x8xf32> to vector<8xf32>
    %176 = vector.shape_cast %175 : vector<8xf32> to vector<8x1xf32>
    %177 = tpu.reciprocal %176 {approx = true} : vector<8x1xf32> -> vector<8x1xf32>
    %178 = vector.broadcast %177 : vector<8x1xf32> to vector<8x8xf32>
    %179 = arith.mulf %174, %178 : vector<8x8xf32>
    %cst_62 = arith.constant dense<0.000000e+00> : vector<8x8xf32>
    %180 = tpu.matmul %179, %168, %cst_62 {dimension_numbers = #tpu.dot_dimension_numbers<[1], [0], [0], [1], [0, 0, 1, 1], [], []>} : vector<8x8xf32>, vector<8x8xf32>, vector<8x8xf32> -> vector<8x8xf32>
    %181 = vector.extract_strided_slice %150 {offsets = [0, 16], sizes = [8, 8], strides = [1, 1]} : vector<8x96xf32> to vector<8x8xf32>
    %182 = vector.extract_strided_slice %150 {offsets = [0, 48], sizes = [8, 8], strides = [1, 1]} : vector<8x96xf32> to vector<8x8xf32>
    %183 = vector.extract_strided_slice %150 {offsets = [0, 80], sizes = [8, 8], strides = [1, 1]} : vector<8x96xf32> to vector<8x8xf32>
    %cst_63 = arith.constant dense<0.000000e+00> : vector<8x8xf32>
    %184 = tpu.matmul %181, %182, %cst_63 {dimension_numbers = #tpu.dot_dimension_numbers<[1], [1], [0], [0], [0, 0, 1, 0], [], []>} : vector<8x8xf32>, vector<8x8xf32>, vector<8x8xf32> -> vector<8x8xf32>
    %cst_64 = arith.constant dense<0xFF800000> : vector<8xf32>
    %185 = vector.multi_reduction <maximumf>, %184, %cst_64 [1] : vector<8x8xf32> to vector<8xf32>
    %186 = vector.shape_cast %185 : vector<8xf32> to vector<8x1xf32>
    %187 = vector.broadcast %186 : vector<8x1xf32> to vector<8x8xf32>
    %188 = arith.subf %184, %187 : vector<8x8xf32>
    %189 = math.exp %188 : vector<8x8xf32>
    %cst_65 = arith.constant dense<0.000000e+00> : vector<8xf32>
    %190 = vector.multi_reduction <add>, %189, %cst_65 [1] : vector<8x8xf32> to vector<8xf32>
    %191 = vector.shape_cast %190 : vector<8xf32> to vector<8x1xf32>
    %192 = tpu.reciprocal %191 {approx = true} : vector<8x1xf32> -> vector<8x1xf32>
    %193 = vector.broadcast %192 : vector<8x1xf32> to vector<8x8xf32>
    %194 = arith.mulf %189, %193 : vector<8x8xf32>
    %cst_66 = arith.constant dense<0.000000e+00> : vector<8x8xf32>
    %195 = tpu.matmul %194, %183, %cst_66 {dimension_numbers = #tpu.dot_dimension_numbers<[1], [0], [0], [1], [0, 0, 1, 1], [], []>} : vector<8x8xf32>, vector<8x8xf32>, vector<8x8xf32> -> vector<8x8xf32>
    %196 = vector.extract_strided_slice %150 {offsets = [0, 24], sizes = [8, 8], strides = [1, 1]} : vector<8x96xf32> to vector<8x8xf32>
    %197 = vector.extract_strided_slice %150 {offsets = [0, 56], sizes = [8, 8], strides = [1, 1]} : vector<8x96xf32> to vector<8x8xf32>
    %198 = vector.extract_strided_slice %150 {offsets = [0, 88], sizes = [8, 8], strides = [1, 1]} : vector<8x96xf32> to vector<8x8xf32>
    %cst_67 = arith.constant dense<0.000000e+00> : vector<8x8xf32>
    %199 = tpu.matmul %196, %197, %cst_67 {dimension_numbers = #tpu.dot_dimension_numbers<[1], [1], [0], [0], [0, 0, 1, 0], [], []>} : vector<8x8xf32>, vector<8x8xf32>, vector<8x8xf32> -> vector<8x8xf32>
    %cst_68 = arith.constant dense<0xFF800000> : vector<8xf32>
    %200 = vector.multi_reduction <maximumf>, %199, %cst_68 [1] : vector<8x8xf32> to vector<8xf32>
    %201 = vector.shape_cast %200 : vector<8xf32> to vector<8x1xf32>
    %202 = vector.broadcast %201 : vector<8x1xf32> to vector<8x8xf32>
    %203 = arith.subf %199, %202 : vector<8x8xf32>
    %204 = math.exp %203 : vector<8x8xf32>
    %cst_69 = arith.constant dense<0.000000e+00> : vector<8xf32>
    %205 = vector.multi_reduction <add>, %204, %cst_69 [1] : vector<8x8xf32> to vector<8xf32>
    %206 = vector.shape_cast %205 : vector<8xf32> to vector<8x1xf32>
    %207 = tpu.reciprocal %206 {approx = true} : vector<8x1xf32> -> vector<8x1xf32>
    %208 = vector.broadcast %207 : vector<8x1xf32> to vector<8x8xf32>
    %209 = arith.mulf %204, %208 : vector<8x8xf32>
    %cst_70 = arith.constant dense<0.000000e+00> : vector<8x8xf32>
    %210 = tpu.matmul %209, %198, %cst_70 {dimension_numbers = #tpu.dot_dimension_numbers<[1], [0], [0], [1], [0, 0, 1, 1], [], []>} : vector<8x8xf32>, vector<8x8xf32>, vector<8x8xf32> -> vector<8x8xf32>
    %211 = tpu.concatenate %165, %180, %195, %210 in 1 : vector<8x8xf32>, vector<8x8xf32>, vector<8x8xf32>, vector<8x8xf32> -> vector<8x32xf32>
    %c288 = arith.constant 288 : index
    %c0_71 = arith.constant 0 : index
    %212 = vector.load %arg1[%c288, %c0_71] : memref<392x128xf32, #tpu.memory_space<vmem>>, vector<32x32xf32>
    %cst_72 = arith.constant dense<0.000000e+00> : vector<8x32xf32>
    %213 = tpu.matmul %211, %212, %cst_72 {dimension_numbers = #tpu.dot_dimension_numbers<[1], [0], [0], [1], [0, 0, 1, 1], [], []>} : vector<8x32xf32>, vector<32x32xf32>, vector<8x32xf32> -> vector<8x32xf32>
    %c385 = arith.constant 385 : index
    %c0_73 = arith.constant 0 : index
    %214 = vector.load %arg1[%c385, %c0_73] : memref<392x128xf32, #tpu.memory_space<vmem>>, vector<1x32xf32>
    %215 = vector.broadcast %214 : vector<1x32xf32> to vector<8x32xf32>
    %216 = arith.addf %213, %215 : vector<8x32xf32>
    %217 = arith.addf %145, %216 : vector<8x32xf32>
    %c388 = arith.constant 388 : index
    %c0_74 = arith.constant 0 : index
    %218 = vector.load %arg1[%c388, %c0_74] : memref<392x128xf32, #tpu.memory_space<vmem>>, vector<1x32xf32>
    %c389 = arith.constant 389 : index
    %c0_75 = arith.constant 0 : index
    %219 = vector.load %arg1[%c389, %c0_75] : memref<392x128xf32, #tpu.memory_space<vmem>>, vector<1x32xf32>
    %cst_76 = arith.constant dense<0.000000e+00> : vector<8xf32>
    %220 = vector.multi_reduction <add>, %217, %cst_76 [1] : vector<8x32xf32> to vector<8xf32>
    %221 = vector.shape_cast %220 : vector<8xf32> to vector<8x1xf32>
    %cst_77 = arith.constant 3.200000e+01 : f32
    %222 = vector.broadcast %cst_77 : f32 to vector<8x1xf32>
    %223 = arith.divf %221, %222 : vector<8x1xf32>
    %224 = arith.mulf %217, %217 : vector<8x32xf32>
    %cst_78 = arith.constant dense<0.000000e+00> : vector<8xf32>
    %225 = vector.multi_reduction <add>, %224, %cst_78 [1] : vector<8x32xf32> to vector<8xf32>
    %226 = vector.shape_cast %225 : vector<8xf32> to vector<8x1xf32>
    %cst_79 = arith.constant 3.200000e+01 : f32
    %227 = vector.broadcast %cst_79 : f32 to vector<8x1xf32>
    %228 = arith.divf %226, %227 : vector<8x1xf32>
    %229 = arith.mulf %223, %223 : vector<8x1xf32>
    %230 = arith.subf %228, %229 : vector<8x1xf32>
    %231 = vector.broadcast %223 : vector<8x1xf32> to vector<8x32xf32>
    %232 = arith.subf %217, %231 : vector<8x32xf32>
    %cst_80 = arith.constant 9.99999974E-6 : f32
    %233 = vector.broadcast %cst_80 : f32 to vector<8x1xf32>
    %234 = arith.addf %230, %233 : vector<8x1xf32>
    %235 = math.rsqrt %234 : vector<8x1xf32>
    %236 = vector.broadcast %235 : vector<8x1xf32> to vector<8x32xf32>
    %237 = arith.mulf %232, %236 : vector<8x32xf32>
    %238 = vector.broadcast %218 : vector<1x32xf32> to vector<8x32xf32>
    %239 = arith.mulf %237, %238 : vector<8x32xf32>
    %240 = vector.broadcast %219 : vector<1x32xf32> to vector<8x32xf32>
    %241 = arith.addf %239, %240 : vector<8x32xf32>
    %c320 = arith.constant 320 : index
    %c0_81 = arith.constant 0 : index
    %242 = vector.load %arg1[%c320, %c0_81] : memref<392x128xf32, #tpu.memory_space<vmem>>, vector<32x128xf32>
    %cst_82 = arith.constant dense<0.000000e+00> : vector<8x128xf32>
    %243 = tpu.matmul %241, %242, %cst_82 {dimension_numbers = #tpu.dot_dimension_numbers<[1], [0], [0], [1], [0, 0, 1, 1], [], []>} : vector<8x32xf32>, vector<32x128xf32>, vector<8x128xf32> -> vector<8x128xf32>
    %c386 = arith.constant 386 : index
    %c0_83 = arith.constant 0 : index
    %244 = vector.load %arg1[%c386, %c0_83] : memref<392x128xf32, #tpu.memory_space<vmem>>, vector<1x128xf32>
    %245 = vector.broadcast %244 : vector<1x128xf32> to vector<8x128xf32>
    %246 = arith.addf %243, %245 : vector<8x128xf32>
    %cst_84 = arith.constant 0.000000e+00 : f32
    %247 = vector.broadcast %cst_84 : f32 to vector<8x128xf32>
    %248 = arith.maximumf %246, %247 : vector<8x128xf32>
    %c352 = arith.constant 352 : index
    %c0_85 = arith.constant 0 : index
    %249 = vector.load %arg1[%c352, %c0_85] : memref<392x128xf32, #tpu.memory_space<vmem>>, vector<32x128xf32>
    %cst_86 = arith.constant dense<0.000000e+00> : vector<8x32xf32>
    %250 = tpu.matmul %248, %249, %cst_86 {dimension_numbers = #tpu.dot_dimension_numbers<[1], [1], [0], [0], [0, 0, 1, 0], [], []>} : vector<8x128xf32>, vector<32x128xf32>, vector<8x32xf32> -> vector<8x32xf32>
    %c387 = arith.constant 387 : index
    %c0_87 = arith.constant 0 : index
    %251 = vector.load %arg1[%c387, %c0_87] : memref<392x128xf32, #tpu.memory_space<vmem>>, vector<1x32xf32>
    %252 = vector.broadcast %251 : vector<1x32xf32> to vector<8x32xf32>
    %253 = arith.addf %250, %252 : vector<8x32xf32>
    %254 = arith.addf %241, %253 : vector<8x32xf32>
    %c390 = arith.constant 390 : index
    %c0_88 = arith.constant 0 : index
    %255 = vector.load %arg1[%c390, %c0_88] : memref<392x128xf32, #tpu.memory_space<vmem>>, vector<1x32xf32>
    %c391 = arith.constant 391 : index
    %c0_89 = arith.constant 0 : index
    %256 = vector.load %arg1[%c391, %c0_89] : memref<392x128xf32, #tpu.memory_space<vmem>>, vector<1x32xf32>
    %cst_90 = arith.constant dense<0.000000e+00> : vector<8xf32>
    %257 = vector.multi_reduction <add>, %254, %cst_90 [1] : vector<8x32xf32> to vector<8xf32>
    %258 = vector.shape_cast %257 : vector<8xf32> to vector<8x1xf32>
    %cst_91 = arith.constant 3.200000e+01 : f32
    %259 = vector.broadcast %cst_91 : f32 to vector<8x1xf32>
    %260 = arith.divf %258, %259 : vector<8x1xf32>
    %261 = arith.mulf %254, %254 : vector<8x32xf32>
    %cst_92 = arith.constant dense<0.000000e+00> : vector<8xf32>
    %262 = vector.multi_reduction <add>, %261, %cst_92 [1] : vector<8x32xf32> to vector<8xf32>
    %263 = vector.shape_cast %262 : vector<8xf32> to vector<8x1xf32>
    %cst_93 = arith.constant 3.200000e+01 : f32
    %264 = vector.broadcast %cst_93 : f32 to vector<8x1xf32>
    %265 = arith.divf %263, %264 : vector<8x1xf32>
    %266 = arith.mulf %260, %260 : vector<8x1xf32>
    %267 = arith.subf %265, %266 : vector<8x1xf32>
    %268 = vector.broadcast %260 : vector<8x1xf32> to vector<8x32xf32>
    %269 = arith.subf %254, %268 : vector<8x32xf32>
    %cst_94 = arith.constant 9.99999974E-6 : f32
    %270 = vector.broadcast %cst_94 : f32 to vector<8x1xf32>
    %271 = arith.addf %267, %270 : vector<8x1xf32>
    %272 = math.rsqrt %271 : vector<8x1xf32>
    %273 = vector.broadcast %272 : vector<8x1xf32> to vector<8x32xf32>
    %274 = arith.mulf %269, %273 : vector<8x32xf32>
    %275 = vector.broadcast %255 : vector<1x32xf32> to vector<8x32xf32>
    %276 = arith.mulf %274, %275 : vector<8x32xf32>
    %277 = vector.broadcast %256 : vector<1x32xf32> to vector<8x32xf32>
    %278 = arith.addf %276, %277 : vector<8x32xf32>
    %279 = arith.addf %278, %10 : vector<8x32xf32>
    %cst_95 = arith.constant dense<0.000000e+00> : vector<8x64xf32>
    %280 = tpu.matmul %279, %1, %cst_95 {dimension_numbers = #tpu.dot_dimension_numbers<[1], [0], [0], [1], [0, 0, 1, 1], [], []>} : vector<8x32xf32>, vector<32x64xf32>, vector<8x64xf32> -> vector<8x64xf32>
    %281 = vector.broadcast %2 : vector<1x64xf32> to vector<8x64xf32>
    %282 = arith.addf %280, %281 : vector<8x64xf32>
    %cst_96 = arith.constant 0.000000e+00 : f32
    %283 = vector.broadcast %cst_96 : f32 to vector<8x64xf32>
    %284 = arith.maximumf %282, %283 : vector<8x64xf32>
    %285 = vector.extract_strided_slice %3 {offsets = [0, 0], sizes = [64, 8], strides = [1, 1]} : vector<64x24xf32> to vector<64x8xf32>
    %cst_97 = arith.constant dense<0.000000e+00> : vector<8x8xf32>
    %286 = tpu.matmul %284, %285, %cst_97 {dimension_numbers = #tpu.dot_dimension_numbers<[1], [0], [0], [1], [0, 0, 1, 1], [], []>} : vector<8x64xf32>, vector<64x8xf32>, vector<8x8xf32> -> vector<8x8xf32>
    %287 = vector.extract_strided_slice %4 {offsets = [0, 0], sizes = [1, 8], strides = [1, 1]} : vector<1x24xf32> to vector<1x8xf32>
    %288 = vector.broadcast %287 : vector<1x8xf32> to vector<8x8xf32>
    %289 = arith.addf %286, %288 : vector<8x8xf32>
    %c8_98 = arith.constant 8 : index
    %c32 = arith.constant 32 : index
    %290 = vector.load %arg1[%c8_98, %c32] : memref<392x128xf32, #tpu.memory_space<vmem>>, vector<6x32xf32>
    %cst_99 = arith.constant dense<0.000000e+00> : vector<8x32xf32>
    %291 = tpu.matmul %5, %290, %cst_99 {dimension_numbers = #tpu.dot_dimension_numbers<[1], [0], [0], [1], [0, 0, 1, 1], [], []>} : vector<8x6xf32>, vector<6x32xf32>, vector<8x32xf32> -> vector<8x32xf32>
    %c8_100 = arith.constant 8 : index
    %c64 = arith.constant 64 : index
    %292 = vector.load %arg1[%c8_100, %c64] : memref<392x128xf32, #tpu.memory_space<vmem>>, vector<8x32xf32>
    %cst_101 = arith.constant dense<0.000000e+00> : vector<8x32xf32>
    %293 = tpu.matmul %289, %292, %cst_101 {dimension_numbers = #tpu.dot_dimension_numbers<[1], [0], [0], [1], [0, 0, 1, 1], [], []>} : vector<8x8xf32>, vector<8x32xf32>, vector<8x32xf32> -> vector<8x32xf32>
    %294 = arith.addf %291, %293 : vector<8x32xf32>
    %c1 = arith.constant 1 : index
    %c0_102 = arith.constant 0 : index
    %295 = vector.load %arg1[%c1, %c0_102] : memref<392x128xf32, #tpu.memory_space<vmem>>, vector<1x32xf32>
    %296 = vector.broadcast %295 : vector<1x32xf32> to vector<8x32xf32>
    %297 = arith.addf %294, %296 : vector<8x32xf32>
    %298 = vector.broadcast %0 : vector<1x32xf32> to vector<8x32xf32>
    %299 = arith.addf %297, %298 : vector<8x32xf32>
    %c120_103 = arith.constant 120 : index
    %c0_104 = arith.constant 0 : index
    %300 = vector.load %arg1[%c120_103, %c0_104] : memref<392x128xf32, #tpu.memory_space<vmem>>, vector<32x96xf32>
    %cst_105 = arith.constant dense<0.000000e+00> : vector<8x96xf32>
    %301 = tpu.matmul %299, %300, %cst_105 {dimension_numbers = #tpu.dot_dimension_numbers<[1], [0], [0], [1], [0, 0, 1, 1], [], []>} : vector<8x32xf32>, vector<32x96xf32>, vector<8x96xf32> -> vector<8x96xf32>
    %c248_106 = arith.constant 248 : index
    %c0_107 = arith.constant 0 : index
    %302 = vector.load %arg1[%c248_106, %c0_107] : memref<392x128xf32, #tpu.memory_space<vmem>>, vector<1x96xf32>
    %303 = vector.broadcast %302 : vector<1x96xf32> to vector<8x96xf32>
    %304 = arith.addf %301, %303 : vector<8x96xf32>
    %305 = vector.extract_strided_slice %304 {offsets = [0, 0], sizes = [8, 8], strides = [1, 1]} : vector<8x96xf32> to vector<8x8xf32>
    %306 = vector.extract_strided_slice %304 {offsets = [0, 32], sizes = [8, 8], strides = [1, 1]} : vector<8x96xf32> to vector<8x8xf32>
    %307 = vector.extract_strided_slice %304 {offsets = [0, 64], sizes = [8, 8], strides = [1, 1]} : vector<8x96xf32> to vector<8x8xf32>
    %cst_108 = arith.constant dense<0.000000e+00> : vector<8x8xf32>
    %308 = tpu.matmul %305, %306, %cst_108 {dimension_numbers = #tpu.dot_dimension_numbers<[1], [1], [0], [0], [0, 0, 1, 0], [], []>} : vector<8x8xf32>, vector<8x8xf32>, vector<8x8xf32> -> vector<8x8xf32>
    %cst_109 = arith.constant dense<0xFF800000> : vector<8xf32>
    %309 = vector.multi_reduction <maximumf>, %308, %cst_109 [1] : vector<8x8xf32> to vector<8xf32>
    %310 = vector.shape_cast %309 : vector<8xf32> to vector<8x1xf32>
    %311 = vector.broadcast %310 : vector<8x1xf32> to vector<8x8xf32>
    %312 = arith.subf %308, %311 : vector<8x8xf32>
    %313 = math.exp %312 : vector<8x8xf32>
    %cst_110 = arith.constant dense<0.000000e+00> : vector<8xf32>
    %314 = vector.multi_reduction <add>, %313, %cst_110 [1] : vector<8x8xf32> to vector<8xf32>
    %315 = vector.shape_cast %314 : vector<8xf32> to vector<8x1xf32>
    %316 = tpu.reciprocal %315 {approx = true} : vector<8x1xf32> -> vector<8x1xf32>
    %317 = vector.broadcast %316 : vector<8x1xf32> to vector<8x8xf32>
    %318 = arith.mulf %313, %317 : vector<8x8xf32>
    %cst_111 = arith.constant dense<0.000000e+00> : vector<8x8xf32>
    %319 = tpu.matmul %318, %307, %cst_111 {dimension_numbers = #tpu.dot_dimension_numbers<[1], [0], [0], [1], [0, 0, 1, 1], [], []>} : vector<8x8xf32>, vector<8x8xf32>, vector<8x8xf32> -> vector<8x8xf32>
    %320 = vector.extract_strided_slice %304 {offsets = [0, 8], sizes = [8, 8], strides = [1, 1]} : vector<8x96xf32> to vector<8x8xf32>
    %321 = vector.extract_strided_slice %304 {offsets = [0, 40], sizes = [8, 8], strides = [1, 1]} : vector<8x96xf32> to vector<8x8xf32>
    %322 = vector.extract_strided_slice %304 {offsets = [0, 72], sizes = [8, 8], strides = [1, 1]} : vector<8x96xf32> to vector<8x8xf32>
    %cst_112 = arith.constant dense<0.000000e+00> : vector<8x8xf32>
    %323 = tpu.matmul %320, %321, %cst_112 {dimension_numbers = #tpu.dot_dimension_numbers<[1], [1], [0], [0], [0, 0, 1, 0], [], []>} : vector<8x8xf32>, vector<8x8xf32>, vector<8x8xf32> -> vector<8x8xf32>
    %cst_113 = arith.constant dense<0xFF800000> : vector<8xf32>
    %324 = vector.multi_reduction <maximumf>, %323, %cst_113 [1] : vector<8x8xf32> to vector<8xf32>
    %325 = vector.shape_cast %324 : vector<8xf32> to vector<8x1xf32>
    %326 = vector.broadcast %325 : vector<8x1xf32> to vector<8x8xf32>
    %327 = arith.subf %323, %326 : vector<8x8xf32>
    %328 = math.exp %327 : vector<8x8xf32>
    %cst_114 = arith.constant dense<0.000000e+00> : vector<8xf32>
    %329 = vector.multi_reduction <add>, %328, %cst_114 [1] : vector<8x8xf32> to vector<8xf32>
    %330 = vector.shape_cast %329 : vector<8xf32> to vector<8x1xf32>
    %331 = tpu.reciprocal %330 {approx = true} : vector<8x1xf32> -> vector<8x1xf32>
    %332 = vector.broadcast %331 : vector<8x1xf32> to vector<8x8xf32>
    %333 = arith.mulf %328, %332 : vector<8x8xf32>
    %cst_115 = arith.constant dense<0.000000e+00> : vector<8x8xf32>
    %334 = tpu.matmul %333, %322, %cst_115 {dimension_numbers = #tpu.dot_dimension_numbers<[1], [0], [0], [1], [0, 0, 1, 1], [], []>} : vector<8x8xf32>, vector<8x8xf32>, vector<8x8xf32> -> vector<8x8xf32>
    %335 = vector.extract_strided_slice %304 {offsets = [0, 16], sizes = [8, 8], strides = [1, 1]} : vector<8x96xf32> to vector<8x8xf32>
    %336 = vector.extract_strided_slice %304 {offsets = [0, 48], sizes = [8, 8], strides = [1, 1]} : vector<8x96xf32> to vector<8x8xf32>
    %337 = vector.extract_strided_slice %304 {offsets = [0, 80], sizes = [8, 8], strides = [1, 1]} : vector<8x96xf32> to vector<8x8xf32>
    %cst_116 = arith.constant dense<0.000000e+00> : vector<8x8xf32>
    %338 = tpu.matmul %335, %336, %cst_116 {dimension_numbers = #tpu.dot_dimension_numbers<[1], [1], [0], [0], [0, 0, 1, 0], [], []>} : vector<8x8xf32>, vector<8x8xf32>, vector<8x8xf32> -> vector<8x8xf32>
    %cst_117 = arith.constant dense<0xFF800000> : vector<8xf32>
    %339 = vector.multi_reduction <maximumf>, %338, %cst_117 [1] : vector<8x8xf32> to vector<8xf32>
    %340 = vector.shape_cast %339 : vector<8xf32> to vector<8x1xf32>
    %341 = vector.broadcast %340 : vector<8x1xf32> to vector<8x8xf32>
    %342 = arith.subf %338, %341 : vector<8x8xf32>
    %343 = math.exp %342 : vector<8x8xf32>
    %cst_118 = arith.constant dense<0.000000e+00> : vector<8xf32>
    %344 = vector.multi_reduction <add>, %343, %cst_118 [1] : vector<8x8xf32> to vector<8xf32>
    %345 = vector.shape_cast %344 : vector<8xf32> to vector<8x1xf32>
    %346 = tpu.reciprocal %345 {approx = true} : vector<8x1xf32> -> vector<8x1xf32>
    %347 = vector.broadcast %346 : vector<8x1xf32> to vector<8x8xf32>
    %348 = arith.mulf %343, %347 : vector<8x8xf32>
    %cst_119 = arith.constant dense<0.000000e+00> : vector<8x8xf32>
    %349 = tpu.matmul %348, %337, %cst_119 {dimension_numbers = #tpu.dot_dimension_numbers<[1], [0], [0], [1], [0, 0, 1, 1], [], []>} : vector<8x8xf32>, vector<8x8xf32>, vector<8x8xf32> -> vector<8x8xf32>
    %350 = vector.extract_strided_slice %304 {offsets = [0, 24], sizes = [8, 8], strides = [1, 1]} : vector<8x96xf32> to vector<8x8xf32>
    %351 = vector.extract_strided_slice %304 {offsets = [0, 56], sizes = [8, 8], strides = [1, 1]} : vector<8x96xf32> to vector<8x8xf32>
    %352 = vector.extract_strided_slice %304 {offsets = [0, 88], sizes = [8, 8], strides = [1, 1]} : vector<8x96xf32> to vector<8x8xf32>
    %cst_120 = arith.constant dense<0.000000e+00> : vector<8x8xf32>
    %353 = tpu.matmul %350, %351, %cst_120 {dimension_numbers = #tpu.dot_dimension_numbers<[1], [1], [0], [0], [0, 0, 1, 0], [], []>} : vector<8x8xf32>, vector<8x8xf32>, vector<8x8xf32> -> vector<8x8xf32>
    %cst_121 = arith.constant dense<0xFF800000> : vector<8xf32>
    %354 = vector.multi_reduction <maximumf>, %353, %cst_121 [1] : vector<8x8xf32> to vector<8xf32>
    %355 = vector.shape_cast %354 : vector<8xf32> to vector<8x1xf32>
    %356 = vector.broadcast %355 : vector<8x1xf32> to vector<8x8xf32>
    %357 = arith.subf %353, %356 : vector<8x8xf32>
    %358 = math.exp %357 : vector<8x8xf32>
    %cst_122 = arith.constant dense<0.000000e+00> : vector<8xf32>
    %359 = vector.multi_reduction <add>, %358, %cst_122 [1] : vector<8x8xf32> to vector<8xf32>
    %360 = vector.shape_cast %359 : vector<8xf32> to vector<8x1xf32>
    %361 = tpu.reciprocal %360 {approx = true} : vector<8x1xf32> -> vector<8x1xf32>
    %362 = vector.broadcast %361 : vector<8x1xf32> to vector<8x8xf32>
    %363 = arith.mulf %358, %362 : vector<8x8xf32>
    %cst_123 = arith.constant dense<0.000000e+00> : vector<8x8xf32>
    %364 = tpu.matmul %363, %352, %cst_123 {dimension_numbers = #tpu.dot_dimension_numbers<[1], [0], [0], [1], [0, 0, 1, 1], [], []>} : vector<8x8xf32>, vector<8x8xf32>, vector<8x8xf32> -> vector<8x8xf32>
    %365 = tpu.concatenate %319, %334, %349, %364 in 1 : vector<8x8xf32>, vector<8x8xf32>, vector<8x8xf32>, vector<8x8xf32> -> vector<8x32xf32>
    %c152_124 = arith.constant 152 : index
    %c0_125 = arith.constant 0 : index
    %366 = vector.load %arg1[%c152_124, %c0_125] : memref<392x128xf32, #tpu.memory_space<vmem>>, vector<32x32xf32>
    %cst_126 = arith.constant dense<0.000000e+00> : vector<8x32xf32>
    %367 = tpu.matmul %365, %366, %cst_126 {dimension_numbers = #tpu.dot_dimension_numbers<[1], [0], [0], [1], [0, 0, 1, 1], [], []>} : vector<8x32xf32>, vector<32x32xf32>, vector<8x32xf32> -> vector<8x32xf32>
    %c249_127 = arith.constant 249 : index
    %c0_128 = arith.constant 0 : index
    %368 = vector.load %arg1[%c249_127, %c0_128] : memref<392x128xf32, #tpu.memory_space<vmem>>, vector<1x32xf32>
    %369 = vector.broadcast %368 : vector<1x32xf32> to vector<8x32xf32>
    %370 = arith.addf %367, %369 : vector<8x32xf32>
    %371 = arith.addf %299, %370 : vector<8x32xf32>
    %c252_129 = arith.constant 252 : index
    %c0_130 = arith.constant 0 : index
    %372 = vector.load %arg1[%c252_129, %c0_130] : memref<392x128xf32, #tpu.memory_space<vmem>>, vector<1x32xf32>
    %c253_131 = arith.constant 253 : index
    %c0_132 = arith.constant 0 : index
    %373 = vector.load %arg1[%c253_131, %c0_132] : memref<392x128xf32, #tpu.memory_space<vmem>>, vector<1x32xf32>
    %cst_133 = arith.constant dense<0.000000e+00> : vector<8xf32>
    %374 = vector.multi_reduction <add>, %371, %cst_133 [1] : vector<8x32xf32> to vector<8xf32>
    %375 = vector.shape_cast %374 : vector<8xf32> to vector<8x1xf32>
    %cst_134 = arith.constant 3.200000e+01 : f32
    %376 = vector.broadcast %cst_134 : f32 to vector<8x1xf32>
    %377 = arith.divf %375, %376 : vector<8x1xf32>
    %378 = arith.mulf %371, %371 : vector<8x32xf32>
    %cst_135 = arith.constant dense<0.000000e+00> : vector<8xf32>
    %379 = vector.multi_reduction <add>, %378, %cst_135 [1] : vector<8x32xf32> to vector<8xf32>
    %380 = vector.shape_cast %379 : vector<8xf32> to vector<8x1xf32>
    %cst_136 = arith.constant 3.200000e+01 : f32
    %381 = vector.broadcast %cst_136 : f32 to vector<8x1xf32>
    %382 = arith.divf %380, %381 : vector<8x1xf32>
    %383 = arith.mulf %377, %377 : vector<8x1xf32>
    %384 = arith.subf %382, %383 : vector<8x1xf32>
    %385 = vector.broadcast %377 : vector<8x1xf32> to vector<8x32xf32>
    %386 = arith.subf %371, %385 : vector<8x32xf32>
    %cst_137 = arith.constant 9.99999974E-6 : f32
    %387 = vector.broadcast %cst_137 : f32 to vector<8x1xf32>
    %388 = arith.addf %384, %387 : vector<8x1xf32>
    %389 = math.rsqrt %388 : vector<8x1xf32>
    %390 = vector.broadcast %389 : vector<8x1xf32> to vector<8x32xf32>
    %391 = arith.mulf %386, %390 : vector<8x32xf32>
    %392 = vector.broadcast %372 : vector<1x32xf32> to vector<8x32xf32>
    %393 = arith.mulf %391, %392 : vector<8x32xf32>
    %394 = vector.broadcast %373 : vector<1x32xf32> to vector<8x32xf32>
    %395 = arith.addf %393, %394 : vector<8x32xf32>
    %c184_138 = arith.constant 184 : index
    %c0_139 = arith.constant 0 : index
    %396 = vector.load %arg1[%c184_138, %c0_139] : memref<392x128xf32, #tpu.memory_space<vmem>>, vector<32x128xf32>
    %cst_140 = arith.constant dense<0.000000e+00> : vector<8x128xf32>
    %397 = tpu.matmul %395, %396, %cst_140 {dimension_numbers = #tpu.dot_dimension_numbers<[1], [0], [0], [1], [0, 0, 1, 1], [], []>} : vector<8x32xf32>, vector<32x128xf32>, vector<8x128xf32> -> vector<8x128xf32>
    %c250_141 = arith.constant 250 : index
    %c0_142 = arith.constant 0 : index
    %398 = vector.load %arg1[%c250_141, %c0_142] : memref<392x128xf32, #tpu.memory_space<vmem>>, vector<1x128xf32>
    %399 = vector.broadcast %398 : vector<1x128xf32> to vector<8x128xf32>
    %400 = arith.addf %397, %399 : vector<8x128xf32>
    %cst_143 = arith.constant 0.000000e+00 : f32
    %401 = vector.broadcast %cst_143 : f32 to vector<8x128xf32>
    %402 = arith.maximumf %400, %401 : vector<8x128xf32>
    %c216_144 = arith.constant 216 : index
    %c0_145 = arith.constant 0 : index
    %403 = vector.load %arg1[%c216_144, %c0_145] : memref<392x128xf32, #tpu.memory_space<vmem>>, vector<32x128xf32>
    %cst_146 = arith.constant dense<0.000000e+00> : vector<8x32xf32>
    %404 = tpu.matmul %402, %403, %cst_146 {dimension_numbers = #tpu.dot_dimension_numbers<[1], [1], [0], [0], [0, 0, 1, 0], [], []>} : vector<8x128xf32>, vector<32x128xf32>, vector<8x32xf32> -> vector<8x32xf32>
    %c251_147 = arith.constant 251 : index
    %c0_148 = arith.constant 0 : index
    %405 = vector.load %arg1[%c251_147, %c0_148] : memref<392x128xf32, #tpu.memory_space<vmem>>, vector<1x32xf32>
    %406 = vector.broadcast %405 : vector<1x32xf32> to vector<8x32xf32>
    %407 = arith.addf %404, %406 : vector<8x32xf32>
    %408 = arith.addf %395, %407 : vector<8x32xf32>
    %c254_149 = arith.constant 254 : index
    %c0_150 = arith.constant 0 : index
    %409 = vector.load %arg1[%c254_149, %c0_150] : memref<392x128xf32, #tpu.memory_space<vmem>>, vector<1x32xf32>
    %c255_151 = arith.constant 255 : index
    %c0_152 = arith.constant 0 : index
    %410 = vector.load %arg1[%c255_151, %c0_152] : memref<392x128xf32, #tpu.memory_space<vmem>>, vector<1x32xf32>
    %cst_153 = arith.constant dense<0.000000e+00> : vector<8xf32>
    %411 = vector.multi_reduction <add>, %408, %cst_153 [1] : vector<8x32xf32> to vector<8xf32>
    %412 = vector.shape_cast %411 : vector<8xf32> to vector<8x1xf32>
    %cst_154 = arith.constant 3.200000e+01 : f32
    %413 = vector.broadcast %cst_154 : f32 to vector<8x1xf32>
    %414 = arith.divf %412, %413 : vector<8x1xf32>
    %415 = arith.mulf %408, %408 : vector<8x32xf32>
    %cst_155 = arith.constant dense<0.000000e+00> : vector<8xf32>
    %416 = vector.multi_reduction <add>, %415, %cst_155 [1] : vector<8x32xf32> to vector<8xf32>
    %417 = vector.shape_cast %416 : vector<8xf32> to vector<8x1xf32>
    %cst_156 = arith.constant 3.200000e+01 : f32
    %418 = vector.broadcast %cst_156 : f32 to vector<8x1xf32>
    %419 = arith.divf %417, %418 : vector<8x1xf32>
    %420 = arith.mulf %414, %414 : vector<8x1xf32>
    %421 = arith.subf %419, %420 : vector<8x1xf32>
    %422 = vector.broadcast %414 : vector<8x1xf32> to vector<8x32xf32>
    %423 = arith.subf %408, %422 : vector<8x32xf32>
    %cst_157 = arith.constant 9.99999974E-6 : f32
    %424 = vector.broadcast %cst_157 : f32 to vector<8x1xf32>
    %425 = arith.addf %421, %424 : vector<8x1xf32>
    %426 = math.rsqrt %425 : vector<8x1xf32>
    %427 = vector.broadcast %426 : vector<8x1xf32> to vector<8x32xf32>
    %428 = arith.mulf %423, %427 : vector<8x32xf32>
    %429 = vector.broadcast %409 : vector<1x32xf32> to vector<8x32xf32>
    %430 = arith.mulf %428, %429 : vector<8x32xf32>
    %431 = vector.broadcast %410 : vector<1x32xf32> to vector<8x32xf32>
    %432 = arith.addf %430, %431 : vector<8x32xf32>
    %c256_158 = arith.constant 256 : index
    %c0_159 = arith.constant 0 : index
    %433 = vector.load %arg1[%c256_158, %c0_159] : memref<392x128xf32, #tpu.memory_space<vmem>>, vector<32x96xf32>
    %cst_160 = arith.constant dense<0.000000e+00> : vector<8x96xf32>
    %434 = tpu.matmul %432, %433, %cst_160 {dimension_numbers = #tpu.dot_dimension_numbers<[1], [0], [0], [1], [0, 0, 1, 1], [], []>} : vector<8x32xf32>, vector<32x96xf32>, vector<8x96xf32> -> vector<8x96xf32>
    %c384_161 = arith.constant 384 : index
    %c0_162 = arith.constant 0 : index
    %435 = vector.load %arg1[%c384_161, %c0_162] : memref<392x128xf32, #tpu.memory_space<vmem>>, vector<1x96xf32>
    %436 = vector.broadcast %435 : vector<1x96xf32> to vector<8x96xf32>
    %437 = arith.addf %434, %436 : vector<8x96xf32>
    %438 = vector.extract_strided_slice %437 {offsets = [0, 0], sizes = [8, 8], strides = [1, 1]} : vector<8x96xf32> to vector<8x8xf32>
    %439 = vector.extract_strided_slice %437 {offsets = [0, 32], sizes = [8, 8], strides = [1, 1]} : vector<8x96xf32> to vector<8x8xf32>
    %440 = vector.extract_strided_slice %437 {offsets = [0, 64], sizes = [8, 8], strides = [1, 1]} : vector<8x96xf32> to vector<8x8xf32>
    %cst_163 = arith.constant dense<0.000000e+00> : vector<8x8xf32>
    %441 = tpu.matmul %438, %439, %cst_163 {dimension_numbers = #tpu.dot_dimension_numbers<[1], [1], [0], [0], [0, 0, 1, 0], [], []>} : vector<8x8xf32>, vector<8x8xf32>, vector<8x8xf32> -> vector<8x8xf32>
    %cst_164 = arith.constant dense<0xFF800000> : vector<8xf32>
    %442 = vector.multi_reduction <maximumf>, %441, %cst_164 [1] : vector<8x8xf32> to vector<8xf32>
    %443 = vector.shape_cast %442 : vector<8xf32> to vector<8x1xf32>
    %444 = vector.broadcast %443 : vector<8x1xf32> to vector<8x8xf32>
    %445 = arith.subf %441, %444 : vector<8x8xf32>
    %446 = math.exp %445 : vector<8x8xf32>
    %cst_165 = arith.constant dense<0.000000e+00> : vector<8xf32>
    %447 = vector.multi_reduction <add>, %446, %cst_165 [1] : vector<8x8xf32> to vector<8xf32>
    %448 = vector.shape_cast %447 : vector<8xf32> to vector<8x1xf32>
    %449 = tpu.reciprocal %448 {approx = true} : vector<8x1xf32> -> vector<8x1xf32>
    %450 = vector.broadcast %449 : vector<8x1xf32> to vector<8x8xf32>
    %451 = arith.mulf %446, %450 : vector<8x8xf32>
    %cst_166 = arith.constant dense<0.000000e+00> : vector<8x8xf32>
    %452 = tpu.matmul %451, %440, %cst_166 {dimension_numbers = #tpu.dot_dimension_numbers<[1], [0], [0], [1], [0, 0, 1, 1], [], []>} : vector<8x8xf32>, vector<8x8xf32>, vector<8x8xf32> -> vector<8x8xf32>
    %453 = vector.extract_strided_slice %437 {offsets = [0, 8], sizes = [8, 8], strides = [1, 1]} : vector<8x96xf32> to vector<8x8xf32>
    %454 = vector.extract_strided_slice %437 {offsets = [0, 40], sizes = [8, 8], strides = [1, 1]} : vector<8x96xf32> to vector<8x8xf32>
    %455 = vector.extract_strided_slice %437 {offsets = [0, 72], sizes = [8, 8], strides = [1, 1]} : vector<8x96xf32> to vector<8x8xf32>
    %cst_167 = arith.constant dense<0.000000e+00> : vector<8x8xf32>
    %456 = tpu.matmul %453, %454, %cst_167 {dimension_numbers = #tpu.dot_dimension_numbers<[1], [1], [0], [0], [0, 0, 1, 0], [], []>} : vector<8x8xf32>, vector<8x8xf32>, vector<8x8xf32> -> vector<8x8xf32>
    %cst_168 = arith.constant dense<0xFF800000> : vector<8xf32>
    %457 = vector.multi_reduction <maximumf>, %456, %cst_168 [1] : vector<8x8xf32> to vector<8xf32>
    %458 = vector.shape_cast %457 : vector<8xf32> to vector<8x1xf32>
    %459 = vector.broadcast %458 : vector<8x1xf32> to vector<8x8xf32>
    %460 = arith.subf %456, %459 : vector<8x8xf32>
    %461 = math.exp %460 : vector<8x8xf32>
    %cst_169 = arith.constant dense<0.000000e+00> : vector<8xf32>
    %462 = vector.multi_reduction <add>, %461, %cst_169 [1] : vector<8x8xf32> to vector<8xf32>
    %463 = vector.shape_cast %462 : vector<8xf32> to vector<8x1xf32>
    %464 = tpu.reciprocal %463 {approx = true} : vector<8x1xf32> -> vector<8x1xf32>
    %465 = vector.broadcast %464 : vector<8x1xf32> to vector<8x8xf32>
    %466 = arith.mulf %461, %465 : vector<8x8xf32>
    %cst_170 = arith.constant dense<0.000000e+00> : vector<8x8xf32>
    %467 = tpu.matmul %466, %455, %cst_170 {dimension_numbers = #tpu.dot_dimension_numbers<[1], [0], [0], [1], [0, 0, 1, 1], [], []>} : vector<8x8xf32>, vector<8x8xf32>, vector<8x8xf32> -> vector<8x8xf32>
    %468 = vector.extract_strided_slice %437 {offsets = [0, 16], sizes = [8, 8], strides = [1, 1]} : vector<8x96xf32> to vector<8x8xf32>
    %469 = vector.extract_strided_slice %437 {offsets = [0, 48], sizes = [8, 8], strides = [1, 1]} : vector<8x96xf32> to vector<8x8xf32>
    %470 = vector.extract_strided_slice %437 {offsets = [0, 80], sizes = [8, 8], strides = [1, 1]} : vector<8x96xf32> to vector<8x8xf32>
    %cst_171 = arith.constant dense<0.000000e+00> : vector<8x8xf32>
    %471 = tpu.matmul %468, %469, %cst_171 {dimension_numbers = #tpu.dot_dimension_numbers<[1], [1], [0], [0], [0, 0, 1, 0], [], []>} : vector<8x8xf32>, vector<8x8xf32>, vector<8x8xf32> -> vector<8x8xf32>
    %cst_172 = arith.constant dense<0xFF800000> : vector<8xf32>
    %472 = vector.multi_reduction <maximumf>, %471, %cst_172 [1] : vector<8x8xf32> to vector<8xf32>
    %473 = vector.shape_cast %472 : vector<8xf32> to vector<8x1xf32>
    %474 = vector.broadcast %473 : vector<8x1xf32> to vector<8x8xf32>
    %475 = arith.subf %471, %474 : vector<8x8xf32>
    %476 = math.exp %475 : vector<8x8xf32>
    %cst_173 = arith.constant dense<0.000000e+00> : vector<8xf32>
    %477 = vector.multi_reduction <add>, %476, %cst_173 [1] : vector<8x8xf32> to vector<8xf32>
    %478 = vector.shape_cast %477 : vector<8xf32> to vector<8x1xf32>
    %479 = tpu.reciprocal %478 {approx = true} : vector<8x1xf32> -> vector<8x1xf32>
    %480 = vector.broadcast %479 : vector<8x1xf32> to vector<8x8xf32>
    %481 = arith.mulf %476, %480 : vector<8x8xf32>
    %cst_174 = arith.constant dense<0.000000e+00> : vector<8x8xf32>
    %482 = tpu.matmul %481, %470, %cst_174 {dimension_numbers = #tpu.dot_dimension_numbers<[1], [0], [0], [1], [0, 0, 1, 1], [], []>} : vector<8x8xf32>, vector<8x8xf32>, vector<8x8xf32> -> vector<8x8xf32>
    %483 = vector.extract_strided_slice %437 {offsets = [0, 24], sizes = [8, 8], strides = [1, 1]} : vector<8x96xf32> to vector<8x8xf32>
    %484 = vector.extract_strided_slice %437 {offsets = [0, 56], sizes = [8, 8], strides = [1, 1]} : vector<8x96xf32> to vector<8x8xf32>
    %485 = vector.extract_strided_slice %437 {offsets = [0, 88], sizes = [8, 8], strides = [1, 1]} : vector<8x96xf32> to vector<8x8xf32>
    %cst_175 = arith.constant dense<0.000000e+00> : vector<8x8xf32>
    %486 = tpu.matmul %483, %484, %cst_175 {dimension_numbers = #tpu.dot_dimension_numbers<[1], [1], [0], [0], [0, 0, 1, 0], [], []>} : vector<8x8xf32>, vector<8x8xf32>, vector<8x8xf32> -> vector<8x8xf32>
    %cst_176 = arith.constant dense<0xFF800000> : vector<8xf32>
    %487 = vector.multi_reduction <maximumf>, %486, %cst_176 [1] : vector<8x8xf32> to vector<8xf32>
    %488 = vector.shape_cast %487 : vector<8xf32> to vector<8x1xf32>
    %489 = vector.broadcast %488 : vector<8x1xf32> to vector<8x8xf32>
    %490 = arith.subf %486, %489 : vector<8x8xf32>
    %491 = math.exp %490 : vector<8x8xf32>
    %cst_177 = arith.constant dense<0.000000e+00> : vector<8xf32>
    %492 = vector.multi_reduction <add>, %491, %cst_177 [1] : vector<8x8xf32> to vector<8xf32>
    %493 = vector.shape_cast %492 : vector<8xf32> to vector<8x1xf32>
    %494 = tpu.reciprocal %493 {approx = true} : vector<8x1xf32> -> vector<8x1xf32>
    %495 = vector.broadcast %494 : vector<8x1xf32> to vector<8x8xf32>
    %496 = arith.mulf %491, %495 : vector<8x8xf32>
    %cst_178 = arith.constant dense<0.000000e+00> : vector<8x8xf32>
    %497 = tpu.matmul %496, %485, %cst_178 {dimension_numbers = #tpu.dot_dimension_numbers<[1], [0], [0], [1], [0, 0, 1, 1], [], []>} : vector<8x8xf32>, vector<8x8xf32>, vector<8x8xf32> -> vector<8x8xf32>
    %498 = tpu.concatenate %452, %467, %482, %497 in 1 : vector<8x8xf32>, vector<8x8xf32>, vector<8x8xf32>, vector<8x8xf32> -> vector<8x32xf32>
    %c288_179 = arith.constant 288 : index
    %c0_180 = arith.constant 0 : index
    %499 = vector.load %arg1[%c288_179, %c0_180] : memref<392x128xf32, #tpu.memory_space<vmem>>, vector<32x32xf32>
    %cst_181 = arith.constant dense<0.000000e+00> : vector<8x32xf32>
    %500 = tpu.matmul %498, %499, %cst_181 {dimension_numbers = #tpu.dot_dimension_numbers<[1], [0], [0], [1], [0, 0, 1, 1], [], []>} : vector<8x32xf32>, vector<32x32xf32>, vector<8x32xf32> -> vector<8x32xf32>
    %c385_182 = arith.constant 385 : index
    %c0_183 = arith.constant 0 : index
    %501 = vector.load %arg1[%c385_182, %c0_183] : memref<392x128xf32, #tpu.memory_space<vmem>>, vector<1x32xf32>
    %502 = vector.broadcast %501 : vector<1x32xf32> to vector<8x32xf32>
    %503 = arith.addf %500, %502 : vector<8x32xf32>
    %504 = arith.addf %432, %503 : vector<8x32xf32>
    %c388_184 = arith.constant 388 : index
    %c0_185 = arith.constant 0 : index
    %505 = vector.load %arg1[%c388_184, %c0_185] : memref<392x128xf32, #tpu.memory_space<vmem>>, vector<1x32xf32>
    %c389_186 = arith.constant 389 : index
    %c0_187 = arith.constant 0 : index
    %506 = vector.load %arg1[%c389_186, %c0_187] : memref<392x128xf32, #tpu.memory_space<vmem>>, vector<1x32xf32>
    %cst_188 = arith.constant dense<0.000000e+00> : vector<8xf32>
    %507 = vector.multi_reduction <add>, %504, %cst_188 [1] : vector<8x32xf32> to vector<8xf32>
    %508 = vector.shape_cast %507 : vector<8xf32> to vector<8x1xf32>
    %cst_189 = arith.constant 3.200000e+01 : f32
    %509 = vector.broadcast %cst_189 : f32 to vector<8x1xf32>
    %510 = arith.divf %508, %509 : vector<8x1xf32>
    %511 = arith.mulf %504, %504 : vector<8x32xf32>
    %cst_190 = arith.constant dense<0.000000e+00> : vector<8xf32>
    %512 = vector.multi_reduction <add>, %511, %cst_190 [1] : vector<8x32xf32> to vector<8xf32>
    %513 = vector.shape_cast %512 : vector<8xf32> to vector<8x1xf32>
    %cst_191 = arith.constant 3.200000e+01 : f32
    %514 = vector.broadcast %cst_191 : f32 to vector<8x1xf32>
    %515 = arith.divf %513, %514 : vector<8x1xf32>
    %516 = arith.mulf %510, %510 : vector<8x1xf32>
    %517 = arith.subf %515, %516 : vector<8x1xf32>
    %518 = vector.broadcast %510 : vector<8x1xf32> to vector<8x32xf32>
    %519 = arith.subf %504, %518 : vector<8x32xf32>
    %cst_192 = arith.constant 9.99999974E-6 : f32
    %520 = vector.broadcast %cst_192 : f32 to vector<8x1xf32>
    %521 = arith.addf %517, %520 : vector<8x1xf32>
    %522 = math.rsqrt %521 : vector<8x1xf32>
    %523 = vector.broadcast %522 : vector<8x1xf32> to vector<8x32xf32>
    %524 = arith.mulf %519, %523 : vector<8x32xf32>
    %525 = vector.broadcast %505 : vector<1x32xf32> to vector<8x32xf32>
    %526 = arith.mulf %524, %525 : vector<8x32xf32>
    %527 = vector.broadcast %506 : vector<1x32xf32> to vector<8x32xf32>
    %528 = arith.addf %526, %527 : vector<8x32xf32>
    %c320_193 = arith.constant 320 : index
    %c0_194 = arith.constant 0 : index
    %529 = vector.load %arg1[%c320_193, %c0_194] : memref<392x128xf32, #tpu.memory_space<vmem>>, vector<32x128xf32>
    %cst_195 = arith.constant dense<0.000000e+00> : vector<8x128xf32>
    %530 = tpu.matmul %528, %529, %cst_195 {dimension_numbers = #tpu.dot_dimension_numbers<[1], [0], [0], [1], [0, 0, 1, 1], [], []>} : vector<8x32xf32>, vector<32x128xf32>, vector<8x128xf32> -> vector<8x128xf32>
    %c386_196 = arith.constant 386 : index
    %c0_197 = arith.constant 0 : index
    %531 = vector.load %arg1[%c386_196, %c0_197] : memref<392x128xf32, #tpu.memory_space<vmem>>, vector<1x128xf32>
    %532 = vector.broadcast %531 : vector<1x128xf32> to vector<8x128xf32>
    %533 = arith.addf %530, %532 : vector<8x128xf32>
    %cst_198 = arith.constant 0.000000e+00 : f32
    %534 = vector.broadcast %cst_198 : f32 to vector<8x128xf32>
    %535 = arith.maximumf %533, %534 : vector<8x128xf32>
    %c352_199 = arith.constant 352 : index
    %c0_200 = arith.constant 0 : index
    %536 = vector.load %arg1[%c352_199, %c0_200] : memref<392x128xf32, #tpu.memory_space<vmem>>, vector<32x128xf32>
    %cst_201 = arith.constant dense<0.000000e+00> : vector<8x32xf32>
    %537 = tpu.matmul %535, %536, %cst_201 {dimension_numbers = #tpu.dot_dimension_numbers<[1], [1], [0], [0], [0, 0, 1, 0], [], []>} : vector<8x128xf32>, vector<32x128xf32>, vector<8x32xf32> -> vector<8x32xf32>
    %c387_202 = arith.constant 387 : index
    %c0_203 = arith.constant 0 : index
    %538 = vector.load %arg1[%c387_202, %c0_203] : memref<392x128xf32, #tpu.memory_space<vmem>>, vector<1x32xf32>
    %539 = vector.broadcast %538 : vector<1x32xf32> to vector<8x32xf32>
    %540 = arith.addf %537, %539 : vector<8x32xf32>
    %541 = arith.addf %528, %540 : vector<8x32xf32>
    %c390_204 = arith.constant 390 : index
    %c0_205 = arith.constant 0 : index
    %542 = vector.load %arg1[%c390_204, %c0_205] : memref<392x128xf32, #tpu.memory_space<vmem>>, vector<1x32xf32>
    %c391_206 = arith.constant 391 : index
    %c0_207 = arith.constant 0 : index
    %543 = vector.load %arg1[%c391_206, %c0_207] : memref<392x128xf32, #tpu.memory_space<vmem>>, vector<1x32xf32>
    %cst_208 = arith.constant dense<0.000000e+00> : vector<8xf32>
    %544 = vector.multi_reduction <add>, %541, %cst_208 [1] : vector<8x32xf32> to vector<8xf32>
    %545 = vector.shape_cast %544 : vector<8xf32> to vector<8x1xf32>
    %cst_209 = arith.constant 3.200000e+01 : f32
    %546 = vector.broadcast %cst_209 : f32 to vector<8x1xf32>
    %547 = arith.divf %545, %546 : vector<8x1xf32>
    %548 = arith.mulf %541, %541 : vector<8x32xf32>
    %cst_210 = arith.constant dense<0.000000e+00> : vector<8xf32>
    %549 = vector.multi_reduction <add>, %548, %cst_210 [1] : vector<8x32xf32> to vector<8xf32>
    %550 = vector.shape_cast %549 : vector<8xf32> to vector<8x1xf32>
    %cst_211 = arith.constant 3.200000e+01 : f32
    %551 = vector.broadcast %cst_211 : f32 to vector<8x1xf32>
    %552 = arith.divf %550, %551 : vector<8x1xf32>
    %553 = arith.mulf %547, %547 : vector<8x1xf32>
    %554 = arith.subf %552, %553 : vector<8x1xf32>
    %555 = vector.broadcast %547 : vector<8x1xf32> to vector<8x32xf32>
    %556 = arith.subf %541, %555 : vector<8x32xf32>
    %cst_212 = arith.constant 9.99999974E-6 : f32
    %557 = vector.broadcast %cst_212 : f32 to vector<8x1xf32>
    %558 = arith.addf %554, %557 : vector<8x1xf32>
    %559 = math.rsqrt %558 : vector<8x1xf32>
    %560 = vector.broadcast %559 : vector<8x1xf32> to vector<8x32xf32>
    %561 = arith.mulf %556, %560 : vector<8x32xf32>
    %562 = vector.broadcast %542 : vector<1x32xf32> to vector<8x32xf32>
    %563 = arith.mulf %561, %562 : vector<8x32xf32>
    %564 = vector.broadcast %543 : vector<1x32xf32> to vector<8x32xf32>
    %565 = arith.addf %563, %564 : vector<8x32xf32>
    %566 = arith.addf %565, %297 : vector<8x32xf32>
    %cst_213 = arith.constant dense<0.000000e+00> : vector<8x64xf32>
    %567 = tpu.matmul %566, %1, %cst_213 {dimension_numbers = #tpu.dot_dimension_numbers<[1], [0], [0], [1], [0, 0, 1, 1], [], []>} : vector<8x32xf32>, vector<32x64xf32>, vector<8x64xf32> -> vector<8x64xf32>
    %568 = vector.broadcast %2 : vector<1x64xf32> to vector<8x64xf32>
    %569 = arith.addf %567, %568 : vector<8x64xf32>
    %cst_214 = arith.constant 0.000000e+00 : f32
    %570 = vector.broadcast %cst_214 : f32 to vector<8x64xf32>
    %571 = arith.maximumf %569, %570 : vector<8x64xf32>
    %572 = vector.extract_strided_slice %3 {offsets = [0, 8], sizes = [64, 8], strides = [1, 1]} : vector<64x24xf32> to vector<64x8xf32>
    %cst_215 = arith.constant dense<0.000000e+00> : vector<8x8xf32>
    %573 = tpu.matmul %571, %572, %cst_215 {dimension_numbers = #tpu.dot_dimension_numbers<[1], [0], [0], [1], [0, 0, 1, 1], [], []>} : vector<8x64xf32>, vector<64x8xf32>, vector<8x8xf32> -> vector<8x8xf32>
    %574 = vector.extract_strided_slice %4 {offsets = [0, 8], sizes = [1, 8], strides = [1, 1]} : vector<1x24xf32> to vector<1x8xf32>
    %575 = vector.broadcast %574 : vector<1x8xf32> to vector<8x8xf32>
    %576 = arith.addf %573, %575 : vector<8x8xf32>
    %c8_216 = arith.constant 8 : index
    %c96 = arith.constant 96 : index
    %577 = vector.load %arg1[%c8_216, %c96] : memref<392x128xf32, #tpu.memory_space<vmem>>, vector<6x32xf32>
    %cst_217 = arith.constant dense<0.000000e+00> : vector<8x32xf32>
    %578 = tpu.matmul %5, %577, %cst_217 {dimension_numbers = #tpu.dot_dimension_numbers<[1], [0], [0], [1], [0, 0, 1, 1], [], []>} : vector<8x6xf32>, vector<6x32xf32>, vector<8x32xf32> -> vector<8x32xf32>
    %579 = arith.addf %289, %576 : vector<8x8xf32>
    %c16 = arith.constant 16 : index
    %c0_218 = arith.constant 0 : index
    %580 = vector.load %arg1[%c16, %c0_218] : memref<392x128xf32, #tpu.memory_space<vmem>>, vector<8x32xf32>
    %cst_219 = arith.constant dense<0.000000e+00> : vector<8x32xf32>
    %581 = tpu.matmul %579, %580, %cst_219 {dimension_numbers = #tpu.dot_dimension_numbers<[1], [0], [0], [1], [0, 0, 1, 1], [], []>} : vector<8x8xf32>, vector<8x32xf32>, vector<8x32xf32> -> vector<8x32xf32>
    %582 = arith.addf %578, %581 : vector<8x32xf32>
    %c2 = arith.constant 2 : index
    %c0_220 = arith.constant 0 : index
    %583 = vector.load %arg1[%c2, %c0_220] : memref<392x128xf32, #tpu.memory_space<vmem>>, vector<1x32xf32>
    %584 = vector.broadcast %583 : vector<1x32xf32> to vector<8x32xf32>
    %585 = arith.addf %582, %584 : vector<8x32xf32>
    %586 = vector.broadcast %0 : vector<1x32xf32> to vector<8x32xf32>
    %587 = arith.addf %585, %586 : vector<8x32xf32>
    %c120_221 = arith.constant 120 : index
    %c0_222 = arith.constant 0 : index
    %588 = vector.load %arg1[%c120_221, %c0_222] : memref<392x128xf32, #tpu.memory_space<vmem>>, vector<32x96xf32>
    %cst_223 = arith.constant dense<0.000000e+00> : vector<8x96xf32>
    %589 = tpu.matmul %587, %588, %cst_223 {dimension_numbers = #tpu.dot_dimension_numbers<[1], [0], [0], [1], [0, 0, 1, 1], [], []>} : vector<8x32xf32>, vector<32x96xf32>, vector<8x96xf32> -> vector<8x96xf32>
    %c248_224 = arith.constant 248 : index
    %c0_225 = arith.constant 0 : index
    %590 = vector.load %arg1[%c248_224, %c0_225] : memref<392x128xf32, #tpu.memory_space<vmem>>, vector<1x96xf32>
    %591 = vector.broadcast %590 : vector<1x96xf32> to vector<8x96xf32>
    %592 = arith.addf %589, %591 : vector<8x96xf32>
    %593 = vector.extract_strided_slice %592 {offsets = [0, 0], sizes = [8, 8], strides = [1, 1]} : vector<8x96xf32> to vector<8x8xf32>
    %594 = vector.extract_strided_slice %592 {offsets = [0, 32], sizes = [8, 8], strides = [1, 1]} : vector<8x96xf32> to vector<8x8xf32>
    %595 = vector.extract_strided_slice %592 {offsets = [0, 64], sizes = [8, 8], strides = [1, 1]} : vector<8x96xf32> to vector<8x8xf32>
    %cst_226 = arith.constant dense<0.000000e+00> : vector<8x8xf32>
    %596 = tpu.matmul %593, %594, %cst_226 {dimension_numbers = #tpu.dot_dimension_numbers<[1], [1], [0], [0], [0, 0, 1, 0], [], []>} : vector<8x8xf32>, vector<8x8xf32>, vector<8x8xf32> -> vector<8x8xf32>
    %cst_227 = arith.constant dense<0xFF800000> : vector<8xf32>
    %597 = vector.multi_reduction <maximumf>, %596, %cst_227 [1] : vector<8x8xf32> to vector<8xf32>
    %598 = vector.shape_cast %597 : vector<8xf32> to vector<8x1xf32>
    %599 = vector.broadcast %598 : vector<8x1xf32> to vector<8x8xf32>
    %600 = arith.subf %596, %599 : vector<8x8xf32>
    %601 = math.exp %600 : vector<8x8xf32>
    %cst_228 = arith.constant dense<0.000000e+00> : vector<8xf32>
    %602 = vector.multi_reduction <add>, %601, %cst_228 [1] : vector<8x8xf32> to vector<8xf32>
    %603 = vector.shape_cast %602 : vector<8xf32> to vector<8x1xf32>
    %604 = tpu.reciprocal %603 {approx = true} : vector<8x1xf32> -> vector<8x1xf32>
    %605 = vector.broadcast %604 : vector<8x1xf32> to vector<8x8xf32>
    %606 = arith.mulf %601, %605 : vector<8x8xf32>
    %cst_229 = arith.constant dense<0.000000e+00> : vector<8x8xf32>
    %607 = tpu.matmul %606, %595, %cst_229 {dimension_numbers = #tpu.dot_dimension_numbers<[1], [0], [0], [1], [0, 0, 1, 1], [], []>} : vector<8x8xf32>, vector<8x8xf32>, vector<8x8xf32> -> vector<8x8xf32>
    %608 = vector.extract_strided_slice %592 {offsets = [0, 8], sizes = [8, 8], strides = [1, 1]} : vector<8x96xf32> to vector<8x8xf32>
    %609 = vector.extract_strided_slice %592 {offsets = [0, 40], sizes = [8, 8], strides = [1, 1]} : vector<8x96xf32> to vector<8x8xf32>
    %610 = vector.extract_strided_slice %592 {offsets = [0, 72], sizes = [8, 8], strides = [1, 1]} : vector<8x96xf32> to vector<8x8xf32>
    %cst_230 = arith.constant dense<0.000000e+00> : vector<8x8xf32>
    %611 = tpu.matmul %608, %609, %cst_230 {dimension_numbers = #tpu.dot_dimension_numbers<[1], [1], [0], [0], [0, 0, 1, 0], [], []>} : vector<8x8xf32>, vector<8x8xf32>, vector<8x8xf32> -> vector<8x8xf32>
    %cst_231 = arith.constant dense<0xFF800000> : vector<8xf32>
    %612 = vector.multi_reduction <maximumf>, %611, %cst_231 [1] : vector<8x8xf32> to vector<8xf32>
    %613 = vector.shape_cast %612 : vector<8xf32> to vector<8x1xf32>
    %614 = vector.broadcast %613 : vector<8x1xf32> to vector<8x8xf32>
    %615 = arith.subf %611, %614 : vector<8x8xf32>
    %616 = math.exp %615 : vector<8x8xf32>
    %cst_232 = arith.constant dense<0.000000e+00> : vector<8xf32>
    %617 = vector.multi_reduction <add>, %616, %cst_232 [1] : vector<8x8xf32> to vector<8xf32>
    %618 = vector.shape_cast %617 : vector<8xf32> to vector<8x1xf32>
    %619 = tpu.reciprocal %618 {approx = true} : vector<8x1xf32> -> vector<8x1xf32>
    %620 = vector.broadcast %619 : vector<8x1xf32> to vector<8x8xf32>
    %621 = arith.mulf %616, %620 : vector<8x8xf32>
    %cst_233 = arith.constant dense<0.000000e+00> : vector<8x8xf32>
    %622 = tpu.matmul %621, %610, %cst_233 {dimension_numbers = #tpu.dot_dimension_numbers<[1], [0], [0], [1], [0, 0, 1, 1], [], []>} : vector<8x8xf32>, vector<8x8xf32>, vector<8x8xf32> -> vector<8x8xf32>
    %623 = vector.extract_strided_slice %592 {offsets = [0, 16], sizes = [8, 8], strides = [1, 1]} : vector<8x96xf32> to vector<8x8xf32>
    %624 = vector.extract_strided_slice %592 {offsets = [0, 48], sizes = [8, 8], strides = [1, 1]} : vector<8x96xf32> to vector<8x8xf32>
    %625 = vector.extract_strided_slice %592 {offsets = [0, 80], sizes = [8, 8], strides = [1, 1]} : vector<8x96xf32> to vector<8x8xf32>
    %cst_234 = arith.constant dense<0.000000e+00> : vector<8x8xf32>
    %626 = tpu.matmul %623, %624, %cst_234 {dimension_numbers = #tpu.dot_dimension_numbers<[1], [1], [0], [0], [0, 0, 1, 0], [], []>} : vector<8x8xf32>, vector<8x8xf32>, vector<8x8xf32> -> vector<8x8xf32>
    %cst_235 = arith.constant dense<0xFF800000> : vector<8xf32>
    %627 = vector.multi_reduction <maximumf>, %626, %cst_235 [1] : vector<8x8xf32> to vector<8xf32>
    %628 = vector.shape_cast %627 : vector<8xf32> to vector<8x1xf32>
    %629 = vector.broadcast %628 : vector<8x1xf32> to vector<8x8xf32>
    %630 = arith.subf %626, %629 : vector<8x8xf32>
    %631 = math.exp %630 : vector<8x8xf32>
    %cst_236 = arith.constant dense<0.000000e+00> : vector<8xf32>
    %632 = vector.multi_reduction <add>, %631, %cst_236 [1] : vector<8x8xf32> to vector<8xf32>
    %633 = vector.shape_cast %632 : vector<8xf32> to vector<8x1xf32>
    %634 = tpu.reciprocal %633 {approx = true} : vector<8x1xf32> -> vector<8x1xf32>
    %635 = vector.broadcast %634 : vector<8x1xf32> to vector<8x8xf32>
    %636 = arith.mulf %631, %635 : vector<8x8xf32>
    %cst_237 = arith.constant dense<0.000000e+00> : vector<8x8xf32>
    %637 = tpu.matmul %636, %625, %cst_237 {dimension_numbers = #tpu.dot_dimension_numbers<[1], [0], [0], [1], [0, 0, 1, 1], [], []>} : vector<8x8xf32>, vector<8x8xf32>, vector<8x8xf32> -> vector<8x8xf32>
    %638 = vector.extract_strided_slice %592 {offsets = [0, 24], sizes = [8, 8], strides = [1, 1]} : vector<8x96xf32> to vector<8x8xf32>
    %639 = vector.extract_strided_slice %592 {offsets = [0, 56], sizes = [8, 8], strides = [1, 1]} : vector<8x96xf32> to vector<8x8xf32>
    %640 = vector.extract_strided_slice %592 {offsets = [0, 88], sizes = [8, 8], strides = [1, 1]} : vector<8x96xf32> to vector<8x8xf32>
    %cst_238 = arith.constant dense<0.000000e+00> : vector<8x8xf32>
    %641 = tpu.matmul %638, %639, %cst_238 {dimension_numbers = #tpu.dot_dimension_numbers<[1], [1], [0], [0], [0, 0, 1, 0], [], []>} : vector<8x8xf32>, vector<8x8xf32>, vector<8x8xf32> -> vector<8x8xf32>
    %cst_239 = arith.constant dense<0xFF800000> : vector<8xf32>
    %642 = vector.multi_reduction <maximumf>, %641, %cst_239 [1] : vector<8x8xf32> to vector<8xf32>
    %643 = vector.shape_cast %642 : vector<8xf32> to vector<8x1xf32>
    %644 = vector.broadcast %643 : vector<8x1xf32> to vector<8x8xf32>
    %645 = arith.subf %641, %644 : vector<8x8xf32>
    %646 = math.exp %645 : vector<8x8xf32>
    %cst_240 = arith.constant dense<0.000000e+00> : vector<8xf32>
    %647 = vector.multi_reduction <add>, %646, %cst_240 [1] : vector<8x8xf32> to vector<8xf32>
    %648 = vector.shape_cast %647 : vector<8xf32> to vector<8x1xf32>
    %649 = tpu.reciprocal %648 {approx = true} : vector<8x1xf32> -> vector<8x1xf32>
    %650 = vector.broadcast %649 : vector<8x1xf32> to vector<8x8xf32>
    %651 = arith.mulf %646, %650 : vector<8x8xf32>
    %cst_241 = arith.constant dense<0.000000e+00> : vector<8x8xf32>
    %652 = tpu.matmul %651, %640, %cst_241 {dimension_numbers = #tpu.dot_dimension_numbers<[1], [0], [0], [1], [0, 0, 1, 1], [], []>} : vector<8x8xf32>, vector<8x8xf32>, vector<8x8xf32> -> vector<8x8xf32>
    %653 = tpu.concatenate %607, %622, %637, %652 in 1 : vector<8x8xf32>, vector<8x8xf32>, vector<8x8xf32>, vector<8x8xf32> -> vector<8x32xf32>
    %c152_242 = arith.constant 152 : index
    %c0_243 = arith.constant 0 : index
    %654 = vector.load %arg1[%c152_242, %c0_243] : memref<392x128xf32, #tpu.memory_space<vmem>>, vector<32x32xf32>
    %cst_244 = arith.constant dense<0.000000e+00> : vector<8x32xf32>
    %655 = tpu.matmul %653, %654, %cst_244 {dimension_numbers = #tpu.dot_dimension_numbers<[1], [0], [0], [1], [0, 0, 1, 1], [], []>} : vector<8x32xf32>, vector<32x32xf32>, vector<8x32xf32> -> vector<8x32xf32>
    %c249_245 = arith.constant 249 : index
    %c0_246 = arith.constant 0 : index
    %656 = vector.load %arg1[%c249_245, %c0_246] : memref<392x128xf32, #tpu.memory_space<vmem>>, vector<1x32xf32>
    %657 = vector.broadcast %656 : vector<1x32xf32> to vector<8x32xf32>
    %658 = arith.addf %655, %657 : vector<8x32xf32>
    %659 = arith.addf %587, %658 : vector<8x32xf32>
    %c252_247 = arith.constant 252 : index
    %c0_248 = arith.constant 0 : index
    %660 = vector.load %arg1[%c252_247, %c0_248] : memref<392x128xf32, #tpu.memory_space<vmem>>, vector<1x32xf32>
    %c253_249 = arith.constant 253 : index
    %c0_250 = arith.constant 0 : index
    %661 = vector.load %arg1[%c253_249, %c0_250] : memref<392x128xf32, #tpu.memory_space<vmem>>, vector<1x32xf32>
    %cst_251 = arith.constant dense<0.000000e+00> : vector<8xf32>
    %662 = vector.multi_reduction <add>, %659, %cst_251 [1] : vector<8x32xf32> to vector<8xf32>
    %663 = vector.shape_cast %662 : vector<8xf32> to vector<8x1xf32>
    %cst_252 = arith.constant 3.200000e+01 : f32
    %664 = vector.broadcast %cst_252 : f32 to vector<8x1xf32>
    %665 = arith.divf %663, %664 : vector<8x1xf32>
    %666 = arith.mulf %659, %659 : vector<8x32xf32>
    %cst_253 = arith.constant dense<0.000000e+00> : vector<8xf32>
    %667 = vector.multi_reduction <add>, %666, %cst_253 [1] : vector<8x32xf32> to vector<8xf32>
    %668 = vector.shape_cast %667 : vector<8xf32> to vector<8x1xf32>
    %cst_254 = arith.constant 3.200000e+01 : f32
    %669 = vector.broadcast %cst_254 : f32 to vector<8x1xf32>
    %670 = arith.divf %668, %669 : vector<8x1xf32>
    %671 = arith.mulf %665, %665 : vector<8x1xf32>
    %672 = arith.subf %670, %671 : vector<8x1xf32>
    %673 = vector.broadcast %665 : vector<8x1xf32> to vector<8x32xf32>
    %674 = arith.subf %659, %673 : vector<8x32xf32>
    %cst_255 = arith.constant 9.99999974E-6 : f32
    %675 = vector.broadcast %cst_255 : f32 to vector<8x1xf32>
    %676 = arith.addf %672, %675 : vector<8x1xf32>
    %677 = math.rsqrt %676 : vector<8x1xf32>
    %678 = vector.broadcast %677 : vector<8x1xf32> to vector<8x32xf32>
    %679 = arith.mulf %674, %678 : vector<8x32xf32>
    %680 = vector.broadcast %660 : vector<1x32xf32> to vector<8x32xf32>
    %681 = arith.mulf %679, %680 : vector<8x32xf32>
    %682 = vector.broadcast %661 : vector<1x32xf32> to vector<8x32xf32>
    %683 = arith.addf %681, %682 : vector<8x32xf32>
    %c184_256 = arith.constant 184 : index
    %c0_257 = arith.constant 0 : index
    %684 = vector.load %arg1[%c184_256, %c0_257] : memref<392x128xf32, #tpu.memory_space<vmem>>, vector<32x128xf32>
    %cst_258 = arith.constant dense<0.000000e+00> : vector<8x128xf32>
    %685 = tpu.matmul %683, %684, %cst_258 {dimension_numbers = #tpu.dot_dimension_numbers<[1], [0], [0], [1], [0, 0, 1, 1], [], []>} : vector<8x32xf32>, vector<32x128xf32>, vector<8x128xf32> -> vector<8x128xf32>
    %c250_259 = arith.constant 250 : index
    %c0_260 = arith.constant 0 : index
    %686 = vector.load %arg1[%c250_259, %c0_260] : memref<392x128xf32, #tpu.memory_space<vmem>>, vector<1x128xf32>
    %687 = vector.broadcast %686 : vector<1x128xf32> to vector<8x128xf32>
    %688 = arith.addf %685, %687 : vector<8x128xf32>
    %cst_261 = arith.constant 0.000000e+00 : f32
    %689 = vector.broadcast %cst_261 : f32 to vector<8x128xf32>
    %690 = arith.maximumf %688, %689 : vector<8x128xf32>
    %c216_262 = arith.constant 216 : index
    %c0_263 = arith.constant 0 : index
    %691 = vector.load %arg1[%c216_262, %c0_263] : memref<392x128xf32, #tpu.memory_space<vmem>>, vector<32x128xf32>
    %cst_264 = arith.constant dense<0.000000e+00> : vector<8x32xf32>
    %692 = tpu.matmul %690, %691, %cst_264 {dimension_numbers = #tpu.dot_dimension_numbers<[1], [1], [0], [0], [0, 0, 1, 0], [], []>} : vector<8x128xf32>, vector<32x128xf32>, vector<8x32xf32> -> vector<8x32xf32>
    %c251_265 = arith.constant 251 : index
    %c0_266 = arith.constant 0 : index
    %693 = vector.load %arg1[%c251_265, %c0_266] : memref<392x128xf32, #tpu.memory_space<vmem>>, vector<1x32xf32>
    %694 = vector.broadcast %693 : vector<1x32xf32> to vector<8x32xf32>
    %695 = arith.addf %692, %694 : vector<8x32xf32>
    %696 = arith.addf %683, %695 : vector<8x32xf32>
    %c254_267 = arith.constant 254 : index
    %c0_268 = arith.constant 0 : index
    %697 = vector.load %arg1[%c254_267, %c0_268] : memref<392x128xf32, #tpu.memory_space<vmem>>, vector<1x32xf32>
    %c255_269 = arith.constant 255 : index
    %c0_270 = arith.constant 0 : index
    %698 = vector.load %arg1[%c255_269, %c0_270] : memref<392x128xf32, #tpu.memory_space<vmem>>, vector<1x32xf32>
    %cst_271 = arith.constant dense<0.000000e+00> : vector<8xf32>
    %699 = vector.multi_reduction <add>, %696, %cst_271 [1] : vector<8x32xf32> to vector<8xf32>
    %700 = vector.shape_cast %699 : vector<8xf32> to vector<8x1xf32>
    %cst_272 = arith.constant 3.200000e+01 : f32
    %701 = vector.broadcast %cst_272 : f32 to vector<8x1xf32>
    %702 = arith.divf %700, %701 : vector<8x1xf32>
    %703 = arith.mulf %696, %696 : vector<8x32xf32>
    %cst_273 = arith.constant dense<0.000000e+00> : vector<8xf32>
    %704 = vector.multi_reduction <add>, %703, %cst_273 [1] : vector<8x32xf32> to vector<8xf32>
    %705 = vector.shape_cast %704 : vector<8xf32> to vector<8x1xf32>
    %cst_274 = arith.constant 3.200000e+01 : f32
    %706 = vector.broadcast %cst_274 : f32 to vector<8x1xf32>
    %707 = arith.divf %705, %706 : vector<8x1xf32>
    %708 = arith.mulf %702, %702 : vector<8x1xf32>
    %709 = arith.subf %707, %708 : vector<8x1xf32>
    %710 = vector.broadcast %702 : vector<8x1xf32> to vector<8x32xf32>
    %711 = arith.subf %696, %710 : vector<8x32xf32>
    %cst_275 = arith.constant 9.99999974E-6 : f32
    %712 = vector.broadcast %cst_275 : f32 to vector<8x1xf32>
    %713 = arith.addf %709, %712 : vector<8x1xf32>
    %714 = math.rsqrt %713 : vector<8x1xf32>
    %715 = vector.broadcast %714 : vector<8x1xf32> to vector<8x32xf32>
    %716 = arith.mulf %711, %715 : vector<8x32xf32>
    %717 = vector.broadcast %697 : vector<1x32xf32> to vector<8x32xf32>
    %718 = arith.mulf %716, %717 : vector<8x32xf32>
    %719 = vector.broadcast %698 : vector<1x32xf32> to vector<8x32xf32>
    %720 = arith.addf %718, %719 : vector<8x32xf32>
    %c256_276 = arith.constant 256 : index
    %c0_277 = arith.constant 0 : index
    %721 = vector.load %arg1[%c256_276, %c0_277] : memref<392x128xf32, #tpu.memory_space<vmem>>, vector<32x96xf32>
    %cst_278 = arith.constant dense<0.000000e+00> : vector<8x96xf32>
    %722 = tpu.matmul %720, %721, %cst_278 {dimension_numbers = #tpu.dot_dimension_numbers<[1], [0], [0], [1], [0, 0, 1, 1], [], []>} : vector<8x32xf32>, vector<32x96xf32>, vector<8x96xf32> -> vector<8x96xf32>
    %c384_279 = arith.constant 384 : index
    %c0_280 = arith.constant 0 : index
    %723 = vector.load %arg1[%c384_279, %c0_280] : memref<392x128xf32, #tpu.memory_space<vmem>>, vector<1x96xf32>
    %724 = vector.broadcast %723 : vector<1x96xf32> to vector<8x96xf32>
    %725 = arith.addf %722, %724 : vector<8x96xf32>
    %726 = vector.extract_strided_slice %725 {offsets = [0, 0], sizes = [8, 8], strides = [1, 1]} : vector<8x96xf32> to vector<8x8xf32>
    %727 = vector.extract_strided_slice %725 {offsets = [0, 32], sizes = [8, 8], strides = [1, 1]} : vector<8x96xf32> to vector<8x8xf32>
    %728 = vector.extract_strided_slice %725 {offsets = [0, 64], sizes = [8, 8], strides = [1, 1]} : vector<8x96xf32> to vector<8x8xf32>
    %cst_281 = arith.constant dense<0.000000e+00> : vector<8x8xf32>
    %729 = tpu.matmul %726, %727, %cst_281 {dimension_numbers = #tpu.dot_dimension_numbers<[1], [1], [0], [0], [0, 0, 1, 0], [], []>} : vector<8x8xf32>, vector<8x8xf32>, vector<8x8xf32> -> vector<8x8xf32>
    %cst_282 = arith.constant dense<0xFF800000> : vector<8xf32>
    %730 = vector.multi_reduction <maximumf>, %729, %cst_282 [1] : vector<8x8xf32> to vector<8xf32>
    %731 = vector.shape_cast %730 : vector<8xf32> to vector<8x1xf32>
    %732 = vector.broadcast %731 : vector<8x1xf32> to vector<8x8xf32>
    %733 = arith.subf %729, %732 : vector<8x8xf32>
    %734 = math.exp %733 : vector<8x8xf32>
    %cst_283 = arith.constant dense<0.000000e+00> : vector<8xf32>
    %735 = vector.multi_reduction <add>, %734, %cst_283 [1] : vector<8x8xf32> to vector<8xf32>
    %736 = vector.shape_cast %735 : vector<8xf32> to vector<8x1xf32>
    %737 = tpu.reciprocal %736 {approx = true} : vector<8x1xf32> -> vector<8x1xf32>
    %738 = vector.broadcast %737 : vector<8x1xf32> to vector<8x8xf32>
    %739 = arith.mulf %734, %738 : vector<8x8xf32>
    %cst_284 = arith.constant dense<0.000000e+00> : vector<8x8xf32>
    %740 = tpu.matmul %739, %728, %cst_284 {dimension_numbers = #tpu.dot_dimension_numbers<[1], [0], [0], [1], [0, 0, 1, 1], [], []>} : vector<8x8xf32>, vector<8x8xf32>, vector<8x8xf32> -> vector<8x8xf32>
    %741 = vector.extract_strided_slice %725 {offsets = [0, 8], sizes = [8, 8], strides = [1, 1]} : vector<8x96xf32> to vector<8x8xf32>
    %742 = vector.extract_strided_slice %725 {offsets = [0, 40], sizes = [8, 8], strides = [1, 1]} : vector<8x96xf32> to vector<8x8xf32>
    %743 = vector.extract_strided_slice %725 {offsets = [0, 72], sizes = [8, 8], strides = [1, 1]} : vector<8x96xf32> to vector<8x8xf32>
    %cst_285 = arith.constant dense<0.000000e+00> : vector<8x8xf32>
    %744 = tpu.matmul %741, %742, %cst_285 {dimension_numbers = #tpu.dot_dimension_numbers<[1], [1], [0], [0], [0, 0, 1, 0], [], []>} : vector<8x8xf32>, vector<8x8xf32>, vector<8x8xf32> -> vector<8x8xf32>
    %cst_286 = arith.constant dense<0xFF800000> : vector<8xf32>
    %745 = vector.multi_reduction <maximumf>, %744, %cst_286 [1] : vector<8x8xf32> to vector<8xf32>
    %746 = vector.shape_cast %745 : vector<8xf32> to vector<8x1xf32>
    %747 = vector.broadcast %746 : vector<8x1xf32> to vector<8x8xf32>
    %748 = arith.subf %744, %747 : vector<8x8xf32>
    %749 = math.exp %748 : vector<8x8xf32>
    %cst_287 = arith.constant dense<0.000000e+00> : vector<8xf32>
    %750 = vector.multi_reduction <add>, %749, %cst_287 [1] : vector<8x8xf32> to vector<8xf32>
    %751 = vector.shape_cast %750 : vector<8xf32> to vector<8x1xf32>
    %752 = tpu.reciprocal %751 {approx = true} : vector<8x1xf32> -> vector<8x1xf32>
    %753 = vector.broadcast %752 : vector<8x1xf32> to vector<8x8xf32>
    %754 = arith.mulf %749, %753 : vector<8x8xf32>
    %cst_288 = arith.constant dense<0.000000e+00> : vector<8x8xf32>
    %755 = tpu.matmul %754, %743, %cst_288 {dimension_numbers = #tpu.dot_dimension_numbers<[1], [0], [0], [1], [0, 0, 1, 1], [], []>} : vector<8x8xf32>, vector<8x8xf32>, vector<8x8xf32> -> vector<8x8xf32>
    %756 = vector.extract_strided_slice %725 {offsets = [0, 16], sizes = [8, 8], strides = [1, 1]} : vector<8x96xf32> to vector<8x8xf32>
    %757 = vector.extract_strided_slice %725 {offsets = [0, 48], sizes = [8, 8], strides = [1, 1]} : vector<8x96xf32> to vector<8x8xf32>
    %758 = vector.extract_strided_slice %725 {offsets = [0, 80], sizes = [8, 8], strides = [1, 1]} : vector<8x96xf32> to vector<8x8xf32>
    %cst_289 = arith.constant dense<0.000000e+00> : vector<8x8xf32>
    %759 = tpu.matmul %756, %757, %cst_289 {dimension_numbers = #tpu.dot_dimension_numbers<[1], [1], [0], [0], [0, 0, 1, 0], [], []>} : vector<8x8xf32>, vector<8x8xf32>, vector<8x8xf32> -> vector<8x8xf32>
    %cst_290 = arith.constant dense<0xFF800000> : vector<8xf32>
    %760 = vector.multi_reduction <maximumf>, %759, %cst_290 [1] : vector<8x8xf32> to vector<8xf32>
    %761 = vector.shape_cast %760 : vector<8xf32> to vector<8x1xf32>
    %762 = vector.broadcast %761 : vector<8x1xf32> to vector<8x8xf32>
    %763 = arith.subf %759, %762 : vector<8x8xf32>
    %764 = math.exp %763 : vector<8x8xf32>
    %cst_291 = arith.constant dense<0.000000e+00> : vector<8xf32>
    %765 = vector.multi_reduction <add>, %764, %cst_291 [1] : vector<8x8xf32> to vector<8xf32>
    %766 = vector.shape_cast %765 : vector<8xf32> to vector<8x1xf32>
    %767 = tpu.reciprocal %766 {approx = true} : vector<8x1xf32> -> vector<8x1xf32>
    %768 = vector.broadcast %767 : vector<8x1xf32> to vector<8x8xf32>
    %769 = arith.mulf %764, %768 : vector<8x8xf32>
    %cst_292 = arith.constant dense<0.000000e+00> : vector<8x8xf32>
    %770 = tpu.matmul %769, %758, %cst_292 {dimension_numbers = #tpu.dot_dimension_numbers<[1], [0], [0], [1], [0, 0, 1, 1], [], []>} : vector<8x8xf32>, vector<8x8xf32>, vector<8x8xf32> -> vector<8x8xf32>
    %771 = vector.extract_strided_slice %725 {offsets = [0, 24], sizes = [8, 8], strides = [1, 1]} : vector<8x96xf32> to vector<8x8xf32>
    %772 = vector.extract_strided_slice %725 {offsets = [0, 56], sizes = [8, 8], strides = [1, 1]} : vector<8x96xf32> to vector<8x8xf32>
    %773 = vector.extract_strided_slice %725 {offsets = [0, 88], sizes = [8, 8], strides = [1, 1]} : vector<8x96xf32> to vector<8x8xf32>
    %cst_293 = arith.constant dense<0.000000e+00> : vector<8x8xf32>
    %774 = tpu.matmul %771, %772, %cst_293 {dimension_numbers = #tpu.dot_dimension_numbers<[1], [1], [0], [0], [0, 0, 1, 0], [], []>} : vector<8x8xf32>, vector<8x8xf32>, vector<8x8xf32> -> vector<8x8xf32>
    %cst_294 = arith.constant dense<0xFF800000> : vector<8xf32>
    %775 = vector.multi_reduction <maximumf>, %774, %cst_294 [1] : vector<8x8xf32> to vector<8xf32>
    %776 = vector.shape_cast %775 : vector<8xf32> to vector<8x1xf32>
    %777 = vector.broadcast %776 : vector<8x1xf32> to vector<8x8xf32>
    %778 = arith.subf %774, %777 : vector<8x8xf32>
    %779 = math.exp %778 : vector<8x8xf32>
    %cst_295 = arith.constant dense<0.000000e+00> : vector<8xf32>
    %780 = vector.multi_reduction <add>, %779, %cst_295 [1] : vector<8x8xf32> to vector<8xf32>
    %781 = vector.shape_cast %780 : vector<8xf32> to vector<8x1xf32>
    %782 = tpu.reciprocal %781 {approx = true} : vector<8x1xf32> -> vector<8x1xf32>
    %783 = vector.broadcast %782 : vector<8x1xf32> to vector<8x8xf32>
    %784 = arith.mulf %779, %783 : vector<8x8xf32>
    %cst_296 = arith.constant dense<0.000000e+00> : vector<8x8xf32>
    %785 = tpu.matmul %784, %773, %cst_296 {dimension_numbers = #tpu.dot_dimension_numbers<[1], [0], [0], [1], [0, 0, 1, 1], [], []>} : vector<8x8xf32>, vector<8x8xf32>, vector<8x8xf32> -> vector<8x8xf32>
    %786 = tpu.concatenate %740, %755, %770, %785 in 1 : vector<8x8xf32>, vector<8x8xf32>, vector<8x8xf32>, vector<8x8xf32> -> vector<8x32xf32>
    %c288_297 = arith.constant 288 : index
    %c0_298 = arith.constant 0 : index
    %787 = vector.load %arg1[%c288_297, %c0_298] : memref<392x128xf32, #tpu.memory_space<vmem>>, vector<32x32xf32>
    %cst_299 = arith.constant dense<0.000000e+00> : vector<8x32xf32>
    %788 = tpu.matmul %786, %787, %cst_299 {dimension_numbers = #tpu.dot_dimension_numbers<[1], [0], [0], [1], [0, 0, 1, 1], [], []>} : vector<8x32xf32>, vector<32x32xf32>, vector<8x32xf32> -> vector<8x32xf32>
    %c385_300 = arith.constant 385 : index
    %c0_301 = arith.constant 0 : index
    %789 = vector.load %arg1[%c385_300, %c0_301] : memref<392x128xf32, #tpu.memory_space<vmem>>, vector<1x32xf32>
    %790 = vector.broadcast %789 : vector<1x32xf32> to vector<8x32xf32>
    %791 = arith.addf %788, %790 : vector<8x32xf32>
    %792 = arith.addf %720, %791 : vector<8x32xf32>
    %c388_302 = arith.constant 388 : index
    %c0_303 = arith.constant 0 : index
    %793 = vector.load %arg1[%c388_302, %c0_303] : memref<392x128xf32, #tpu.memory_space<vmem>>, vector<1x32xf32>
    %c389_304 = arith.constant 389 : index
    %c0_305 = arith.constant 0 : index
    %794 = vector.load %arg1[%c389_304, %c0_305] : memref<392x128xf32, #tpu.memory_space<vmem>>, vector<1x32xf32>
    %cst_306 = arith.constant dense<0.000000e+00> : vector<8xf32>
    %795 = vector.multi_reduction <add>, %792, %cst_306 [1] : vector<8x32xf32> to vector<8xf32>
    %796 = vector.shape_cast %795 : vector<8xf32> to vector<8x1xf32>
    %cst_307 = arith.constant 3.200000e+01 : f32
    %797 = vector.broadcast %cst_307 : f32 to vector<8x1xf32>
    %798 = arith.divf %796, %797 : vector<8x1xf32>
    %799 = arith.mulf %792, %792 : vector<8x32xf32>
    %cst_308 = arith.constant dense<0.000000e+00> : vector<8xf32>
    %800 = vector.multi_reduction <add>, %799, %cst_308 [1] : vector<8x32xf32> to vector<8xf32>
    %801 = vector.shape_cast %800 : vector<8xf32> to vector<8x1xf32>
    %cst_309 = arith.constant 3.200000e+01 : f32
    %802 = vector.broadcast %cst_309 : f32 to vector<8x1xf32>
    %803 = arith.divf %801, %802 : vector<8x1xf32>
    %804 = arith.mulf %798, %798 : vector<8x1xf32>
    %805 = arith.subf %803, %804 : vector<8x1xf32>
    %806 = vector.broadcast %798 : vector<8x1xf32> to vector<8x32xf32>
    %807 = arith.subf %792, %806 : vector<8x32xf32>
    %cst_310 = arith.constant 9.99999974E-6 : f32
    %808 = vector.broadcast %cst_310 : f32 to vector<8x1xf32>
    %809 = arith.addf %805, %808 : vector<8x1xf32>
    %810 = math.rsqrt %809 : vector<8x1xf32>
    %811 = vector.broadcast %810 : vector<8x1xf32> to vector<8x32xf32>
    %812 = arith.mulf %807, %811 : vector<8x32xf32>
    %813 = vector.broadcast %793 : vector<1x32xf32> to vector<8x32xf32>
    %814 = arith.mulf %812, %813 : vector<8x32xf32>
    %815 = vector.broadcast %794 : vector<1x32xf32> to vector<8x32xf32>
    %816 = arith.addf %814, %815 : vector<8x32xf32>
    %c320_311 = arith.constant 320 : index
    %c0_312 = arith.constant 0 : index
    %817 = vector.load %arg1[%c320_311, %c0_312] : memref<392x128xf32, #tpu.memory_space<vmem>>, vector<32x128xf32>
    %cst_313 = arith.constant dense<0.000000e+00> : vector<8x128xf32>
    %818 = tpu.matmul %816, %817, %cst_313 {dimension_numbers = #tpu.dot_dimension_numbers<[1], [0], [0], [1], [0, 0, 1, 1], [], []>} : vector<8x32xf32>, vector<32x128xf32>, vector<8x128xf32> -> vector<8x128xf32>
    %c386_314 = arith.constant 386 : index
    %c0_315 = arith.constant 0 : index
    %819 = vector.load %arg1[%c386_314, %c0_315] : memref<392x128xf32, #tpu.memory_space<vmem>>, vector<1x128xf32>
    %820 = vector.broadcast %819 : vector<1x128xf32> to vector<8x128xf32>
    %821 = arith.addf %818, %820 : vector<8x128xf32>
    %cst_316 = arith.constant 0.000000e+00 : f32
    %822 = vector.broadcast %cst_316 : f32 to vector<8x128xf32>
    %823 = arith.maximumf %821, %822 : vector<8x128xf32>
    %c352_317 = arith.constant 352 : index
    %c0_318 = arith.constant 0 : index
    %824 = vector.load %arg1[%c352_317, %c0_318] : memref<392x128xf32, #tpu.memory_space<vmem>>, vector<32x128xf32>
    %cst_319 = arith.constant dense<0.000000e+00> : vector<8x32xf32>
    %825 = tpu.matmul %823, %824, %cst_319 {dimension_numbers = #tpu.dot_dimension_numbers<[1], [1], [0], [0], [0, 0, 1, 0], [], []>} : vector<8x128xf32>, vector<32x128xf32>, vector<8x32xf32> -> vector<8x32xf32>
    %c387_320 = arith.constant 387 : index
    %c0_321 = arith.constant 0 : index
    %826 = vector.load %arg1[%c387_320, %c0_321] : memref<392x128xf32, #tpu.memory_space<vmem>>, vector<1x32xf32>
    %827 = vector.broadcast %826 : vector<1x32xf32> to vector<8x32xf32>
    %828 = arith.addf %825, %827 : vector<8x32xf32>
    %829 = arith.addf %816, %828 : vector<8x32xf32>
    %c390_322 = arith.constant 390 : index
    %c0_323 = arith.constant 0 : index
    %830 = vector.load %arg1[%c390_322, %c0_323] : memref<392x128xf32, #tpu.memory_space<vmem>>, vector<1x32xf32>
    %c391_324 = arith.constant 391 : index
    %c0_325 = arith.constant 0 : index
    %831 = vector.load %arg1[%c391_324, %c0_325] : memref<392x128xf32, #tpu.memory_space<vmem>>, vector<1x32xf32>
    %cst_326 = arith.constant dense<0.000000e+00> : vector<8xf32>
    %832 = vector.multi_reduction <add>, %829, %cst_326 [1] : vector<8x32xf32> to vector<8xf32>
    %833 = vector.shape_cast %832 : vector<8xf32> to vector<8x1xf32>
    %cst_327 = arith.constant 3.200000e+01 : f32
    %834 = vector.broadcast %cst_327 : f32 to vector<8x1xf32>
    %835 = arith.divf %833, %834 : vector<8x1xf32>
    %836 = arith.mulf %829, %829 : vector<8x32xf32>
    %cst_328 = arith.constant dense<0.000000e+00> : vector<8xf32>
    %837 = vector.multi_reduction <add>, %836, %cst_328 [1] : vector<8x32xf32> to vector<8xf32>
    %838 = vector.shape_cast %837 : vector<8xf32> to vector<8x1xf32>
    %cst_329 = arith.constant 3.200000e+01 : f32
    %839 = vector.broadcast %cst_329 : f32 to vector<8x1xf32>
    %840 = arith.divf %838, %839 : vector<8x1xf32>
    %841 = arith.mulf %835, %835 : vector<8x1xf32>
    %842 = arith.subf %840, %841 : vector<8x1xf32>
    %843 = vector.broadcast %835 : vector<8x1xf32> to vector<8x32xf32>
    %844 = arith.subf %829, %843 : vector<8x32xf32>
    %cst_330 = arith.constant 9.99999974E-6 : f32
    %845 = vector.broadcast %cst_330 : f32 to vector<8x1xf32>
    %846 = arith.addf %842, %845 : vector<8x1xf32>
    %847 = math.rsqrt %846 : vector<8x1xf32>
    %848 = vector.broadcast %847 : vector<8x1xf32> to vector<8x32xf32>
    %849 = arith.mulf %844, %848 : vector<8x32xf32>
    %850 = vector.broadcast %830 : vector<1x32xf32> to vector<8x32xf32>
    %851 = arith.mulf %849, %850 : vector<8x32xf32>
    %852 = vector.broadcast %831 : vector<1x32xf32> to vector<8x32xf32>
    %853 = arith.addf %851, %852 : vector<8x32xf32>
    %854 = arith.addf %853, %585 : vector<8x32xf32>
    %cst_331 = arith.constant dense<0.000000e+00> : vector<8x64xf32>
    %855 = tpu.matmul %854, %1, %cst_331 {dimension_numbers = #tpu.dot_dimension_numbers<[1], [0], [0], [1], [0, 0, 1, 1], [], []>} : vector<8x32xf32>, vector<32x64xf32>, vector<8x64xf32> -> vector<8x64xf32>
    %856 = vector.broadcast %2 : vector<1x64xf32> to vector<8x64xf32>
    %857 = arith.addf %855, %856 : vector<8x64xf32>
    %cst_332 = arith.constant 0.000000e+00 : f32
    %858 = vector.broadcast %cst_332 : f32 to vector<8x64xf32>
    %859 = arith.maximumf %857, %858 : vector<8x64xf32>
    %860 = vector.extract_strided_slice %3 {offsets = [0, 16], sizes = [64, 8], strides = [1, 1]} : vector<64x24xf32> to vector<64x8xf32>
    %cst_333 = arith.constant dense<0.000000e+00> : vector<8x8xf32>
    %861 = tpu.matmul %859, %860, %cst_333 {dimension_numbers = #tpu.dot_dimension_numbers<[1], [0], [0], [1], [0, 0, 1, 1], [], []>} : vector<8x64xf32>, vector<64x8xf32>, vector<8x8xf32> -> vector<8x8xf32>
    %862 = vector.extract_strided_slice %4 {offsets = [0, 16], sizes = [1, 8], strides = [1, 1]} : vector<1x24xf32> to vector<1x8xf32>
    %863 = vector.broadcast %862 : vector<1x8xf32> to vector<8x8xf32>
    %864 = arith.addf %861, %863 : vector<8x8xf32>
    %865 = arith.addf %289, %576 : vector<8x8xf32>
    %866 = arith.addf %865, %864 : vector<8x8xf32>
    %cst_334 = arith.constant 0.000000e+00 : f32
    %867 = vector.broadcast %cst_334 : f32 to vector<8x120xf32>
    %868 = tpu.concatenate %866, %867 in 1 : vector<8x8xf32>, vector<8x120xf32> -> vector<8x128xf32>
    %c0_335 = arith.constant 0 : index
    %c0_336 = arith.constant 0 : index
    %869 = vector.load %arg2[%c0_335, %c0_336] : memref<8x128xf32, #tpu.memory_space<vmem>>, vector<8x128xf32>
    tpu.vector_store %arg2[%c0_335, %c0_336], %868 {strides = array<i32>} : memref<8x128xf32, #tpu.memory_space<vmem>>, vector<8x128xf32>,
    return
  }
}

</mosaic_0001>

<bundles_post_ra>
// kernel: forward.1
= control target key start
LH: loop header
LB: loop body
LE: loop exit
PB: predicated region body
PF: predicated region fallthrough
CT: control target
= control target key end

     0   :  { %7 = vsyncpa [#allocation3], 0  ;;  %s8530_s9 = smov [#allocation2]   ;;  %s9497_s0 = inlined_call_operand.vmem [shape: f32[8,6], index: 0, kind: input, shape index: {}]   ;;  %s9498_s1 = inlined_call_operand.hbm [shape: f32[392,128], index: 1, kind: input, shape index: {}]   ;;  %s9499_s2 = inlined_call_operand.vmem [shape: f32[8,128], index: 2, kind: output, shape index: {}]  }
   0x1   :  { %s15_s10 = sshll.u32 %s8530_s9, 4  ;;  %s8506_s13 = scalar_lea.hbm %s9498_s1, 6272  ;;  %s16_s10 = int_to_ptr.vmem [resolvable:$true] %s15_s10 }
   0x2   :  { %p8507_p0 = scmp.ne.s32.totalorder %s9498_s1, %s8506_s13  ;;  %p8510_p1 = scmp.lt.u32.totalorder %s8506_s13, %s9498_s1 }
   0x4   :  { %p8512_p2 = pnand %p8510_p1, %p8507_p0 }
   0x6   :  { %8515 = shalt.err (!%p8512_p2)
}
   0x7   :  { %s8516_s18 = scalar_lea.vmem %s16_s10, 6272  ;;  %p8521_p4 = scmp.lt.s32.totalorder %s16_s10, %s16_s10 }
   0x8   :  { %p8517_p3 = scmp.ne.s32.totalorder %s16_s10, %s8516_s18  ;;  %p8522_p5 = scmp.lt.s32.totalorder %s8516_s18, %s8516_s18 }
   0xa   :  { %p8523_p6 = por %p8522_p5, %p8521_p4 }
   0xc   :  { %p8524_p7 = pnand %p8523_p6, %p8517_p3 }
   0xe   :  { %8527 = shalt.err (!%p8524_p7)
}
   0xf   :  { %s8531_s19 = smov 128   ;;  %s8532_s20 = smov 8  }
  0x10   :  { %21 = dma.hbm_to_vmem [thread:$0]  %s9498_s1, 6272, %s16_s10, [#allocation3], %s8531_s19, %s8531_s19, %s8532_s20  }
  0x11   :  { %8528 = dma.done.wait [#allocation3], 6272  }
  0x12   :  { %8529 = vsyncadd [#allocation3], 4294961024  ;;  %v9502_v0 = vmov 0.0   ;;  %vm8534_vm0 = vmmov 0   ;;  %v9500_v1 = vmov 0.0|0.0   ;;  %vm51_vm1 = vcmask 1045504  }
  0x13   :  { %7480 = vmatprep.subr.mxu0 %v9502_v0  ;;  %7482 = vmatprep.mubr.msk.f32.mxu0 %vm8534_vm0, %v9502_v0  ;;  %vm47_vm2 = vcmask 48128   ;;  %v8584_v2 = vld [vmem:[#allocation2 + $0x8] sm:$0x3f]  ;;  %v40_v3 = vld [vmem:[%s9497_s0] sm:$0xff]  ;;  %v130_v4 = vld [vmem:[#allocation2 + $0x78] sm:$0xff]  ;;  %vm139_vm3 = vcmask 261120  }
  0x14   :  { %8099 = vmatprep.subr.bf16.mxu1 %v9500_v1  ;;  %7493 = vmatprep.mubr.msk.f32.mxu1 %vm8534_vm0, %v9502_v0  ;;  %v131_v5 = vld [vmem:[#allocation2 + $0x80] sm:$0xff]  ;;  %v132_v7 = vld [vmem:[#allocation2 + $0x88] sm:$0xff]  ;;  %v133_v8 = vld [vmem:[#allocation2 + $0x90] sm:$0xff]  ;;  %s8536_s24 = smov 120   ;;  %s8537_s25 = smov 96   ;;  %vm216_vm4 = vcmask 64512  }
  0x15   :  { %7481 = vmatpush3.msk.msra.mxu0 %vm51_vm1, %v8584_v2  ;;  %v8592_v6 = vpack.c.bf16 %v131_v5, %v130_v4  ;;  %v8599_v9 = vpack.c.bf16 %v133_v8, %v132_v7  ;;  %v7086_v10 = vld [vmem:[#allocation2] ss:$0 sm:$0xff]  ;;  %v7089_v11 = vld [vmem:[#allocation2 + $0x3] ss:$0 sm:$0xff]  ;;  %v7090_v16 = vld [vmem:[#allocation2 + $0xf8] ss:$0 sm:$0xff] }
  0x16   :  { %7483 = vmatmul.mubr.msk.f32.vlgmr.msra.gmra.mrb[0].mxu0 %vm47_vm2, %v40_v3  ;;  %7501 = vmatprep.subr.mxu0 %v9502_v0  ;;  %s8538_s26 = smov 80   ;;  %s8539_s27 = smov 88   ;;  %vm886_vm5 = vcmask 130048   ;;  %vm888_vm6 = vcmask 195584   ;;  %vm2330_vm7 = vcmask 523264  }
  0x17   :  { %7503 = vmatprep.mubr.msk.f32.mxu0 %vm8534_vm0, %v9502_v0  ;;  %8101 = vmatpush3.bf16.msra.mxu1 %v8592_v6  ;;  %s8540_s28 = smov 72   ;;  %s8541_s29 = smov 112  }
  0x18   :  { %8102 = vmatprep.subr.bf16.mxu1 %v9500_v1  ;;  %s8542_s30 = smov 104   ;;  %s8543_s3 = smov 56  }
  0x19   :  { %s8544_s4 = smov 64   ;;  %s8545_s5 = smov 48  }
  0x1a   :  { %s8546_s6 = smov 40   ;;  %s8547_s7 = smov 16  }
  0x1b   :  { %8104 = vmatpush3.bf16.msra.mxu1 %v8599_v9  ;;  %s8548_s8 = smov 24  }
  0x1c   :  { %7496 = vmatprep.subr.mxu1 %v9502_v0 }
  0xe9   :  { %v121_v12 = vpop.f32.mrb[0].mxu0 }
  0xea   :  { %v8603_v13 = vadd.f32 %v7086_v10, %v121_v12  ;;  %v7484_v14 = vpop.f32.mrb[1].mxu0 }
  0xec   :  { %v8606_v15 = vadd.f32 %v7089_v11, %v8603_v13 }
  0xee   :  { %7494 = vmatmul.mubr.msk.f32.vlgmr.msra.gmra.mrb[0].mxu1 %vm139_vm3, %v8606_v15 }
  0xef   :  { %7498 = vmatprep.mubr.msk.f32.mxu1 %vm8534_vm0, %v9502_v0 }
 0x1c1   :  { %v209_v17 = vpop.f32.mrb[0].mxu1 }
 0x1c2   :  { %v8612_v18 = vadd.f32 %v7090_v16, %v209_v17  ;;  %v7495_v19 = vpop.f32.mrb[1].mxu1 }
 0x1c3   :  { %v891_v19 = vld [vmem:[#allocation2 + $0xa0] sm:$0xff] }
 0x1c4   :  { %378 = vrot.lane.b32.xlu1 %v8612_v18, %s8536_s24  ;;  %214 = vrot.lane.b32.xlu0 %v8612_v18, %s8537_s25 }
 0x1c8   :  { %545 = vrot.lane.b32.xlu1 %v8612_v18, %s8538_s26  ;;  %380 = vrot.lane.b32.xlu0 %v8612_v18, %s8539_s27 }
 0x1cc   :  { %710 = vrot.lane.b32.xlu1 %v8612_v18, %s8540_s28  ;;  %543 = vrot.lane.b32.xlu0 %v8612_v18, %s8541_s29 }
 0x1d0   :  { %708 = vrot.lane.b32.xlu0 %v8612_v18, %s8542_s30 }
 0x236   :  { %v379_v20 = vpop.permute.xlu1 %378  ;;  %v215_v21 = vpop.permute.xlu0 %214 }
 0x237   :  { %7497 = vmatpush3.xpose.msk.msra.mxu1 %vm216_vm4, %v215_v21 }
 0x238   :  { %7506 = vmatprep.subr.mxu1 %v9502_v0 }
 0x23a   :  { %7499 = vmatmul.mubr.msk.f32.vlgmr.msra.gmra.mrb[2].mxu1 %vm216_vm4, %v8612_v18  ;;  %v381_v22 = vpop.permute.xlu0 %380  ;;  %v546_v23 = vpop.permute.xlu1 %545 }
 0x23b   :  { %7507 = vmatpush3.xpose.msk.msra.mxu1 %vm216_vm4, %v381_v22  ;;  %7508 = vmatprep.mubr.msk.f32.mxu1 %vm8534_vm0, %v9502_v0 }
 0x23c   :  { %7516 = vmatprep.subr.mxu1 %v9502_v0 }
 0x23e   :  { %7509 = vmatmul.mubr.msk.f32.vlgmr.msra.gmra.mrb[4].mxu1 %vm216_vm4, %v379_v20  ;;  %v544_v24 = vpop.permute.xlu0 %543  ;;  %v711_v25 = vpop.permute.xlu1 %710 }
 0x23f   :  { %7517 = vmatpush3.xpose.msk.msra.mxu1 %vm216_vm4, %v546_v23  ;;  %7518 = vmatprep.mubr.msk.f32.mxu1 %vm8534_vm0, %v9502_v0 }
 0x240   :  { %7526 = vmatprep.subr.mxu1 %v9502_v0 }
 0x242   :  { %7519 = vmatmul.mubr.msk.f32.vlgmr.msra.gmra.mrb[6].mxu1 %vm216_vm4, %v544_v24  ;;  %v709_v26 = vpop.permute.xlu0 %708 }
 0x243   :  { %7527 = vmatpush3.xpose.msk.msra.mxu1 %vm216_vm4, %v711_v25  ;;  %7528 = vmatprep.mubr.msk.f32.mxu1 %vm8534_vm0, %v9502_v0  ;;  %v892_v25 = vld [vmem:[#allocation2 + $0xa8] sm:$0xff] }
 0x244   :  { %8105 = vmatprep.subr.bf16.mxu1 %v9500_v1 }
 0x246   :  { %7529 = vmatmul.mubr.msk.f32.vlgmr.msra.gmra.mrb[8].mxu1 %vm216_vm4, %v709_v26  ;;  %v893_v26 = vld [vmem:[#allocation2 + $0xb0] sm:$0xff] }
 0x247   :  { %7544 = vmatprep.mubr.msk.f32.mxu1 %vm8534_vm0, %v9502_v0 }
 0x30d   :  { %v287_v27 = vpop.f32.mrb[2].mxu1 }
 0x30e   :  { %v7500_v28 = vpop.f32.mrb[3].mxu1  ;;  %v291_v29 = vsel %vm216_vm4, %v287_v27, -inf }
 0x30f   :  { %292 = vmax.xlane.f32.xlu1 %v291_v29 }
 0x311   :  { %v452_v30 = vpop.f32.mrb[4].mxu1 }
 0x312   :  { %v7510_v31 = vpop.f32.mrb[5].mxu1  ;;  %v456_v32 = vsel %vm216_vm4, %v452_v30, -inf }
 0x313   :  { %457 = vmax.xlane.f32.xlu0 %v456_v32 }
 0x315   :  { %v617_v33 = vpop.f32.mrb[6].mxu1 }
 0x316   :  { %v7520_v34 = vpop.f32.mrb[7].mxu1  ;;  %v621_v35 = vsel %vm216_vm4, %v617_v33, -inf }
 0x317   :  { %622 = vmax.xlane.f32.xlu0 %v621_v35 }
 0x319   :  { %v782_v36 = vpop.f32.mrb[8].mxu1 }
 0x31a   :  { %v7530_v37 = vpop.f32.mrb[9].mxu1  ;;  %v786_v38 = vsel %vm216_vm4, %v782_v36, -inf }
 0x31b   :  { %787 = vmax.xlane.f32.xlu1 %v786_v38  ;;  %v7104_v38 = vld [vmem:[#allocation2 + $0xf9] ss:$0 sm:$0xff] }
 0x32c   :  { %467 = vrot.lane.b32.xlu1 %v8612_v18, %s8543_s3 }
 0x39c   :  { %v293_v39 = vpop.xlane.xlu1 %292 }
 0x39d   :  { %v294_v40 = vsub.f32 %v287_v27, %v293_v39  ;;  %v8686_v27 = vpack.c.bf16 %v893_v26, %v892_v25 }
 0x39f   :  { %v295_v41 = vmul.f32 1.442695, %v294_v40 }
 0x3a0   :  { %v458_v42 = vpop.xlane.xlu0 %457 }
 0x3a1   :  { %8357 = vpow2.f32 %v295_v41  ;;  %v459_v43 = vsub.f32 %v452_v30, %v458_v42 }
 0x3a3   :  { %v460_v44 = vmul.f32 1.442695, %v459_v43 }
 0x3a4   :  { %v623_v54 = vpop.xlane.xlu0 %622 }
 0x3a5   :  { %8359 = vpow2.f32 %v460_v44  ;;  %v624_v55 = vsub.f32 %v617_v33, %v623_v54  ;;  %v1086_v54 = vld [vmem:[#allocation2 + $0xe8] sm:$0xff] }
 0x3a7   :  { %v625_v56 = vmul.f32 1.442695, %v624_v55  ;;  %v1087_v55 = vld [vmem:[#allocation2 + $0xf0] sm:$0xff] }
 0x3a8   :  { %v788_v45 = vpop.xlane.xlu1 %787 }
 0x3a9   :  { %v789_v46 = vsub.f32 %v782_v36, %v788_v45 }
 0x3ab   :  { %v8358_v47 = vpop.eup %8357  ;;  %v790_v48 = vmul.f32 1.442695, %v789_v46  ;;  %v1001_v46 = vld [vmem:[#allocation2 + $0xb8] sm:$0xff] }
 0x3ac   :  { %v297_v49 = vsel %vm216_vm4, %v8358_v47, 0.0  ;;  %v468_v59 = vpop.permute.xlu1 %467 }
 0x3ad   :  { %8361 = vpow2.f32 %v790_v48  ;;  %298 = vadd.xlane.f32.xlu0 %v297_v49  ;;  %v1003_v49 = vld [vmem:[#allocation2 + $0xc8] sm:$0xff] }
 0x3ae   :  { %8363 = vpow2.f32 %v625_v56  ;;  %v8713_v56 = vpack.c.bf16 %v1087_v55, %v1086_v54 }
 0x3af   :  { %v8360_v50 = vpop.eup %8359 }
 0x3b0   :  { %v462_v51 = vsel %vm216_vm4, %v8360_v50, 0.0 }
 0x3b1   :  { %463 = vadd.xlane.f32.xlu1 %v462_v51 }
 0x3b7   :  { %v8362_v52 = vpop.eup %8361 }
 0x3b8   :  { %v792_v53 = vsel %vm216_vm4, %v8362_v52, 0.0  ;;  %v8364_v57 = vpop.eup %8363 }
 0x3b9   :  { %793 = vadd.xlane.f32.xlu1 %v792_v53  ;;  %v627_v58 = vsel %vm216_vm4, %v8364_v57, 0.0 }
 0x3c3   :  { %302 = vrot.lane.b32.xlu0 %v8612_v18, %s8544_s4 }
 0x3ca   :  { %632 = vrot.lane.b32.xlu1 %v8612_v18, %s8545_s5 }
 0x3e2   :  { %628 = vadd.xlane.f32.xlu0 %v627_v58 }
 0x3f8   :  { %797 = vrot.lane.b32.xlu0 %v8612_v18, %s8546_s6  ;;  %v890_v18 = vld [vmem:[#allocation2 + $0x98] sm:$0xff] }
 0x3f9   :  { %v8681_v20 = vpack.c.bf16 %v891_v19, %v890_v18  ;;  %v7110_v19 = vld [vmem:[#allocation2 + $0xfb] ss:$0 sm:$0xff] }
 0x3fb   :  { %8107 = vmatpush3.bf16.msra.mxu1 %v8681_v20 }
 0x3fc   :  { %8108 = vmatprep.subr.bf16.mxu1 %v9500_v1 }
 0x3ff   :  { %8110 = vmatpush3.bf16.msra.mxu1 %v8686_v27 }
 0x400   :  { %8117 = vmatprep.subr.bf16.mxu1 %v9500_v1 }
 0x43a   :  { %v299_v60 = vpop.xlane.xlu0 %298 }
 0x43b   :  { %8365 = vrcp.f32 %v299_v60 }
 0x43e   :  { %v303_v61 = vpop.permute.xlu0 %302  ;;  %v464_v62 = vpop.xlane.xlu1 %463 }
 0x43f   :  { %8367 = vrcp.f32 %v464_v62  ;;  %7502 = vmatpush3.msra.mxu0 %v303_v61 }
 0x440   :  { %7511 = vmatprep.subr.mxu0 %v9502_v0 }
 0x445   :  { %v8366_v63 = vpop.eup %8365 }
 0x446   :  { %v794_v3 = vpop.xlane.xlu1 %793  ;;  %v301_v4 = vmul.f32 %v8366_v63, %v8358_v47  ;;  %v1002_v47 = vld [vmem:[#allocation2 + $0xc0] sm:$0xff] }
 0x447   :  { %v8701_v48 = vpack.c.bf16 %v1002_v47, %v1001_v46  ;;  %v8734_v46 = vld [vmem:[#allocation2 + $0xff] ss:$0 sm:$0xff] }
 0x448   :  { %7504 = vmatmul.mubr.msk.f32.vlgmr.msra.gmra.mrb[2].mxu0 %vm216_vm4, %v301_v4 }
 0x449   :  { %v8368_v5 = vpop.eup %8367  ;;  %7512 = vmatpush3.msra.mxu0 %v468_v59  ;;  %7513 = vmatprep.mubr.msk.f32.mxu0 %vm8534_vm0, %v9502_v0 }
 0x44a   :  { %v633_v7 = vpop.permute.xlu1 %632  ;;  %7521 = vmatprep.subr.mxu0 %v9502_v0  ;;  %v466_v8 = vmul.f32 %v8368_v5, %v8360_v50  ;;  %v1004_v50 = vld [vmem:[#allocation2 + $0xd0] sm:$0xff]  ;;  %v7106_v5 = vld [vmem:[#allocation2 + $0xfc] ss:$0 sm:$0xff] }
 0x44b   :  { %v8705_v51 = vpack.c.bf16 %v1004_v50, %v1003_v49  ;;  %v8744_v50 = vld [vmem:[#allocation2 + $0x180] ss:$0 sm:$0xff] }
 0x44c   :  { %7514 = vmatmul.mubr.msk.f32.vlgmr.msra.gmra.mrb[4].mxu0 %vm216_vm4, %v466_v8  ;;  %v7107_v8 = vld [vmem:[#allocation2 + $0xfd] ss:$0 sm:$0xff] }
 0x44d   :  { %7522 = vmatpush3.msra.mxu0 %v633_v7  ;;  %7523 = vmatprep.mubr.msk.f32.mxu0 %vm8534_vm0, %v9502_v0 }
 0x44e   :  { %7531 = vmatprep.subr.mxu0 %v9502_v0 }
 0x46f   :  { %v629_v10 = vpop.xlane.xlu0 %628 }
 0x470   :  { %8369 = vrcp.f32 %v629_v10 }
 0x471   :  { %8371 = vrcp.f32 %v794_v3 }
 0x473   :  { %v798_v16 = vpop.permute.xlu0 %797 }
 0x47a   :  { %v8370_v11 = vpop.eup %8369 }
 0x47b   :  { %v631_v12 = vmul.f32 %v8370_v11, %v8364_v57  ;;  %v8372_v14 = vpop.eup %8371 }
 0x47c   :  { %v796_v17 = vmul.f32 %v8372_v14, %v8362_v52  ;;  %v1085_v52 = vld [vmem:[#allocation2 + $0xe0] sm:$0xff] }
 0x47d   :  { %7524 = vmatmul.mubr.msk.f32.vlgmr.msra.gmra.mrb[6].mxu0 %vm216_vm4, %v631_v12  ;;  %v7108_v12 = vld [vmem:[#allocation2 + $0xfa] ss:$0 sm:$0xff] }
 0x47e   :  { %7532 = vmatpush3.msra.mxu0 %v798_v16  ;;  %7533 = vmatprep.mubr.msk.f32.mxu0 %vm8534_vm0, %v9502_v0 }
 0x47f   :  { %8111 = vmatprep.subr.bf16.mxu0 %v9500_v1 }
 0x481   :  { %7534 = vmatmul.mubr.msk.f32.vlgmr.msra.gmra.mrb[8].mxu0 %vm216_vm4, %v796_v17 }
 0x482   :  { %7555 = vmatprep.mubr.msk.f32.mxu0 %vm8534_vm0, %v9502_v0  ;;  %8113 = vmatpush3.bf16.msra.mxu0 %v8701_v48 }
 0x483   :  { %8114 = vmatprep.subr.bf16.mxu0 %v9500_v1 }
 0x486   :  { %8116 = vmatpush3.bf16.msra.mxu0 %v8705_v51 }
 0x487   :  { %8123 = vmatprep.subr.bf16.mxu0 %v9500_v1 }
 0x51b   :  { %v374_v21 = vpop.f32.mrb[2].mxu0 }
 0x51c   :  { %v7505_v22 = vpop.f32.mrb[3].mxu0 }
 0x51f   :  { %v539_v23 = vpop.f32.mrb[4].mxu0 }
 0x520   :  { %874 = vrot.lane.b32.xlu1 %v539_v23, %s8532_s20  ;;  %v7515_v24 = vpop.f32.mrb[5].mxu0 }
 0x550   :  { %v704_v28 = vpop.f32.mrb[6].mxu0 }
 0x551   :  { %878 = vrot.lane.b32.xlu0 %v704_v28, %s8547_s7  ;;  %v7525_v29 = vpop.f32.mrb[7].mxu0 }
 0x552   :  { %v1191_v29 = vld [vmem:[#allocation2 + $0x100] sm:$0xff] }
 0x554   :  { %v869_v30 = vpop.f32.mrb[8].mxu0 }
 0x555   :  { %882 = vrot.lane.b32.xlu1 %v869_v30, %s8548_s8  ;;  %v7535_v31 = vpop.f32.mrb[9].mxu0  ;;  %v1192_v30 = vld [vmem:[#allocation2 + $0x108] sm:$0xff] }
 0x556   :  { %v8724_v31 = vpack.c.bf16 %v1192_v30, %v1191_v29 }
 0x592   :  { %v875_v32 = vpop.permute.xlu1 %874 }
 0x593   :  { %v885_v34 = vsel %vm216_vm4, %v374_v21, %v875_v32  ;;  %v1193_v32 = vld [vmem:[#allocation2 + $0x110] sm:$0xff] }
 0x5c3   :  { %v879_v33 = vpop.permute.xlu0 %878 }
 0x5c4   :  { %v887_v35 = vsel %vm886_vm5, %v885_v34, %v879_v33  ;;  %v1194_v33 = vld [vmem:[#allocation2 + $0x118] sm:$0xff] }
 0x5c5   :  { %v8728_v34 = vpack.c.bf16 %v1194_v33, %v1193_v32 }
 0x5c7   :  { %v883_v36 = vpop.permute.xlu1 %882  ;;  %9507 = vst [vmem:[#allocation5_spill] sm:$0xff] %v8728_v34 }
 0x5c8   :  { %v889_v37 = vsel %vm888_vm6, %v887_v35, %v883_v36 }
 0x5c9   :  { %7545 = vmatmul.mubr.msk.f32.vlgmr.msra.gmra.mrb[10].mxu1 %vm139_vm3, %v889_v37 }
 0x5ca   :  { %7566 = vmatprep.mubr.msk.f32.mxu1 %vm8534_vm0, %v9502_v0 }
 0x69c   :  { %v968_v39 = vpop.f32.mrb[10].mxu1 }
 0x69d   :  { %v969_v40 = vadd.f32 %v7104_v38, %v968_v39  ;;  %v7546_v41 = vpop.f32.mrb[11].mxu1 }
 0x69f   :  { %v972_v42 = vadd.f32 %v969_v40, %v8606_v15  ;;  %v1084_v15 = vld [vmem:[#allocation2 + $0xd8] sm:$0xff] }
 0x6a0   :  { %v8709_v53 = vpack.c.bf16 %v1085_v52, %v1084_v15 }
 0x6a1   :  { %v975_v43 = vsel %vm139_vm3, %v972_v42, 0.0  ;;  %v980_v44 = vmul.f32 %v972_v42, %v972_v42 }
 0x6a2   :  { %976 = vadd.xlane.f32.xlu0 %v975_v43  ;;  %8119 = vmatpush3.bf16.xpose.msra.mxu1 %v8709_v53 }
 0x6a3   :  { %v981_v45 = vsel %vm139_vm3, %v980_v44, 0.0  ;;  %8120 = vmatprep.subr.bf16.mxu1 %v9500_v1  ;;  %v8732_v44 = vld [vmem:[#allocation2 + $0xfe] ss:$0 sm:$0xff] }
 0x6a4   :  { %982 = vadd.xlane.f32.xlu1 %v981_v45 }
 0x6aa   :  { %8122 = vmatpush3.bf16.xpose.msra.mxu1 %v8713_v56 }
 0x6ab   :  { %7590 = vmatprep.subr.mxu1 %v9502_v0 }
 0x72f   :  { %v977_v57 = vpop.xlane.xlu0 %976 }
 0x730   :  { %v979_v58 = vmul.f32 0.03125, %v977_v57 }
 0x731   :  { %v983_v59 = vpop.xlane.xlu1 %982 }
 0x732   :  { %v985_v60 = vmul.f32 %v979_v58, %v979_v58  ;;  %v984_v61 = vmul.f32 0.03125, %v983_v59  ;;  %v987_v3 = vsub.f32 %v972_v42, %v979_v58 }
 0x734   :  { %v986_v62 = vsub.f32 %v984_v61, %v985_v60 }
 0x736   :  { %v988_v63 = vadd.f32 1e-05, %v986_v62 }
 0x738   :  { %8373 = vrsqrt.f32 %v988_v63 }
 0x742   :  { %v8374_v4 = vpop.eup %8373 }
 0x743   :  { %v990_v7 = vmul.f32 %v8374_v4, %v987_v3 }
 0x745   :  { %v995_v10 = vmul.f32 %v7106_v5, %v990_v7 }
 0x747   :  { %v1000_v11 = vadd.f32 %v7107_v8, %v995_v10 }
 0x749   :  { %7556 = vmatmul.mubr.msk.f32.vlgmr.msra.gmra.mrb[10].mxu0 %vm139_vm3, %v1000_v11 }
 0x74a   :  { %7577 = vmatprep.mubr.msk.f32.mxu0 %vm8534_vm0, %v9502_v0  ;;  %8125 = vmatpush3.bf16.msra.mxu0 %v8724_v31 }
 0x74b   :  { %8126 = vmatprep.subr.bf16.mxu0 %v9500_v1 }
 0x74e   :  { %8128 = vmatpush3.bf16.msra.mxu0 %v8728_v34 }
 0x74f   :  { %7580 = vmatprep.subr.mxu0 %v9502_v0 }
 0x81c   :  { %v1079_v14 = vpop.f32.mrb[10].mxu0 }
 0x81d   :  { %v1080_v16 = vadd.f32 %v7108_v12, %v1079_v14  ;;  %v7557_v17 = vpop.f32.mrb[11].mxu0 }
 0x81f   :  { %v1083_v18 = vmax.f32 %v1080_v16, 0.0 }
 0x821   :  { %7567 = vmatmul.mubr.f32.vlgmr.msra.gmra.mrb[12].mxu1 %v1083_v18 }
 0x822   :  { %7592 = vmatprep.mubr.msk.f32.mxu1 %vm8534_vm0, %v9502_v0 }
 0x8f4   :  { %v1159_v21 = vpop.f32.mrb[12].mxu1 }
 0x8f5   :  { %v1160_v22 = vadd.f32 %v7110_v19, %v1159_v21  ;;  %v7568_v23 = vpop.f32.mrb[13].mxu1 }
 0x8f7   :  { %v1163_v24 = vadd.f32 %v1160_v22, %v1000_v11 }
 0x8f9   :  { %v1166_v25 = vsel %vm139_vm3, %v1163_v24, 0.0  ;;  %v1170_v26 = vmul.f32 %v1163_v24, %v1163_v24 }
 0x8fa   :  { %1167 = vadd.xlane.f32.xlu0 %v1166_v25 }
 0x8fb   :  { %v1171_v28 = vsel %vm139_vm3, %v1170_v26, 0.0 }
 0x8fe   :  { %1172 = vadd.xlane.f32.xlu0 %v1171_v28 }
 0x987   :  { %v1168_v35 = vpop.xlane.xlu0 %1167 }
 0x988   :  { %v1169_v36 = vmul.f32 0.03125, %v1168_v35 }
 0x98a   :  { %v1175_v38 = vmul.f32 %v1169_v36, %v1169_v36  ;;  %v1177_v42 = vsub.f32 %v1163_v24, %v1169_v36 }
 0x98b   :  { %v1173_v37 = vpop.xlane.xlu0 %1172 }
 0x98c   :  { %v1174_v39 = vmul.f32 0.03125, %v1173_v37 }
 0x98e   :  { %v1176_v40 = vsub.f32 %v1174_v39, %v1175_v38 }
 0x990   :  { %v1178_v41 = vadd.f32 1e-05, %v1176_v40 }
 0x992   :  { %8375 = vrsqrt.f32 %v1178_v41 }
 0x99c   :  { %v8376_v43 = vpop.eup %8375 }
 0x99d   :  { %v1180_v45 = vmul.f32 %v8376_v43, %v1177_v42 }
 0x99f   :  { %v1185_v47 = vmul.f32 %v8732_v44, %v1180_v45 }
 0x9a1   :  { %v8738_v49 = vadd.f32 %v8734_v46, %v1185_v47 }
 0x9a3   :  { %7578 = vmatmul.mubr.msk.f32.vlgmr.msra.gmra.mrb[12].mxu0 %vm139_vm3, %v8738_v49 }
 0x9a4   :  { %7582 = vmatprep.mubr.msk.f32.mxu0 %vm8534_vm0, %v9502_v0 }
 0xa76   :  { %v1269_v15 = vpop.f32.mrb[12].mxu0 }
 0xa77   :  { %v8747_v52 = vadd.f32 %v8744_v50, %v1269_v15  ;;  %v7579_v54 = vpop.f32.mrb[13].mxu0 }
 0xa79   :  { %1439 = vrot.lane.b32.xlu0 %v8747_v52, %s8539_s27  ;;  %1274 = vrot.lane.b32.xlu1 %v8747_v52, %s8537_s25 }
 0xa7d   :  { %1602 = vrot.lane.b32.xlu0 %v8747_v52, %s8541_s29  ;;  %1437 = vrot.lane.b32.xlu1 %v8747_v52, %s8536_s24 }
 0xa81   :  { %1767 = vrot.lane.b32.xlu0 %v8747_v52, %s8542_s30  ;;  %1604 = vrot.lane.b32.xlu1 %v8747_v52, %s8538_s26 }
 0xa85   :  { %1769 = vrot.lane.b32.xlu1 %v8747_v52, %s8540_s28 }
 0xaeb   :  { %v1440_v55 = vpop.permute.xlu0 %1439  ;;  %v1275_v57 = vpop.permute.xlu1 %1274 }
 0xaec   :  { %7581 = vmatpush3.xpose.msk.msra.mxu0 %vm216_vm4, %v1275_v57  ;;  %7591 = vmatpush3.xpose.msk.msra.mxu1 %vm216_vm4, %v1440_v55 }
 0xaed   :  { %7600 = vmatprep.subr.mxu1 %v9502_v0  ;;  %7585 = vmatprep.subr.mxu0 %v9502_v0 }
 0xaef   :  { %7583 = vmatmul.mubr.msk.f32.vlgmr.msra.gmra.mrb[14].mxu0 %vm216_vm4, %v8747_v52  ;;  %v1438_v58 = vpop.permute.xlu1 %1437  ;;  %v1603_v60 = vpop.permute.xlu0 %1602 }
 0xaf0   :  { %7593 = vmatmul.mubr.msk.f32.vlgmr.msra.gmra.mrb[14].mxu1 %vm216_vm4, %v1438_v58  ;;  %7587 = vmatprep.mubr.msk.f32.mxu0 %vm8534_vm0, %v9502_v0 }
 0xaf1   :  { %7602 = vmatprep.mubr.msk.f32.mxu1 %vm8534_vm0, %v9502_v0 }
 0xaf3   :  { %v1605_v59 = vpop.permute.xlu1 %1604  ;;  %v1768_v62 = vpop.permute.xlu0 %1767 }
 0xaf4   :  { %7601 = vmatpush3.xpose.msk.msra.mxu1 %vm216_vm4, %v1605_v59 }
 0xaf5   :  { %7610 = vmatprep.subr.mxu1 %v9502_v0 }
 0xaf7   :  { %7603 = vmatmul.mubr.msk.f32.vlgmr.msra.gmra.mrb[16].mxu1 %vm216_vm4, %v1603_v60  ;;  %v1770_v61 = vpop.permute.xlu1 %1769 }
 0xaf8   :  { %7611 = vmatpush3.xpose.msk.msra.mxu1 %vm216_vm4, %v1770_v61  ;;  %7612 = vmatprep.mubr.msk.f32.mxu1 %vm8534_vm0, %v9502_v0 }
 0xaf9   :  { %8129 = vmatprep.subr.bf16.mxu1 %v9500_v1 }
 0xafb   :  { %7613 = vmatmul.mubr.msk.f32.vlgmr.msra.gmra.mrb[18].mxu1 %vm216_vm4, %v1768_v62 }
 0xafc   :  { %7628 = vmatprep.mubr.msk.f32.mxu1 %vm8534_vm0, %v9502_v0 }
 0xbc2   :  { %v1346_v63 = vpop.f32.mrb[14].mxu0 }
 0xbc3   :  { %v7584_v3 = vpop.f32.mrb[15].mxu0  ;;  %v1511_v4 = vpop.f32.mrb[14].mxu1  ;;  %v1350_v5 = vsel %vm216_vm4, %v1346_v63, -inf }
 0xbc4   :  { %1351 = vmax.xlane.f32.xlu1 %v1350_v5  ;;  %v7594_v7 = vpop.f32.mrb[15].mxu1  ;;  %v1515_v8 = vsel %vm216_vm4, %v1511_v4, -inf  ;;  %v1948_v5 = vld [vmem:[#allocation2 + $0x128] sm:$0xff] }
 0xbc5   :  { %1516 = vmax.xlane.f32.xlu0 %v1515_v8 }
 0xbca   :  { %v1676_v10 = vpop.f32.mrb[16].mxu1 }
 0xbcb   :  { %v7604_v11 = vpop.f32.mrb[17].mxu1  ;;  %v1680_v12 = vsel %vm216_vm4, %v1676_v10, -inf }
 0xbcc   :  { %1681 = vmax.xlane.f32.xlu0 %v1680_v12 }
 0xbce   :  { %v1841_v14 = vpop.f32.mrb[18].mxu1 }
 0xbcf   :  { %v7614_v16 = vpop.f32.mrb[19].mxu1  ;;  %v1845_v17 = vsel %vm216_vm4, %v1841_v14, -inf }
 0xbd0   :  { %1846 = vmax.xlane.f32.xlu1 %v1845_v17  ;;  %v1950_v16 = vld [vmem:[#allocation2 + $0x138] sm:$0xff] }
 0xbe1   :  { %1526 = vrot.lane.b32.xlu1 %v8747_v52, %s8543_s3 }
 0xc51   :  { %v1352_v18 = vpop.xlane.xlu1 %1351 }
 0xc52   :  { %v1353_v19 = vsub.f32 %v1346_v63, %v1352_v18  ;;  %v1517_v21 = vpop.xlane.xlu0 %1516 }
 0xc53   :  { %v1518_v22 = vsub.f32 %v1511_v4, %v1517_v21  ;;  %v1947_v4 = vld [vmem:[#allocation2 + $0x120] sm:$0xff] }
 0xc54   :  { %v1354_v23 = vmul.f32 1.442695, %v1353_v19  ;;  %v8816_v7 = vpack.c.bf16 %v1948_v5, %v1947_v4 }
 0xc55   :  { %v1519_v24 = vmul.f32 1.442695, %v1518_v22 }
 0xc56   :  { %8377 = vpow2.f32 %v1354_v23  ;;  %8131 = vmatpush3.bf16.msra.mxu1 %v8816_v7 }
 0xc57   :  { %8379 = vpow2.f32 %v1519_v24  ;;  %8132 = vmatprep.subr.bf16.mxu1 %v9500_v1 }
 0xc59   :  { %v1682_v37 = vpop.xlane.xlu0 %1681 }
 0xc5a   :  { %v1683_v38 = vsub.f32 %v1676_v10, %v1682_v37 }
 0xc5c   :  { %v1684_v39 = vmul.f32 1.442695, %v1683_v38 }
 0xc5d   :  { %v1847_v25 = vpop.xlane.xlu1 %1846 }
 0xc5e   :  { %v1848_v26 = vsub.f32 %v1841_v14, %v1847_v25  ;;  %v1949_v14 = vld [vmem:[#allocation2 + $0x130] sm:$0xff] }
 0xc5f   :  { %v8821_v17 = vpack.c.bf16 %v1950_v16, %v1949_v14  ;;  %v8864_v16 = vld [vmem:[#allocation2 + $0x182] ss:$0 sm:$0xff] }
 0xc60   :  { %v8378_v28 = vpop.eup %8377  ;;  %v1849_v29 = vmul.f32 1.442695, %v1848_v26 }
 0xc61   :  { %v8380_v30 = vpop.eup %8379  ;;  %v1356_v32 = vsel %vm216_vm4, %v8378_v28, 0.0  ;;  %v1527_v42 = vpop.permute.xlu1 %1526  ;;  %9508 = vst [vmem:[#allocation6_spill] sm:$0xff] %v8821_v17  ;;  %8134 = vmatpush3.bf16.msra.mxu1 %v8821_v17 }
 0xc62   :  { %8381 = vpow2.f32 %v1849_v29  ;;  %1357 = vadd.xlane.f32.xlu0 %v1356_v32  ;;  %v1521_v33 = vsel %vm216_vm4, %v8380_v30, 0.0  ;;  %8141 = vmatprep.subr.bf16.mxu1 %v9500_v1 }
 0xc63   :  { %1522 = vadd.xlane.f32.xlu1 %v1521_v33  ;;  %8383 = vpow2.f32 %v1684_v39 }
 0xc6c   :  { %v8382_v35 = vpop.eup %8381 }
 0xc6d   :  { %v1851_v36 = vsel %vm216_vm4, %v8382_v35, 0.0  ;;  %v8384_v40 = vpop.eup %8383 }
 0xc6e   :  { %1852 = vadd.xlane.f32.xlu1 %v1851_v36  ;;  %v1686_v41 = vsel %vm216_vm4, %v8384_v40, 0.0 }
 0xc78   :  { %1361 = vrot.lane.b32.xlu0 %v8747_v52, %s8544_s4 }
 0xc7f   :  { %1691 = vrot.lane.b32.xlu1 %v8747_v52, %s8545_s5 }
 0xc97   :  { %1687 = vadd.xlane.f32.xlu0 %v1686_v41  ;;  %v2058_v41 = vld [vmem:[#allocation2 + $0x148] sm:$0xff] }
 0xcad   :  { %1856 = vrot.lane.b32.xlu0 %v8747_v52, %s8546_s6 }
 0xcef   :  { %v1358_v43 = vpop.xlane.xlu0 %1357 }
 0xcf0   :  { %8385 = vrcp.f32 %v1358_v43  ;;  %v1523_v45 = vpop.xlane.xlu1 %1522  ;;  %v2059_v43 = vld [vmem:[#allocation2 + $0x150] sm:$0xff] }
 0xcf1   :  { %8387 = vrcp.f32 %v1523_v45  ;;  %v2060_v45 = vld [vmem:[#allocation2 + $0x158] sm:$0xff] }
 0xcf3   :  { %v1362_v47 = vpop.permute.xlu0 %1361 }
 0xcf4   :  { %7586 = vmatpush3.msra.mxu0 %v1362_v47  ;;  %v8843_v47 = vpack.c.bf16 %v2060_v45, %v2059_v43 }
 0xcf5   :  { %7595 = vmatprep.subr.mxu0 %v9502_v0 }
 0xcfa   :  { %v8386_v15 = vpop.eup %8385 }
 0xcfb   :  { %v1853_v54 = vpop.xlane.xlu1 %1852  ;;  %v1360_v55 = vmul.f32 %v8386_v15, %v8378_v28  ;;  %v8388_v57 = vpop.eup %8387  ;;  %v2141_v15 = vld [vmem:[#allocation2 + $0x168] sm:$0xff] }
 0xcfc   :  { %v1525_v58 = vmul.f32 %v8388_v57, %v8380_v30  ;;  %v8833_v30 = vld [vmem:[#allocation2 + $0x181] ss:$0 sm:$0xff]  ;;  %v2143_v57 = vld [vmem:[#allocation2 + $0x178] sm:$0xff] }
 0xcfd   :  { %7588 = vmatmul.mubr.msk.f32.vlgmr.msra.gmra.mrb[16].mxu0 %vm216_vm4, %v1360_v55  ;;  %v2142_v55 = vld [vmem:[#allocation2 + $0x170] sm:$0xff] }
 0xcfe   :  { %7596 = vmatpush3.msra.mxu0 %v1527_v42  ;;  %7597 = vmatprep.mubr.msk.f32.mxu0 %vm8534_vm0, %v9502_v0 }
 0xcff   :  { %v1692_v52 = vpop.permute.xlu1 %1691  ;;  %7605 = vmatprep.subr.mxu0 %v9502_v0 }
 0xd01   :  { %7598 = vmatmul.mubr.msk.f32.vlgmr.msra.gmra.mrb[18].mxu0 %vm216_vm4, %v1525_v58 }
 0xd02   :  { %7606 = vmatpush3.msra.mxu0 %v1692_v52  ;;  %7607 = vmatprep.mubr.msk.f32.mxu0 %vm8534_vm0, %v9502_v0  ;;  %v8851_v52 = vpack.c.bf16 %v2143_v57, %v2142_v55 }
 0xd03   :  { %7615 = vmatprep.subr.mxu0 %v9502_v0 }
 0xd24   :  { %v1688_v59 = vpop.xlane.xlu0 %1687 }
 0xd25   :  { %8389 = vrcp.f32 %v1688_v59 }
 0xd26   :  { %8391 = vrcp.f32 %v1853_v54 }
 0xd28   :  { %v1857_v63 = vpop.permute.xlu0 %1856 }
 0xd2f   :  { %v8390_v60 = vpop.eup %8389 }
 0xd30   :  { %v1690_v61 = vmul.f32 %v8390_v60, %v8384_v40  ;;  %v8392_v62 = vpop.eup %8391  ;;  %v2057_v40 = vld [vmem:[#allocation2 + $0x140] sm:$0xff] }
 0xd31   :  { %v1855_v3 = vmul.f32 %v8392_v62, %v8382_v35  ;;  %v8839_v42 = vpack.c.bf16 %v2058_v41, %v2057_v40 }
 0xd32   :  { %7608 = vmatmul.mubr.msk.f32.vlgmr.msra.gmra.mrb[20].mxu0 %vm216_vm4, %v1690_v61 }
 0xd33   :  { %7616 = vmatpush3.msra.mxu0 %v1857_v63  ;;  %7617 = vmatprep.mubr.msk.f32.mxu0 %vm8534_vm0, %v9502_v0 }
 0xd34   :  { %8135 = vmatprep.subr.bf16.mxu0 %v9500_v1 }
 0xd36   :  { %7618 = vmatmul.mubr.msk.f32.vlgmr.msra.gmra.mrb[22].mxu0 %vm216_vm4, %v1855_v3 }
 0xd37   :  { %7639 = vmatprep.mubr.msk.f32.mxu0 %vm8534_vm0, %v9502_v0  ;;  %8137 = vmatpush3.bf16.msra.mxu0 %v8839_v42 }
 0xd38   :  { %8138 = vmatprep.subr.bf16.mxu0 %v9500_v1 }
 0xd3b   :  { %8140 = vmatpush3.bf16.msra.mxu0 %v8843_v47 }
 0xd3c   :  { %8147 = vmatprep.subr.bf16.mxu0 %v9500_v1 }
 0xdd0   :  { %v1433_v8 = vpop.f32.mrb[16].mxu0 }
 0xdd1   :  { %v7589_v10 = vpop.f32.mrb[17].mxu0 }
 0xdd4   :  { %v1598_v11 = vpop.f32.mrb[18].mxu0 }
 0xdd5   :  { %1933 = vrot.lane.b32.xlu1 %v1598_v11, %s8532_s20  ;;  %v7599_v12 = vpop.f32.mrb[19].mxu0  ;;  %v8857_v11 = vld [vmem:[#allocation2 + $0x185] ss:$0 sm:$0xff] }
 0xe05   :  { %v1763_v18 = vpop.f32.mrb[20].mxu0 }
 0xe06   :  { %1937 = vrot.lane.b32.xlu0 %v1763_v18, %s8547_s7  ;;  %v7609_v19 = vpop.f32.mrb[21].mxu0 }
 0xe09   :  { %v1928_v21 = vpop.f32.mrb[22].mxu0 }
 0xe0a   :  { %1941 = vrot.lane.b32.xlu1 %v1928_v21, %s8548_s8  ;;  %v7619_v22 = vpop.f32.mrb[23].mxu0 }
 0xe47   :  { %v1934_v23 = vpop.permute.xlu1 %1933 }
 0xe48   :  { %v1944_v25 = vsel %vm216_vm4, %v1433_v8, %v1934_v23  ;;  %v8855_v8 = vld [vmem:[#allocation2 + $0x184] ss:$0 sm:$0xff]  ;;  %v8869_v23 = vld [vmem:[#allocation2 + $0x183] ss:$0 sm:$0xff] }
 0xe78   :  { %v1938_v24 = vpop.permute.xlu0 %1937 }
 0xe79   :  { %v1945_v26 = vsel %vm886_vm5, %v1944_v25, %v1938_v24 }
 0xe7c   :  { %v1942_v28 = vpop.permute.xlu1 %1941 }
 0xe7d   :  { %v1946_v29 = vsel %vm888_vm6, %v1945_v26, %v1942_v28 }
 0xe7e   :  { %7629 = vmatmul.mubr.msk.f32.vlgmr.msra.gmra.mrb[20].mxu1 %vm139_vm3, %v1946_v29 }
 0xe7f   :  { %7650 = vmatprep.mubr.msk.f32.mxu1 %vm8534_vm0, %v9502_v0 }
 0xf51   :  { %v2025_v32 = vpop.f32.mrb[20].mxu1 }
 0xf52   :  { %v2026_v33 = vadd.f32 %v8833_v30, %v2025_v32  ;;  %v7630_v35 = vpop.f32.mrb[21].mxu1 }
 0xf53   :  { %v26_v35 = vld [vmem:[#allocation2 + $0x18] sm:$0xff] }
 0xf54   :  { %v2029_v36 = vadd.f32 %v2026_v33, %v8738_v49  ;;  %v2140_v49 = vld [vmem:[#allocation2 + $0x160] sm:$0xff] }
 0xf55   :  { %v8847_v54 = vpack.c.bf16 %v2141_v15, %v2140_v49 }
 0xf56   :  { %v2032_v37 = vsel %vm139_vm3, %v2029_v36, 0.0  ;;  %v2036_v38 = vmul.f32 %v2029_v36, %v2029_v36 }
 0xf57   :  { %2033 = vadd.xlane.f32.xlu0 %v2032_v37  ;;  %8143 = vmatpush3.bf16.xpose.msra.mxu1 %v8847_v54 }
 0xf58   :  { %v2037_v39 = vsel %vm139_vm3, %v2036_v38, 0.0  ;;  %8144 = vmatprep.subr.bf16.mxu1 %v9500_v1  ;;  %v28_v38 = vld [vmem:[#allocation2 + $0x28] sm:$0xff] }
 0xf59   :  { %2038 = vadd.xlane.f32.xlu1 %v2037_v39  ;;  %v29_v39 = vld [vmem:[#allocation2 + $0x30] sm:$0xff] }
 0xf5a   :  { %v8879_v40 = vpack.c.bf16 %v29_v39, %v28_v38  ;;  %v8930_v38 = vld [vmem:[#allocation2 + $0x5] ss:$0 sm:$0xff] }
 0xf5f   :  { %8146 = vmatpush3.bf16.xpose.msra.mxu1 %v8851_v52 }
 0xf60   :  { %7683 = vmatprep.subr.mxu1 %v9502_v0 }
 0xfe4   :  { %v2034_v58 = vpop.xlane.xlu0 %2033 }
 0xfe5   :  { %v2035_v59 = vmul.f32 0.03125, %v2034_v58 }
 0xfe6   :  { %v2039_v60 = vpop.xlane.xlu1 %2038 }
 0xfe7   :  { %v2041_v61 = vmul.f32 %v2035_v59, %v2035_v59  ;;  %v2040_v62 = vmul.f32 0.03125, %v2039_v60  ;;  %v2043_v4 = vsub.f32 %v2029_v36, %v2035_v59  ;;  %v27_v36 = vld [vmem:[#allocation2 + $0x20] sm:$0xff] }
 0xfe8   :  { %v8876_v37 = vpack.c.bf16 %v27_v36, %v26_v35  ;;  %v8884_v59 = vld [vmem:[#allocation2 + $0x186] ss:$0 sm:$0xff] }
 0xfe9   :  { %v2042_v63 = vsub.f32 %v2040_v62, %v2041_v61  ;;  %v8886_v61 = vld [vmem:[#allocation2 + $0x187] ss:$0 sm:$0xff] }
 0xfeb   :  { %v2044_v3 = vadd.f32 1e-05, %v2042_v63  ;;  %v8889_v63 = vld [vmem:[#allocation2 + $0x38] sm:$0xff] }
 0xfed   :  { %8393 = vrsqrt.f32 %v2044_v3  ;;  %v8891_v3 = vld [vmem:[#allocation2 + $0x40] sm:$0xff] }
 0xff7   :  { %v8394_v5 = vpop.eup %8393 }
 0xff8   :  { %v2046_v10 = vmul.f32 %v8394_v5, %v2043_v4  ;;  %v8154_v5 = vpack.c.bf16 %v8891_v3, %v8889_v63 }
 0xffa   :  { %v2051_v12 = vmul.f32 %v8855_v8, %v2046_v10 }
 0xffc   :  { %v2056_v14 = vadd.f32 %v8857_v11, %v2051_v12  ;;  %v8897_v12 = vld [vmem:[#allocation2 + $0x48] sm:$0xff] }
 0xffe   :  { %7640 = vmatmul.mubr.msk.f32.vlgmr.msra.gmra.mrb[24].mxu0 %vm139_vm3, %v2056_v14 }
 0xfff   :  { %7661 = vmatprep.mubr.msk.f32.mxu0 %vm8534_vm0, %v9502_v0  ;;  %8149 = vmatpush3.bf16.msra.mxu0 %v8876_v37 }
0x1000   :  { %8150 = vmatprep.subr.bf16.mxu0 %v9500_v1 }
0x1003   :  { %8152 = vmatpush3.bf16.msra.mxu0 %v8879_v40 }
0x1004   :  { %8153 = vmatprep.subr.bf16.mxu0 %v9500_v1 }
0x10d1   :  { %v2135_v18 = vpop.f32.mrb[24].mxu0 }
0x10d2   :  { %v2136_v19 = vadd.f32 %v8864_v16, %v2135_v18  ;;  %v7641_v21 = vpop.f32.mrb[25].mxu0 }
0x10d3   :  { %v8909_v21 = vld [vmem:[#allocation2 + $0x60] sm:$0xff] }
0x10d4   :  { %v2139_v22 = vmax.f32 %v2136_v19, 0.0  ;;  %v8907_v19 = vld [vmem:[#allocation2 + $0x58] sm:$0xff] }
0x10d6   :  { %7651 = vmatmul.mubr.f32.vlgmr.msra.gmra.mrb[22].mxu1 %v2139_v22  ;;  %v8915_v22 = vld [vmem:[#allocation2 + $0x68] sm:$0xff] }
0x10d7   :  { %7685 = vmatprep.mubr.msk.f32.mxu1 %vm8534_vm0, %v9502_v0 }
0x11a9   :  { %v2215_v24 = vpop.f32.mrb[22].mxu1 }
0x11aa   :  { %v2216_v25 = vadd.f32 %v8869_v23, %v2215_v24  ;;  %v7652_v26 = vpop.f32.mrb[23].mxu1  ;;  %v8917_v24 = vld [vmem:[#allocation2 + $0x70] sm:$0xff] }
0x11ab   :  { %v2404_v26 = vld [vmem:[#allocation2 + $0x8] sm:$0xff] }
0x11ac   :  { %v2219_v28 = vadd.f32 %v2216_v25, %v2056_v14  ;;  %v8899_v14 = vld [vmem:[#allocation2 + $0x50] sm:$0xff]  ;;  %v8163_v25 = vpack.c.bf16 %v8917_v24, %v8915_v22  ;;  %2406 = vrot.lane.b32.xlu1 %v2404_v26, %s8544_s4 }
0x11ad   :  { %v8157_v18 = vpack.c.bf16 %v8899_v14, %v8897_v12 }
0x11ae   :  { %v2222_v29 = vsel %vm139_vm3, %v2219_v28, 0.0  ;;  %v2226_v32 = vmul.f32 %v2219_v28, %v2219_v28 }
0x11af   :  { %2223 = vadd.xlane.f32.xlu0 %v2222_v29  ;;  %v8924_v29 = vld [vmem:[#allocation2 + $0x4] ss:$0 sm:$0xff] }
0x11b0   :  { %v2227_v33 = vsel %vm139_vm3, %v2226_v32, 0.0 }
0x11b3   :  { %2228 = vadd.xlane.f32.xlu0 %v2227_v33 }
0x11c9   :  { %2482 = vrot.lane.b32.xlu0 %v8584_v2, %s8537_s25 }
0x123c   :  { %v2224_v41 = vpop.xlane.xlu0 %2223 }
0x123d   :  { %v2225_v43 = vmul.f32 0.03125, %v2224_v41 }
0x123f   :  { %v2231_v2 = vmul.f32 %v2225_v43, %v2225_v43  ;;  %v2233_v57 = vsub.f32 %v2219_v28, %v2225_v43  ;;  %v2407_v28 = vpop.permute.xlu1 %2406 }
0x1240   :  { %v2229_v45 = vpop.xlane.xlu0 %2228  ;;  %7684 = vmatpush3.msra.mxu1 %v2407_v28 }
0x1241   :  { %v2230_v49 = vmul.f32 0.03125, %v2229_v45  ;;  %7688 = vmatprep.subr.mxu1 %v9502_v0 }
0x1243   :  { %v2232_v15 = vsub.f32 %v2230_v49, %v2231_v2  ;;  %v8944_v2 = vld [vmem:[%s9497_s0] sm:$0xff]  ;;  %s8549_s0 = smov 32  }
0x1244   :  { %v2483_v45 = vpop.permute.xlu0 %2482 }
0x1245   :  { %v2234_v55 = vadd.f32 1e-05, %v2232_v15 }
0x1247   :  { %8395 = vrsqrt.f32 %v2234_v55 }
0x1251   :  { %v8396_v58 = vpop.eup %8395 }
0x1252   :  { %v2236_v60 = vmul.f32 %v8396_v58, %v2233_v57  ;;  %v7143_v57 = vld [vmem:[#allocation2 + $0x1] ss:$0 sm:$0xff] }
0x1254   :  { %v2241_v62 = vmul.f32 %v8884_v59, %v2236_v60 }
0x1256   :  { %v2246_v4 = vadd.f32 %v8886_v61, %v2241_v62 }
0x1258   :  { %v2247_v10 = vadd.f32 %v2246_v4, %v8603_v13  ;;  %v8160_v13 = vpack.c.bf16 %v8909_v21, %v8907_v19  ;;  %v8956_v4 = vld [vmem:[#allocation2 + $0x3] ss:$0 sm:$0xff] }
0x125a   :  { %7662 = vmatmul.mubr.msk.f32.vlgmr.msra.gmra.mrb[26].mxu0 %vm139_vm3, %v2247_v10 }
0x125b   :  { %8155 = vmatpush3.bf16.msra.mxu0 %v8154_v5  ;;  %7680 = vmatprep.mubr.msk.f32.mxu0 %vm8534_vm0, %v9502_v0 }
0x125c   :  { %8156 = vmatprep.subr.bf16.mxu0 %v9500_v1 }
0x125f   :  { %8158 = vmatpush3.bf16.msra.mxu0 %v8157_v18  ;;  %v8966_v18 = vld [vmem:[#allocation2 + $0xf8] ss:$0 sm:$0xff] }
0x1260   :  { %8159 = vmatprep.subr.bf16.mxu0 %v9500_v1 }
0x1263   :  { %8161 = vmatpush3.bf16.msra.mxu0 %v8160_v13 }
0x1264   :  { %8162 = vmatprep.subr.bf16.mxu0 %v9500_v1 }
0x1267   :  { %8164 = vmatpush3.bf16.msra.mxu0 %v8163_v25 }
0x1268   :  { %7704 = vmatprep.subr.mxu0 %v9502_v0 }
0x132d   :  { %v2321_v32 = vpop.f32.mrb[26].mxu0 }
0x132e   :  { %v2322_v33 = vadd.f32 %v8924_v29, %v2321_v32  ;;  %v7663_v35 = vpop.f32.mrb[27].mxu0 }
0x1330   :  { %v2325_v36 = vmax.f32 %v2322_v33, 0.0 }
0x1332   :  { %7681 = vmatmul.mubr.msk.f32.vlgmr.msra.gmra.mrb[28].mxu0 %vm2330_vm7, %v2325_v36 }
0x1333   :  { %7706 = vmatprep.mubr.msk.f32.mxu0 %vm8534_vm0, %v9502_v0 }
0x1405   :  { %v2400_v39 = vpop.f32.mrb[28].mxu0 }
0x1406   :  { %v8933_v41 = vadd.f32 %v8930_v38, %v2400_v39  ;;  %v7682_v43 = vpop.f32.mrb[29].mxu0 }
0x1408   :  { %7686 = vmatmul.mubr.msk.f32.vlgmr.msra.gmra.mrb[24].mxu1 %vm216_vm4, %v8933_v41 }
0x1409   :  { %7689 = vmatpush3.msk.msra.mxu1 %vm51_vm1, %v2483_v45  ;;  %7690 = vmatprep.mubr.msk.f32.mxu1 %vm8534_vm0, %v9502_v0 }
0x140a   :  { %8165 = vmatprep.subr.bf16.mxu1 %v9500_v1 }
0x140c   :  { %7691 = vmatmul.mubr.msk.f32.vlgmr.msra.gmra.mrb[26].mxu1 %vm47_vm2, %v8944_v2 }
0x140d   :  { %8167 = vmatpush3.bf16.msra.mxu1 %v8592_v6  ;;  %7701 = vmatprep.mubr.msk.f32.mxu1 %vm8534_vm0, %v9502_v0 }
0x140e   :  { %8168 = vmatprep.subr.bf16.mxu1 %v9500_v1 }
0x1411   :  { %8170 = vmatpush3.bf16.msra.mxu1 %v8599_v9 }
0x1412   :  { %7714 = vmatprep.subr.mxu1 %v9502_v0 }
0x14db   :  { %v2478_v49 = vpop.f32.mrb[24].mxu1 }
0x14dc   :  { %v7687_v15 = vpop.f32.mrb[25].mxu1 }
0x14df   :  { %v2552_v55 = vpop.f32.mrb[26].mxu1 }
0x14e0   :  { %v2553_v58 = vadd.f32 %v2552_v55, %v2478_v49  ;;  %v7692_v60 = vpop.f32.mrb[27].mxu1 }
0x14e2   :  { %v8954_v62 = vadd.f32 %v7143_v57, %v2553_v58 }
0x14e4   :  { %v8960_v5 = vadd.f32 %v8956_v4, %v8954_v62 }
0x14e6   :  { %7702 = vmatmul.mubr.msk.f32.vlgmr.msra.gmra.mrb[28].mxu1 %vm139_vm3, %v8960_v5 }
0x14e7   :  { %7716 = vmatprep.mubr.msk.f32.mxu1 %vm8534_vm0, %v9502_v0 }
0x15b9   :  { %v2632_v10 = vpop.f32.mrb[28].mxu1 }
0x15ba   :  { %v8969_v13 = vadd.f32 %v8966_v18, %v2632_v10  ;;  %v7703_v25 = vpop.f32.mrb[29].mxu1 }
0x15bc   :  { %2800 = vrot.lane.b32.xlu0 %v8969_v13, %s8536_s24  ;;  %2637 = vrot.lane.b32.xlu1 %v8969_v13, %s8537_s25 }
0x15c0   :  { %2965 = vrot.lane.b32.xlu0 %v8969_v13, %s8541_s29  ;;  %2802 = vrot.lane.b32.xlu1 %v8969_v13, %s8539_s27 }
0x15c4   :  { %3130 = vrot.lane.b32.xlu0 %v8969_v13, %s8542_s30  ;;  %2967 = vrot.lane.b32.xlu1 %v8969_v13, %s8538_s26 }
0x15c8   :  { %3132 = vrot.lane.b32.xlu1 %v8969_v13, %s8540_s28 }
0x162e   :  { %v2638_v26 = vpop.permute.xlu1 %2637  ;;  %v2801_v28 = vpop.permute.xlu0 %2800 }
0x162f   :  { %7705 = vmatpush3.xpose.msk.msra.mxu0 %vm216_vm4, %v2638_v26 }
0x1630   :  { %7709 = vmatprep.subr.mxu0 %v9502_v0 }
0x1632   :  { %7707 = vmatmul.mubr.msk.f32.vlgmr.msra.gmra.mrb[30].mxu0 %vm216_vm4, %v8969_v13  ;;  %v2803_v32 = vpop.permute.xlu1 %2802  ;;  %v2966_v35 = vpop.permute.xlu0 %2965 }
0x1633   :  { %7715 = vmatpush3.xpose.msk.msra.mxu1 %vm216_vm4, %v2803_v32  ;;  %7711 = vmatprep.mubr.msk.f32.mxu0 %vm8534_vm0, %v9502_v0 }
0x1634   :  { %7724 = vmatprep.subr.mxu1 %v9502_v0 }
0x1636   :  { %7717 = vmatmul.mubr.msk.f32.vlgmr.msra.gmra.mrb[30].mxu1 %vm216_vm4, %v2801_v28  ;;  %v2968_v33 = vpop.permute.xlu1 %2967  ;;  %v3131_v39 = vpop.permute.xlu0 %3130 }
0x1637   :  { %7725 = vmatpush3.xpose.msk.msra.mxu1 %vm216_vm4, %v2968_v33  ;;  %7726 = vmatprep.mubr.msk.f32.mxu1 %vm8534_vm0, %v9502_v0 }
0x1638   :  { %7734 = vmatprep.subr.mxu1 %v9502_v0 }
0x163a   :  { %7727 = vmatmul.mubr.msk.f32.vlgmr.msra.gmra.mrb[32].mxu1 %vm216_vm4, %v2966_v35  ;;  %v3133_v36 = vpop.permute.xlu1 %3132 }
0x163b   :  { %7735 = vmatpush3.xpose.msk.msra.mxu1 %vm216_vm4, %v3133_v36  ;;  %7736 = vmatprep.mubr.msk.f32.mxu1 %vm8534_vm0, %v9502_v0 }
0x163c   :  { %8171 = vmatprep.subr.bf16.mxu1 %v9500_v1 }
0x163e   :  { %7737 = vmatmul.mubr.msk.f32.vlgmr.msra.gmra.mrb[34].mxu1 %vm216_vm4, %v3131_v39 }
0x163f   :  { %8173 = vmatpush3.bf16.msra.mxu1 %v8681_v20  ;;  %7752 = vmatprep.mubr.msk.f32.mxu1 %vm8534_vm0, %v9502_v0 }
0x1640   :  { %8174 = vmatprep.subr.bf16.mxu1 %v9500_v1 }
0x1643   :  { %8176 = vmatpush3.bf16.msra.mxu1 %v8686_v27 }
0x1644   :  { %8183 = vmatprep.subr.bf16.mxu1 %v9500_v1 }
0x1705   :  { %v2709_v43 = vpop.f32.mrb[30].mxu0 }
0x1706   :  { %v7708_v45 = vpop.f32.mrb[31].mxu0  ;;  %v2713_v49 = vsel %vm216_vm4, %v2709_v43, -inf }
0x1707   :  { %2714 = vmax.xlane.f32.xlu1 %v2713_v49 }
0x1709   :  { %v2874_v15 = vpop.f32.mrb[30].mxu1 }
0x170a   :  { %v7718_v55 = vpop.f32.mrb[31].mxu1  ;;  %v2878_v57 = vsel %vm216_vm4, %v2874_v15, -inf }
0x170b   :  { %2879 = vmax.xlane.f32.xlu0 %v2878_v57 }
0x170d   :  { %v3039_v58 = vpop.f32.mrb[32].mxu1 }
0x170e   :  { %v7728_v60 = vpop.f32.mrb[33].mxu1  ;;  %v3043_v10 = vsel %vm216_vm4, %v3039_v58, -inf }
0x170f   :  { %3044 = vmax.xlane.f32.xlu0 %v3043_v10 }
0x1711   :  { %v3204_v25 = vpop.f32.mrb[34].mxu1 }
0x1712   :  { %v7738_v26 = vpop.f32.mrb[35].mxu1  ;;  %v3208_v28 = vsel %vm216_vm4, %v3204_v25, -inf }
0x1713   :  { %3209 = vmax.xlane.f32.xlu1 %v3208_v28 }
0x1724   :  { %2889 = vrot.lane.b32.xlu1 %v8969_v13, %s8543_s3 }
0x1794   :  { %v2715_v32 = vpop.xlane.xlu1 %2714 }
0x1795   :  { %v2716_v33 = vsub.f32 %v2709_v43, %v2715_v32 }
0x1797   :  { %v2717_v35 = vmul.f32 1.442695, %v2716_v33 }
0x1798   :  { %v2880_v36 = vpop.xlane.xlu0 %2879 }
0x1799   :  { %8397 = vpow2.f32 %v2717_v35  ;;  %v2881_v39 = vsub.f32 %v2874_v15, %v2880_v36 }
0x179b   :  { %v2882_v45 = vmul.f32 1.442695, %v2881_v39 }
0x179c   :  { %v3045_v15 = vpop.xlane.xlu0 %3044 }
0x179d   :  { %8399 = vpow2.f32 %v2882_v45 }
0x17a0   :  { %v3210_v49 = vpop.xlane.xlu1 %3209 }
0x17a1   :  { %v3211_v55 = vsub.f32 %v3204_v25, %v3210_v49  ;;  %v3046_v25 = vsub.f32 %v3039_v58, %v3045_v15 }
0x17a3   :  { %v8398_v57 = vpop.eup %8397  ;;  %v3212_v60 = vmul.f32 1.442695, %v3211_v55  ;;  %v3047_v32 = vmul.f32 1.442695, %v3046_v25 }
0x17a4   :  { %v2719_v10 = vsel %vm216_vm4, %v8398_v57, 0.0  ;;  %v2890_v36 = vpop.permute.xlu1 %2889 }
0x17a5   :  { %8401 = vpow2.f32 %v3212_v60  ;;  %2720 = vadd.xlane.f32.xlu0 %v2719_v10 }
0x17a6   :  { %8403 = vpow2.f32 %v3047_v32 }
0x17a7   :  { %v8400_v26 = vpop.eup %8399 }
0x17a8   :  { %v2884_v28 = vsel %vm216_vm4, %v8400_v26, 0.0 }
0x17a9   :  { %2885 = vadd.xlane.f32.xlu1 %v2884_v28 }
0x17af   :  { %v8402_v1 = vpop.eup %8401 }
0x17b0   :  { %v3214_v43 = vsel %vm216_vm4, %v8402_v1, 0.0  ;;  %v8404_v33 = vpop.eup %8403 }
0x17b1   :  { %3215 = vadd.xlane.f32.xlu1 %v3214_v43  ;;  %v3049_v35 = vsel %vm216_vm4, %v8404_v33, 0.0 }
0x17bb   :  { %2724 = vrot.lane.b32.xlu0 %v8969_v13, %s8544_s4 }
0x17c2   :  { %3054 = vrot.lane.b32.xlu1 %v8969_v13, %s8545_s5 }
0x17da   :  { %3050 = vadd.xlane.f32.xlu0 %v3049_v35  ;;  %v9509_v35 = vmov 0.0|0.0  }
0x17f0   :  { %3219 = vrot.lane.b32.xlu0 %v8969_v13, %s8546_s6 }
0x1832   :  { %v2721_v39 = vpop.xlane.xlu0 %2720 }
0x1833   :  { %8405 = vrcp.f32 %v2721_v39 }
0x1836   :  { %v2725_v45 = vpop.permute.xlu0 %2724  ;;  %v2886_v49 = vpop.xlane.xlu1 %2885 }
0x1837   :  { %8407 = vrcp.f32 %v2886_v49  ;;  %7710 = vmatpush3.msra.mxu0 %v2725_v45 }
0x1838   :  { %7719 = vmatprep.subr.mxu0 %v9502_v0 }
0x183d   :  { %v8406_v55 = vpop.eup %8405 }
0x183e   :  { %v3216_v58 = vpop.xlane.xlu1 %3215  ;;  %v2723_v60 = vmul.f32 %v8406_v55, %v8398_v57 }
0x1840   :  { %7712 = vmatmul.mubr.msk.f32.vlgmr.msra.gmra.mrb[32].mxu0 %vm216_vm4, %v2723_v60 }
0x1841   :  { %v8408_v10 = vpop.eup %8407  ;;  %7720 = vmatpush3.msra.mxu0 %v2890_v36  ;;  %7721 = vmatprep.mubr.msk.f32.mxu0 %vm8534_vm0, %v9502_v0 }
0x1842   :  { %v3055_v13 = vpop.permute.xlu1 %3054  ;;  %7729 = vmatprep.subr.mxu0 %v9502_v0  ;;  %v2888_v28 = vmul.f32 %v8408_v10, %v8400_v26 }
0x1844   :  { %7722 = vmatmul.mubr.msk.f32.vlgmr.msra.gmra.mrb[34].mxu0 %vm216_vm4, %v2888_v28 }
0x1845   :  { %7730 = vmatpush3.msra.mxu0 %v3055_v13  ;;  %7731 = vmatprep.mubr.msk.f32.mxu0 %vm8534_vm0, %v9502_v0 }
0x1846   :  { %7739 = vmatprep.subr.mxu0 %v9502_v0 }
0x1867   :  { %v3051_v57 = vpop.xlane.xlu0 %3050 }
0x1868   :  { %8409 = vrcp.f32 %v3051_v57 }
0x1869   :  { %8411 = vrcp.f32 %v3216_v58 }
0x186b   :  { %v3220_v32 = vpop.permute.xlu0 %3219 }
0x1872   :  { %v8410_v43 = vpop.eup %8409 }
0x1873   :  { %v3053_v15 = vmul.f32 %v8410_v43, %v8404_v33  ;;  %v8412_v25 = vpop.eup %8411 }
0x1874   :  { %v3218_v26 = vmul.f32 %v8412_v25, %v8402_v1  ;;  %v9059_v25 = vld [vmem:[#allocation2 + $0xf9] ss:$0 sm:$0xff] }
0x1875   :  { %7732 = vmatmul.mubr.msk.f32.vlgmr.msra.gmra.mrb[36].mxu0 %vm216_vm4, %v3053_v15 }
0x1876   :  { %7740 = vmatpush3.msra.mxu0 %v3220_v32  ;;  %7741 = vmatprep.mubr.msk.f32.mxu0 %vm8534_vm0, %v9502_v0 }
0x1877   :  { %8177 = vmatprep.subr.bf16.mxu0 %v9509_v35 }
0x1879   :  { %7742 = vmatmul.mubr.msk.f32.vlgmr.msra.gmra.mrb[38].mxu0 %vm216_vm4, %v3218_v26 }
0x187a   :  { %8179 = vmatpush3.bf16.msra.mxu0 %v8701_v48  ;;  %7763 = vmatprep.mubr.msk.f32.mxu0 %vm8534_vm0, %v9502_v0 }
0x187b   :  { %8180 = vmatprep.subr.bf16.mxu0 %v9509_v35 }
0x187e   :  { %8182 = vmatpush3.bf16.msra.mxu0 %v8705_v51 }
0x187f   :  { %8189 = vmatprep.subr.bf16.mxu0 %v9509_v35 }
0x1913   :  { %v2796_v33 = vpop.f32.mrb[32].mxu0 }
0x1914   :  { %v7713_v36 = vpop.f32.mrb[33].mxu0 }
0x1917   :  { %v2961_v39 = vpop.f32.mrb[34].mxu0 }
0x1918   :  { %3296 = vrot.lane.b32.xlu1 %v2961_v39, %s8532_s20  ;;  %v7723_v1 = vpop.f32.mrb[35].mxu0 }
0x1948   :  { %v3126_v45 = vpop.f32.mrb[36].mxu0 }
0x1949   :  { %3300 = vrot.lane.b32.xlu0 %v3126_v45, %s8547_s7  ;;  %v7733_v49 = vpop.f32.mrb[37].mxu0 }
0x194c   :  { %v3291_v55 = vpop.f32.mrb[38].mxu0 }
0x194d   :  { %3304 = vrot.lane.b32.xlu1 %v3291_v55, %s8548_s8  ;;  %v7743_v58 = vpop.f32.mrb[39].mxu0 }
0x198a   :  { %v3297_v60 = vpop.permute.xlu1 %3296 }
0x198b   :  { %v3307_v13 = vsel %vm216_vm4, %v2796_v33, %v3297_v60 }
0x19bb   :  { %v3301_v10 = vpop.permute.xlu0 %3300 }
0x19bc   :  { %v3308_v28 = vsel %vm886_vm5, %v3307_v13, %v3301_v10 }
0x19bf   :  { %v3305_v57 = vpop.permute.xlu1 %3304 }
0x19c0   :  { %v3309_v43 = vsel %vm888_vm6, %v3308_v28, %v3305_v57 }
0x19c1   :  { %7753 = vmatmul.mubr.msk.f32.vlgmr.msra.gmra.mrb[36].mxu1 %vm139_vm3, %v3309_v43 }
0x19c2   :  { %8185 = vmatpush3.bf16.xpose.msra.mxu1 %v8709_v53  ;;  %7774 = vmatprep.mubr.msk.f32.mxu1 %vm8534_vm0, %v9502_v0 }
0x19c3   :  { %8186 = vmatprep.subr.bf16.mxu1 %v9509_v35 }
0x19ca   :  { %8188 = vmatpush3.bf16.xpose.msra.mxu1 %v8713_v56 }
0x19cb   :  { %7798 = vmatprep.subr.mxu1 %v9502_v0 }
0x1a94   :  { %v3379_v15 = vpop.f32.mrb[36].mxu1 }
0x1a95   :  { %v3380_v32 = vadd.f32 %v9059_v25, %v3379_v15  ;;  %v7754_v26 = vpop.f32.mrb[37].mxu1  ;;  %v9065_v15 = vld [vmem:[#allocation2 + $0xfc] ss:$0 sm:$0xff] }
0x1a97   :  { %v3383_v33 = vadd.f32 %v3380_v32, %v8960_v5  ;;  %v9068_v32 = vld [vmem:[#allocation2 + $0xfd] ss:$0 sm:$0xff] }
0x1a99   :  { %v3384_v36 = vsel %vm139_vm3, %v3383_v33, 0.0  ;;  %v3388_v39 = vmul.f32 %v3383_v33, %v3383_v33 }
0x1a9a   :  { %3385 = vadd.xlane.f32.xlu0 %v3384_v36  ;;  %v9078_v36 = vld [vmem:[#allocation2 + $0xfa] ss:$0 sm:$0xff] }
0x1a9b   :  { %v3389_v1 = vsel %vm139_vm3, %v3388_v39, 0.0  ;;  %9510 = vst [vmem:[#allocation7_spill] sm:$0xff] %v9078_v36 }
0x1a9c   :  { %3390 = vadd.xlane.f32.xlu1 %v3389_v1 }
0x1b27   :  { %v3386_v45 = vpop.xlane.xlu0 %3385 }
0x1b28   :  { %v3387_v49 = vmul.f32 0.03125, %v3386_v45 }
0x1b29   :  { %v3391_v55 = vpop.xlane.xlu1 %3390 }
0x1b2a   :  { %v3393_v58 = vmul.f32 %v3387_v49, %v3387_v49  ;;  %v3392_v60 = vmul.f32 0.03125, %v3391_v55  ;;  %v3395_v28 = vsub.f32 %v3383_v33, %v3387_v49  ;;  %v9083_v55 = vld [vmem:[#allocation2 + $0xfb] ss:$0 sm:$0xff] }
0x1b2c   :  { %v3394_v10 = vsub.f32 %v3392_v60, %v3393_v58 }
0x1b2e   :  { %v3396_v13 = vadd.f32 1e-05, %v3394_v10 }
0x1b30   :  { %8413 = vrsqrt.f32 %v3396_v13 }
0x1b3a   :  { %v8414_v57 = vpop.eup %8413 }
0x1b3b   :  { %v3398_v43 = vmul.f32 %v8414_v57, %v3395_v28 }
0x1b3d   :  { %v3399_v5 = vmul.f32 %v9065_v15, %v3398_v43 }
0x1b3f   :  { %v3400_v26 = vadd.f32 %v9068_v32, %v3399_v5 }
0x1b41   :  { %7764 = vmatmul.mubr.msk.f32.vlgmr.msra.gmra.mrb[40].mxu0 %vm139_vm3, %v3400_v26 }
0x1b42   :  { %8191 = vmatpush3.bf16.msra.mxu0 %v8724_v31  ;;  %7785 = vmatprep.mubr.msk.f32.mxu0 %vm8534_vm0, %v9502_v0 }
0x1b43   :  { %8192 = vmatprep.subr.bf16.mxu0 %v9509_v35 }
0x1b46   :  { %8194 = vmatpush3.bf16.msra.mxu0 %v8728_v34 }
0x1b47   :  { %7788 = vmatprep.subr.mxu0 %v9502_v0 }
0x1c14   :  { %v3470_v33 = vpop.f32.mrb[40].mxu0 }
0x1c15   :  { %v3471_v39 = vadd.f32 %v9078_v36, %v3470_v33  ;;  %v7765_v1 = vpop.f32.mrb[41].mxu0 }
0x1c17   :  { %v3474_v45 = vmax.f32 %v3471_v39, 0.0 }
0x1c19   :  { %7775 = vmatmul.mubr.f32.vlgmr.msra.gmra.mrb[38].mxu1 %v3474_v45 }
0x1c1a   :  { %7800 = vmatprep.mubr.msk.f32.mxu1 %vm8534_vm0, %v9502_v0 }
0x1cec   :  { %v3541_v49 = vpop.f32.mrb[38].mxu1 }
0x1ced   :  { %v3542_v58 = vadd.f32 %v9083_v55, %v3541_v49  ;;  %v7776_v60 = vpop.f32.mrb[39].mxu1 }
0x1cee   :  { %v9511_v60 = vmov 0.0  }
0x1cef   :  { %v3545_v10 = vadd.f32 %v3542_v58, %v3400_v26 }
0x1cf1   :  { %v3546_v13 = vsel %vm139_vm3, %v3545_v10, 0.0  ;;  %v3550_v28 = vmul.f32 %v3545_v10, %v3545_v10 }
0x1cf2   :  { %3547 = vadd.xlane.f32.xlu0 %v3546_v13 }
0x1cf3   :  { %v3551_v57 = vsel %vm139_vm3, %v3550_v28, 0.0 }
0x1cf6   :  { %3552 = vadd.xlane.f32.xlu0 %v3551_v57 }
0x1d7f   :  { %v3548_v43 = vpop.xlane.xlu0 %3547 }
0x1d80   :  { %v3549_v5 = vmul.f32 0.03125, %v3548_v43 }
0x1d82   :  { %v3555_v39 = vmul.f32 %v3549_v5, %v3549_v5  ;;  %v3557_v36 = vsub.f32 %v3545_v10, %v3549_v5 }
0x1d83   :  { %v3553_v33 = vpop.xlane.xlu0 %3552 }
0x1d84   :  { %v3554_v1 = vmul.f32 0.03125, %v3553_v33 }
0x1d86   :  { %v3556_v45 = vsub.f32 %v3554_v1, %v3555_v39 }
0x1d88   :  { %v3558_v0 = vadd.f32 1e-05, %v3556_v45 }
0x1d8a   :  { %8415 = vrsqrt.f32 %v3558_v0 }
0x1d94   :  { %v8416_v34 = vpop.eup %8415 }
0x1d95   :  { %v3560_v49 = vmul.f32 %v8416_v34, %v3557_v36 }
0x1d97   :  { %v3561_v26 = vmul.f32 %v8732_v44, %v3560_v49 }
0x1d99   :  { %v9090_v58 = vadd.f32 %v8734_v46, %v3561_v26 }
0x1d9b   :  { %7786 = vmatmul.mubr.msk.f32.vlgmr.msra.gmra.mrb[42].mxu0 %vm139_vm3, %v9090_v58 }
0x1d9c   :  { %7790 = vmatprep.mubr.msk.f32.mxu0 %vm8534_vm0, %v9511_v60 }
0x1e6e   :  { %v3632_v13 = vpop.f32.mrb[42].mxu0 }
0x1e6f   :  { %v9097_v28 = vadd.f32 %v8744_v50, %v3632_v13  ;;  %v7787_v57 = vpop.f32.mrb[43].mxu0 }
0x1e71   :  { %3802 = vrot.lane.b32.xlu0 %v9097_v28, %s8539_s27  ;;  %3637 = vrot.lane.b32.xlu1 %v9097_v28, %s8537_s25 }
0x1e75   :  { %3965 = vrot.lane.b32.xlu0 %v9097_v28, %s8541_s29  ;;  %3800 = vrot.lane.b32.xlu1 %v9097_v28, %s8536_s24 }
0x1e79   :  { %4130 = vrot.lane.b32.xlu0 %v9097_v28, %s8542_s30  ;;  %3967 = vrot.lane.b32.xlu1 %v9097_v28, %s8538_s26 }
0x1e7d   :  { %4132 = vrot.lane.b32.xlu1 %v9097_v28, %s8540_s28 }
0x1ee3   :  { %v3803_v0 = vpop.permute.xlu0 %3802  ;;  %v3638_v34 = vpop.permute.xlu1 %3637 }
0x1ee4   :  { %7789 = vmatpush3.xpose.msk.msra.mxu0 %vm216_vm4, %v3638_v34  ;;  %7799 = vmatpush3.xpose.msk.msra.mxu1 %vm216_vm4, %v3803_v0 }
0x1ee5   :  { %7808 = vmatprep.subr.mxu1 %v9511_v60  ;;  %7793 = vmatprep.subr.mxu0 %v9511_v60 }
0x1ee7   :  { %7791 = vmatmul.mubr.msk.f32.vlgmr.msra.gmra.mrb[44].mxu0 %vm216_vm4, %v9097_v28  ;;  %v3801_v44 = vpop.permute.xlu1 %3800  ;;  %v3966_v50 = vpop.permute.xlu0 %3965 }
0x1ee8   :  { %7801 = vmatmul.mubr.msk.f32.vlgmr.msra.gmra.mrb[40].mxu1 %vm216_vm4, %v3801_v44  ;;  %7795 = vmatprep.mubr.msk.f32.mxu0 %vm8534_vm0, %v9511_v60 }
0x1ee9   :  { %7810 = vmatprep.mubr.msk.f32.mxu1 %vm8534_vm0, %v9511_v60 }
0x1eeb   :  { %v3968_v46 = vpop.permute.xlu1 %3967  ;;  %v4131_v10 = vpop.permute.xlu0 %4130 }
0x1eec   :  { %7809 = vmatpush3.xpose.msk.msra.mxu1 %vm216_vm4, %v3968_v46 }
0x1eed   :  { %7818 = vmatprep.subr.mxu1 %v9511_v60 }
0x1eef   :  { %7811 = vmatmul.mubr.msk.f32.vlgmr.msra.gmra.mrb[42].mxu1 %vm216_vm4, %v3966_v50  ;;  %v4133_v36 = vpop.permute.xlu1 %4132 }
0x1ef0   :  { %7819 = vmatpush3.xpose.msk.msra.mxu1 %vm216_vm4, %v4133_v36  ;;  %7820 = vmatprep.mubr.msk.f32.mxu1 %vm8534_vm0, %v9511_v60 }
0x1ef1   :  { %8195 = vmatprep.subr.bf16.mxu1 %v9509_v35 }
0x1ef3   :  { %7821 = vmatmul.mubr.msk.f32.vlgmr.msra.gmra.mrb[44].mxu1 %vm216_vm4, %v4131_v10 }
0x1ef4   :  { %8197 = vmatpush3.bf16.msra.mxu1 %v8816_v7  ;;  %7836 = vmatprep.mubr.msk.f32.mxu1 %vm8534_vm0, %v9511_v60 }
0x1ef5   :  { %8198 = vmatprep.subr.bf16.mxu1 %v9509_v35 }
0x1ef8   :  { %8200 = vmatpush3.bf16.msra.mxu1 %v8821_v17 }
0x1ef9   :  { %8207 = vmatprep.subr.bf16.mxu1 %v9509_v35 }
0x1fba   :  { %v3709_v43 = vpop.f32.mrb[44].mxu0 }
0x1fbb   :  { %v7792_v5 = vpop.f32.mrb[45].mxu0  ;;  %v3874_v33 = vpop.f32.mrb[40].mxu1  ;;  %v3713_v39 = vsel %vm216_vm4, %v3709_v43, -inf }
0x1fbc   :  { %3714 = vmax.xlane.f32.xlu1 %v3713_v39  ;;  %v7802_v1 = vpop.f32.mrb[41].mxu1  ;;  %v3878_v45 = vsel %vm216_vm4, %v3874_v33, -inf }
0x1fbd   :  { %3879 = vmax.xlane.f32.xlu0 %v3878_v45 }
0x1fc2   :  { %v4039_v49 = vpop.f32.mrb[42].mxu1 }
0x1fc3   :  { %v7812_v26 = vpop.f32.mrb[43].mxu1  ;;  %v4043_v13 = vsel %vm216_vm4, %v4039_v49, -inf }
0x1fc4   :  { %4044 = vmax.xlane.f32.xlu0 %v4043_v13 }
0x1fc6   :  { %v4204_v57 = vpop.f32.mrb[44].mxu1 }
0x1fc7   :  { %v7822_v0 = vpop.f32.mrb[45].mxu1  ;;  %v4208_v34 = vsel %vm216_vm4, %v4204_v57, -inf }
0x1fc8   :  { %4209 = vmax.xlane.f32.xlu1 %v4208_v34 }
0x1fd9   :  { %3889 = vrot.lane.b32.xlu1 %v9097_v28, %s8543_s3 }
0x2049   :  { %v3715_v44 = vpop.xlane.xlu1 %3714 }
0x204a   :  { %v3716_v46 = vsub.f32 %v3709_v43, %v3715_v44  ;;  %v3880_v50 = vpop.xlane.xlu0 %3879 }
0x204b   :  { %v3881_v36 = vsub.f32 %v3874_v33, %v3880_v50 }
0x204c   :  { %v3717_v10 = vmul.f32 1.442695, %v3716_v46 }
0x204d   :  { %v3882_v5 = vmul.f32 1.442695, %v3881_v36 }
0x204e   :  { %8417 = vpow2.f32 %v3717_v10 }
0x204f   :  { %8419 = vpow2.f32 %v3882_v5 }
0x2051   :  { %v4045_v33 = vpop.xlane.xlu0 %4044 }
0x2055   :  { %v4210_v39 = vpop.xlane.xlu1 %4209 }
0x2056   :  { %v4211_v1 = vsub.f32 %v4204_v57, %v4210_v39  ;;  %v4046_v57 = vsub.f32 %v4039_v49, %v4045_v33 }
0x2058   :  { %v8418_v45 = vpop.eup %8417  ;;  %v4212_v26 = vmul.f32 1.442695, %v4211_v1  ;;  %v4047_v44 = vmul.f32 1.442695, %v4046_v57 }
0x2059   :  { %v8420_v13 = vpop.eup %8419  ;;  %v3719_v0 = vsel %vm216_vm4, %v8418_v45, 0.0  ;;  %v3890_v36 = vpop.permute.xlu1 %3889 }
0x205a   :  { %8421 = vpow2.f32 %v4212_v26  ;;  %3720 = vadd.xlane.f32.xlu0 %v3719_v0  ;;  %v3884_v34 = vsel %vm216_vm4, %v8420_v13, 0.0 }
0x205b   :  { %3885 = vadd.xlane.f32.xlu1 %v3884_v34  ;;  %8423 = vpow2.f32 %v4047_v44 }
0x2064   :  { %v8422_v17 = vpop.eup %8421 }
0x2065   :  { %v4214_v43 = vsel %vm216_vm4, %v8422_v17, 0.0  ;;  %v8424_v46 = vpop.eup %8423 }
0x2066   :  { %4215 = vadd.xlane.f32.xlu1 %v4214_v43  ;;  %v4049_v50 = vsel %vm216_vm4, %v8424_v46, 0.0 }
0x2070   :  { %3724 = vrot.lane.b32.xlu0 %v9097_v28, %s8544_s4 }
0x2077   :  { %4054 = vrot.lane.b32.xlu1 %v9097_v28, %s8545_s5 }
0x208f   :  { %4050 = vadd.xlane.f32.xlu0 %v4049_v50 }
0x20a5   :  { %4219 = vrot.lane.b32.xlu0 %v9097_v28, %s8546_s6 }
0x20e7   :  { %v3721_v10 = vpop.xlane.xlu0 %3720 }
0x20e8   :  { %8425 = vrcp.f32 %v3721_v10  ;;  %v3886_v5 = vpop.xlane.xlu1 %3885 }
0x20e9   :  { %8427 = vrcp.f32 %v3886_v5 }
0x20eb   :  { %v3725_v39 = vpop.permute.xlu0 %3724 }
0x20ec   :  { %7794 = vmatpush3.msra.mxu0 %v3725_v39 }
0x20ed   :  { %7803 = vmatprep.subr.mxu0 %v9511_v60 }
0x20f2   :  { %v8426_v1 = vpop.eup %8425 }
0x20f3   :  { %v3723_v49 = vmul.f32 %v8426_v1, %v8418_v45  ;;  %v4216_v26 = vpop.xlane.xlu1 %4215  ;;  %v8428_v0 = vpop.eup %8427 }
0x20f4   :  { %v3888_v28 = vmul.f32 %v8428_v0, %v8420_v13 }
0x20f5   :  { %7796 = vmatmul.mubr.msk.f32.vlgmr.msra.gmra.mrb[46].mxu0 %vm216_vm4, %v3723_v49 }
0x20f6   :  { %7804 = vmatpush3.msra.mxu0 %v3890_v36  ;;  %7805 = vmatprep.mubr.msk.f32.mxu0 %vm8534_vm0, %v9511_v60 }
0x20f7   :  { %v4055_v34 = vpop.permute.xlu1 %4054  ;;  %7813 = vmatprep.subr.mxu0 %v9511_v60 }
0x20f9   :  { %7806 = vmatmul.mubr.msk.f32.vlgmr.msra.gmra.mrb[48].mxu0 %vm216_vm4, %v3888_v28 }
0x20fa   :  { %7814 = vmatpush3.msra.mxu0 %v4055_v34  ;;  %7815 = vmatprep.mubr.msk.f32.mxu0 %vm8534_vm0, %v9511_v60 }
0x20fb   :  { %7823 = vmatprep.subr.mxu0 %v9511_v60 }
0x211c   :  { %v4051_v45 = vpop.xlane.xlu0 %4050 }
0x211d   :  { %8429 = vrcp.f32 %v4051_v45 }
0x211e   :  { %8431 = vrcp.f32 %v4216_v26 }
0x2120   :  { %v4220_v44 = vpop.permute.xlu0 %4219 }
0x2127   :  { %v8430_v43 = vpop.eup %8429 }
0x2128   :  { %v4053_v33 = vmul.f32 %v8430_v43, %v8424_v46  ;;  %v8432_v57 = vpop.eup %8431 }
0x2129   :  { %v4218_v13 = vmul.f32 %v8432_v57, %v8422_v17 }
0x212a   :  { %7816 = vmatmul.mubr.msk.f32.vlgmr.msra.gmra.mrb[50].mxu0 %vm216_vm4, %v4053_v33 }
0x212b   :  { %7824 = vmatpush3.msra.mxu0 %v4220_v44  ;;  %7825 = vmatprep.mubr.msk.f32.mxu0 %vm8534_vm0, %v9511_v60 }
0x212c   :  { %8201 = vmatprep.subr.bf16.mxu0 %v9509_v35 }
0x212e   :  { %7826 = vmatmul.mubr.msk.f32.vlgmr.msra.gmra.mrb[52].mxu0 %vm216_vm4, %v4218_v13 }
0x212f   :  { %8203 = vmatpush3.bf16.msra.mxu0 %v8839_v42  ;;  %7847 = vmatprep.mubr.msk.f32.mxu0 %vm8534_vm0, %v9511_v60 }
0x2130   :  { %8204 = vmatprep.subr.bf16.mxu0 %v9509_v35 }
0x2133   :  { %8206 = vmatpush3.bf16.msra.mxu0 %v8843_v47 }
0x2134   :  { %8213 = vmatprep.subr.bf16.mxu0 %v9509_v35 }
0x21c8   :  { %v3796_v46 = vpop.f32.mrb[46].mxu0 }
0x21c9   :  { %v7797_v50 = vpop.f32.mrb[47].mxu0 }
0x21cc   :  { %v3961_v36 = vpop.f32.mrb[48].mxu0 }
0x21cd   :  { %4296 = vrot.lane.b32.xlu1 %v3961_v36, %s8532_s20  ;;  %v7807_v17 = vpop.f32.mrb[49].mxu0 }
0x21fd   :  { %v4126_v10 = vpop.f32.mrb[50].mxu0 }
0x21fe   :  { %4300 = vrot.lane.b32.xlu0 %v4126_v10, %s8547_s7  ;;  %v7817_v5 = vpop.f32.mrb[51].mxu0 }
0x2201   :  { %v4291_v39 = vpop.f32.mrb[52].mxu0 }
0x2202   :  { %4304 = vrot.lane.b32.xlu1 %v4291_v39, %s8548_s8  ;;  %v7827_v1 = vpop.f32.mrb[53].mxu0 }
0x223f   :  { %v4297_v49 = vpop.permute.xlu1 %4296 }
0x2240   :  { %v4307_v0 = vsel %vm216_vm4, %v3796_v46, %v4297_v49 }
0x2270   :  { %v4301_v26 = vpop.permute.xlu0 %4300 }
0x2271   :  { %v4308_v28 = vsel %vm886_vm5, %v4307_v0, %v4301_v26 }
0x2274   :  { %v4305_v34 = vpop.permute.xlu1 %4304 }
0x2275   :  { %v4309_v45 = vsel %vm888_vm6, %v4308_v28, %v4305_v34 }
0x2276   :  { %7837 = vmatmul.mubr.msk.f32.vlgmr.msra.gmra.mrb[46].mxu1 %vm139_vm3, %v4309_v45 }
0x2277   :  { %8209 = vmatpush3.bf16.xpose.msra.mxu1 %v8847_v54  ;;  %7858 = vmatprep.mubr.msk.f32.mxu1 %vm8534_vm0, %v9511_v60 }
0x2278   :  { %8210 = vmatprep.subr.bf16.mxu1 %v9509_v35 }
0x227f   :  { %8212 = vmatpush3.bf16.xpose.msra.mxu1 %v8851_v52 }
0x2280   :  { %7891 = vmatprep.subr.mxu1 %v9511_v60 }
0x2349   :  { %v4379_v43 = vpop.f32.mrb[46].mxu1 }
0x234a   :  { %v4380_v33 = vadd.f32 %v8833_v30, %v4379_v43  ;;  %v7838_v57 = vpop.f32.mrb[47].mxu1 }
0x234c   :  { %v4383_v44 = vadd.f32 %v4380_v33, %v9090_v58 }
0x234e   :  { %v4384_v13 = vsel %vm139_vm3, %v4383_v44, 0.0  ;;  %v4388_v46 = vmul.f32 %v4383_v44, %v4383_v44 }
0x234f   :  { %4385 = vadd.xlane.f32.xlu0 %v4384_v13 }
0x2350   :  { %v4389_v50 = vsel %vm139_vm3, %v4388_v46, 0.0 }
0x2351   :  { %4390 = vadd.xlane.f32.xlu1 %v4389_v50 }
0x23dc   :  { %v4386_v36 = vpop.xlane.xlu0 %4385 }
0x23dd   :  { %v4387_v17 = vmul.f32 0.03125, %v4386_v36  ;;  %v8322_v36 = vpack.i.bf16 %v8899_v14, %v8897_v12 }
0x23de   :  { %v4391_v10 = vpop.xlane.xlu1 %4390 }
0x23df   :  { %v4393_v5 = vmul.f32 %v4387_v17, %v4387_v17  ;;  %v4392_v39 = vmul.f32 0.03125, %v4391_v10  ;;  %v4395_v26 = vsub.f32 %v4383_v44, %v4387_v17  ;;  %v8332_v17 = vpack.i.bf16 %v8917_v24, %v8915_v22 }
0x23e1   :  { %v4394_v1 = vsub.f32 %v4392_v39, %v4393_v5 }
0x23e3   :  { %v4396_v49 = vadd.f32 1e-05, %v4394_v1 }
0x23e5   :  { %8433 = vrsqrt.f32 %v4396_v49 }
0x23ef   :  { %v8434_v30 = vpop.eup %8433 }
0x23f0   :  { %v4398_v0 = vmul.f32 %v8434_v30, %v4395_v26 }
0x23f2   :  { %v4399_v58 = vmul.f32 %v8855_v8, %v4398_v0 }
0x23f4   :  { %v4400_v28 = vadd.f32 %v8857_v11, %v4399_v58 }
0x23f6   :  { %7848 = vmatmul.mubr.msk.f32.vlgmr.msra.gmra.mrb[54].mxu0 %vm139_vm3, %v4400_v28 }
0x23f7   :  { %8215 = vmatpush3.bf16.msra.mxu0 %v8876_v37  ;;  %7869 = vmatprep.mubr.msk.f32.mxu0 %vm8534_vm0, %v9511_v60 }
0x23f8   :  { %8216 = vmatprep.subr.bf16.mxu0 %v9509_v35 }
0x23fb   :  { %8218 = vmatpush3.bf16.msra.mxu0 %v8879_v40 }
0x23fc   :  { %8219 = vmatprep.subr.bf16.mxu0 %v9509_v35 }
0x24c9   :  { %v4470_v34 = vpop.f32.mrb[54].mxu0 }
0x24ca   :  { %v4471_v45 = vadd.f32 %v8864_v16, %v4470_v34  ;;  %v7849_v43 = vpop.f32.mrb[55].mxu0  ;;  %v8317_v16 = vpack.i.bf16 %v8891_v3, %v8889_v63 }
0x24cc   :  { %v4474_v8 = vmax.f32 %v4471_v45, 0.0  ;;  %8318 = vrot.lane.b32.xlu1 %v8317_v16, %s8536_s24 }
0x24ce   :  { %7859 = vmatmul.mubr.f32.vlgmr.msra.gmra.mrb[48].mxu1 %v4474_v8 }
0x24cf   :  { %7893 = vmatprep.mubr.msk.f32.mxu1 %vm8534_vm0, %v9511_v60 }
0x25a1   :  { %v4541_v11 = vpop.f32.mrb[48].mxu1 }
0x25a2   :  { %v4542_v33 = vadd.f32 %v8869_v23, %v4541_v11  ;;  %v7860_v57 = vpop.f32.mrb[49].mxu1  ;;  %v8327_v23 = vpack.i.bf16 %v8909_v21, %v8907_v19  ;;  %v8319_v19 = vpop.permute.xlu1 %8318 }
0x25a3   :  { %v8321_v26 = vunpack.i.h.bf16 %v8319_v19  ;;  %v8320_v30 = vunpack.i.l.bf16 %v8319_v19 }
0x25a4   :  { %v4545_v44 = vadd.f32 %v4542_v33, %v4400_v28  ;;  %8328 = vrot.lane.b32.xlu1 %v8327_v23, %s8536_s24 }
0x25a5   :  { %v8220_v58 = vpack.c.bf16 %v8321_v26, %v8320_v30 }
0x25a6   :  { %v4546_v13 = vsel %vm139_vm3, %v4545_v44, 0.0  ;;  %v4550_v46 = vmul.f32 %v4545_v44, %v4545_v44 }
0x25a7   :  { %4547 = vadd.xlane.f32.xlu0 %v4546_v13 }
0x25a8   :  { %v4551_v50 = vsel %vm139_vm3, %v4550_v46, 0.0  ;;  %8333 = vrot.lane.b32.xlu1 %v8332_v17, %s8536_s24 }
0x25ab   :  { %4552 = vadd.xlane.f32.xlu0 %v4551_v50 }
0x25c1   :  { %8323 = vrot.lane.b32.xlu0 %v8322_v36, %s8536_s24  ;;  %v4748_v36 = vld [vmem:[#allocation2 + $0x10] sm:$0xff] }
0x25c2   :  { %7892 = vmatpush3.msra.mxu1 %v4748_v36 }
0x25c3   :  { %7896 = vmatprep.subr.mxu1 %v9511_v60 }
0x25c5   :  { %4671 = vrot.lane.b32.xlu0 %v8930_v38, %s8536_s24 }
0x2616   :  { %v8329_v0 = vpop.permute.xlu1 %8328 }
0x2617   :  { %v8331_v8 = vunpack.i.h.bf16 %v8329_v0  ;;  %v8330_v11 = vunpack.i.l.bf16 %v8329_v0 }
0x2619   :  { %v8226_v33 = vpack.c.bf16 %v8331_v8, %v8330_v11 }
0x2634   :  { %v4548_v63 = vpop.xlane.xlu0 %4547 }
0x2635   :  { %v4549_v3 = vmul.f32 0.03125, %v4548_v63 }
0x2637   :  { %v4555_v14 = vmul.f32 %v4549_v3, %v4549_v3  ;;  %v4557_v1 = vsub.f32 %v4545_v44, %v4549_v3 }
0x2638   :  { %v4553_v12 = vpop.xlane.xlu0 %4552 }
0x2639   :  { %v4554_v10 = vmul.f32 0.03125, %v4553_v12 }
0x263b   :  { %v4556_v5 = vsub.f32 %v4554_v10, %v4555_v14 }
0x263c   :  { %v8324_v24 = vpop.permute.xlu0 %8323 }
0x263d   :  { %v4558_v39 = vadd.f32 1e-05, %v4556_v5  ;;  %v8326_v28 = vunpack.i.h.bf16 %v8324_v24  ;;  %v8325_v34 = vunpack.i.l.bf16 %v8324_v24  ;;  %v7179_v5 = vld [vmem:[#allocation2 + $0x2] ss:$0 sm:$0xff] }
0x263f   :  { %8435 = vrsqrt.f32 %v4558_v39  ;;  %v8223_v43 = vpack.c.bf16 %v8326_v28, %v8325_v34 }
0x2640   :  { %v4672_v23 = vpop.permute.xlu0 %4671 }
0x2649   :  { %v8436_v21 = vpop.eup %8435 }
0x264a   :  { %v4560_v49 = vmul.f32 %v8436_v21, %v4557_v1 }
0x264c   :  { %v4561_v22 = vmul.f32 %v8884_v59, %v4560_v49  ;;  %v8334_v59 = vpop.permute.xlu1 %8333 }
0x264d   :  { %v8335_v57 = vunpack.i.l.bf16 %v8334_v59 }
0x264e   :  { %v4562_v38 = vadd.f32 %v8886_v61, %v4561_v22  ;;  %v8336_v61 = vunpack.i.h.bf16 %v8334_v59 }
0x2650   :  { %v4563_v45 = vadd.f32 %v4562_v38, %v8954_v62  ;;  %v8229_v44 = vpack.c.bf16 %v8336_v61, %v8335_v57  ;;  %v8485_v62 = vld [vmem:[#allocation2 + $0x8] sm:$0x3f] }
0x2651   :  { %4822 = vrot.lane.b32.xlu1 %v8485_v62, %s8549_s0 }
0x2652   :  { %7870 = vmatmul.mubr.msk.f32.vlgmr.msra.gmra.mrb[56].mxu0 %vm139_vm3, %v4563_v45 }
0x2653   :  { %8221 = vmatpush3.bf16.msra.mxu0 %v8220_v58  ;;  %7888 = vmatprep.mubr.msk.f32.mxu0 %vm8534_vm0, %v9511_v60 }
0x2654   :  { %8222 = vmatprep.subr.bf16.mxu0 %v9509_v35 }
0x2657   :  { %8224 = vmatpush3.bf16.msra.mxu0 %v8223_v43 }
0x2658   :  { %8225 = vmatprep.subr.bf16.mxu0 %v9509_v35 }
0x265b   :  { %8227 = vmatpush3.bf16.msra.mxu0 %v8226_v33 }
0x265c   :  { %8228 = vmatprep.subr.bf16.mxu0 %v9509_v35 }
0x265f   :  { %8230 = vmatpush3.bf16.msra.mxu0 %v8229_v44 }
0x2660   :  { %7912 = vmatprep.subr.mxu0 %v9511_v60 }
0x26c3   :  { %v4823_v14 = vpop.permute.xlu1 %4822 }
0x2725   :  { %v4633_v13 = vpop.f32.mrb[56].mxu0 }
0x2726   :  { %v4634_v46 = vadd.f32 %v8924_v29, %v4633_v13  ;;  %v7871_v50 = vpop.f32.mrb[57].mxu0 }
0x2728   :  { %v4637_v16 = vmax.f32 %v4634_v46, 0.0 }
0x272a   :  { %7889 = vmatmul.mubr.msk.f32.vlgmr.msra.gmra.mrb[58].mxu0 %vm2330_vm7, %v4637_v16 }
0x272b   :  { %7914 = vmatprep.mubr.msk.f32.mxu0 %vm8534_vm0, %v9511_v60 }
0x27fd   :  { %v4743_v17 = vpop.f32.mrb[58].mxu0 }
0x27fe   :  { %v4744_v63 = vadd.f32 %v4743_v17, %v4672_v23  ;;  %v7890_v3 = vpop.f32.mrb[59].mxu0 }
0x2800   :  { %v9236_v12 = vadd.f32 %v4744_v63, %v8933_v41 }
0x2802   :  { %7894 = vmatmul.mubr.msk.f32.vlgmr.msra.gmra.mrb[50].mxu1 %vm216_vm4, %v9236_v12 }
0x2803   :  { %7897 = vmatpush3.msk.msra.mxu1 %vm51_vm1, %v4823_v14  ;;  %7898 = vmatprep.mubr.msk.f32.mxu1 %vm8534_vm0, %v9511_v60 }
0x2804   :  { %8231 = vmatprep.subr.bf16.mxu1 %v9509_v35 }
0x2806   :  { %7899 = vmatmul.mubr.msk.f32.vlgmr.msra.gmra.mrb[52].mxu1 %vm47_vm2, %v8944_v2 }
0x2807   :  { %8233 = vmatpush3.bf16.msra.mxu1 %v8592_v6  ;;  %7909 = vmatprep.mubr.msk.f32.mxu1 %vm8534_vm0, %v9511_v60 }
0x2808   :  { %8234 = vmatprep.subr.bf16.mxu1 %v9509_v35 }
0x280b   :  { %8236 = vmatpush3.bf16.msra.mxu1 %v8599_v9 }
0x280c   :  { %7922 = vmatprep.subr.mxu1 %v9511_v60 }
0x28d5   :  { %v4818_v29 = vpop.f32.mrb[50].mxu1 }
0x28d6   :  { %v7895_v41 = vpop.f32.mrb[51].mxu1 }
0x28d9   :  { %v4892_v10 = vpop.f32.mrb[52].mxu1 }
0x28da   :  { %v4893_v39 = vadd.f32 %v4892_v10, %v4818_v29  ;;  %v7900_v1 = vpop.f32.mrb[53].mxu1 }
0x28dc   :  { %v9252_v19 = vadd.f32 %v7179_v5, %v4893_v39 }
0x28de   :  { %v9256_v6 = vadd.f32 %v8956_v4, %v9252_v19 }
0x28e0   :  { %7910 = vmatmul.mubr.msk.f32.vlgmr.msra.gmra.mrb[54].mxu1 %vm139_vm3, %v9256_v6 }
0x28e1   :  { %7924 = vmatprep.mubr.msk.f32.mxu1 %vm8534_vm0, %v9511_v60 }
0x29b3   :  { %v4972_v9 = vpop.f32.mrb[54].mxu1 }
0x29b4   :  { %v9263_v2 = vadd.f32 %v8966_v18, %v4972_v9  ;;  %v7911_v21 = vpop.f32.mrb[55].mxu1 }
0x29b6   :  { %5142 = vrot.lane.b32.xlu1 %v9263_v2, %s8539_s27  ;;  %4977 = vrot.lane.b32.xlu0 %v9263_v2, %s8537_s25 }
0x29ba   :  { %5307 = vrot.lane.b32.xlu1 %v9263_v2, %s8538_s26  ;;  %5140 = vrot.lane.b32.xlu0 %v9263_v2, %s8536_s24 }
0x29be   :  { %5472 = vrot.lane.b32.xlu1 %v9263_v2, %s8540_s28  ;;  %5305 = vrot.lane.b32.xlu0 %v9263_v2, %s8541_s29 }
0x29c2   :  { %5470 = vrot.lane.b32.xlu0 %v9263_v2, %s8542_s30 }
0x2a28   :  { %v5143_v4 = vpop.permute.xlu1 %5142  ;;  %v4978_v18 = vpop.permute.xlu0 %4977 }
0x2a29   :  { %7913 = vmatpush3.xpose.msk.msra.mxu0 %vm216_vm4, %v4978_v18  ;;  %7923 = vmatpush3.xpose.msk.msra.mxu1 %vm216_vm4, %v5143_v4 }
0x2a2a   :  { %7932 = vmatprep.subr.mxu1 %v9511_v60  ;;  %7917 = vmatprep.subr.mxu0 %v9511_v60 }
0x2a2c   :  { %v5308_v49 = vpop.permute.xlu1 %5307  ;;  %7915 = vmatmul.mubr.msk.f32.vlgmr.msra.gmra.mrb[60].mxu0 %vm216_vm4, %v9263_v2  ;;  %v5141_v26 = vpop.permute.xlu0 %5140 }
0x2a2d   :  { %7925 = vmatmul.mubr.msk.f32.vlgmr.msra.gmra.mrb[56].mxu1 %vm216_vm4, %v5141_v26  ;;  %7919 = vmatprep.mubr.msk.f32.mxu0 %vm8534_vm0, %v9511_v60 }
0x2a2e   :  { %7933 = vmatpush3.xpose.msk.msra.mxu1 %vm216_vm4, %v5308_v49  ;;  %7934 = vmatprep.mubr.msk.f32.mxu1 %vm8534_vm0, %v9511_v60 }
0x2a2f   :  { %7942 = vmatprep.subr.mxu1 %v9511_v60 }
0x2a30   :  { %v5473_v30 = vpop.permute.xlu1 %5472  ;;  %v5306_v22 = vpop.permute.xlu0 %5305 }
0x2a31   :  { %7935 = vmatmul.mubr.msk.f32.vlgmr.msra.gmra.mrb[58].mxu1 %vm216_vm4, %v5306_v22 }
0x2a32   :  { %7943 = vmatpush3.xpose.msk.msra.mxu1 %vm216_vm4, %v5473_v30  ;;  %7944 = vmatprep.mubr.msk.f32.mxu1 %vm8534_vm0, %v9511_v60 }
0x2a33   :  { %8237 = vmatprep.subr.bf16.mxu1 %v9509_v35 }
0x2a34   :  { %v5471_v24 = vpop.permute.xlu0 %5470 }
0x2a35   :  { %7945 = vmatmul.mubr.msk.f32.vlgmr.msra.gmra.mrb[60].mxu1 %vm216_vm4, %v5471_v24 }
0x2a36   :  { %8239 = vmatpush3.bf16.msra.mxu1 %v8681_v20  ;;  %7960 = vmatprep.mubr.msk.f32.mxu1 %vm8534_vm0, %v9511_v60 }
0x2a37   :  { %8240 = vmatprep.subr.bf16.mxu1 %v9509_v35 }
0x2a3a   :  { %8242 = vmatpush3.bf16.msra.mxu1 %v8686_v27 }
0x2a3b   :  { %8249 = vmatprep.subr.bf16.mxu1 %v9509_v35 }
0x2aff   :  { %v5049_v38 = vpop.f32.mrb[60].mxu0 }
0x2b00   :  { %v7916_v0 = vpop.f32.mrb[61].mxu0  ;;  %v5214_v58 = vpop.f32.mrb[56].mxu1  ;;  %v5053_v28 = vsel %vm216_vm4, %v5049_v38, -inf }
0x2b01   :  { %5054 = vmax.xlane.f32.xlu1 %v5053_v28  ;;  %v7926_v34 = vpop.f32.mrb[57].mxu1  ;;  %v5218_v45 = vsel %vm216_vm4, %v5214_v58, -inf }
0x2b02   :  { %5219 = vmax.xlane.f32.xlu0 %v5218_v45 }
0x2b04   :  { %v5379_v20 = vpop.f32.mrb[58].mxu1 }
0x2b05   :  { %v7936_v43 = vpop.f32.mrb[59].mxu1  ;;  %v5383_v8 = vsel %vm216_vm4, %v5379_v20, -inf }
0x2b06   :  { %5384 = vmax.xlane.f32.xlu0 %v5383_v8 }
0x2b08   :  { %v5544_v11 = vpop.f32.mrb[60].mxu1 }
0x2b09   :  { %v7946_v59 = vpop.f32.mrb[61].mxu1  ;;  %v5548_v27 = vsel %vm216_vm4, %v5544_v11, -inf }
0x2b0a   :  { %5549 = vmax.xlane.f32.xlu1 %v5548_v27 }
0x2b1b   :  { %5229 = vrot.lane.b32.xlu1 %v9263_v2, %s8543_s3 }
0x2b8e   :  { %v5055_v33 = vpop.xlane.xlu1 %5054 }
0x2b8f   :  { %v5056_v61 = vsub.f32 %v5049_v38, %v5055_v33  ;;  %v5220_v57 = vpop.xlane.xlu0 %5219 }
0x2b90   :  { %v5221_v44 = vsub.f32 %v5214_v58, %v5220_v57 }
0x2b91   :  { %v5057_v62 = vmul.f32 1.442695, %v5056_v61 }
0x2b92   :  { %v5222_v13 = vmul.f32 1.442695, %v5221_v44 }
0x2b93   :  { %8437 = vpow2.f32 %v5057_v62  ;;  %v5385_v29 = vpop.xlane.xlu0 %5384 }
0x2b94   :  { %8439 = vpow2.f32 %v5222_v13  ;;  %v5386_v41 = vsub.f32 %v5379_v20, %v5385_v29 }
0x2b96   :  { %v5387_v10 = vmul.f32 1.442695, %v5386_v41 }
0x2b97   :  { %v5550_v46 = vpop.xlane.xlu1 %5549 }
0x2b98   :  { %v5551_v50 = vsub.f32 %v5544_v11, %v5550_v46 }
0x2b9a   :  { %v5552_v16 = vmul.f32 1.442695, %v5551_v50 }
0x2b9b   :  { %v5230_v1 = vpop.permute.xlu1 %5229 }
0x2b9c   :  { %8441 = vpow2.f32 %v5552_v16 }
0x2b9d   :  { %v8438_v36 = vpop.eup %8437  ;;  %8443 = vpow2.f32 %v5387_v10 }
0x2b9e   :  { %v8440_v23 = vpop.eup %8439  ;;  %v5059_v17 = vsel %vm216_vm4, %v8438_v36, 0.0 }
0x2b9f   :  { %5060 = vadd.xlane.f32.xlu0 %v5059_v17  ;;  %v5224_v63 = vsel %vm216_vm4, %v8440_v23, 0.0 }
0x2ba0   :  { %5225 = vadd.xlane.f32.xlu1 %v5224_v63 }
0x2ba6   :  { %v8442_v3 = vpop.eup %8441 }
0x2ba7   :  { %v5554_v14 = vsel %vm216_vm4, %v8442_v3, 0.0  ;;  %v8444_v5 = vpop.eup %8443 }
0x2ba8   :  { %5555 = vadd.xlane.f32.xlu1 %v5554_v14  ;;  %v5389_v39 = vsel %vm216_vm4, %v8444_v5, 0.0 }
0x2bb5   :  { %5064 = vrot.lane.b32.xlu0 %v9263_v2, %s8544_s4 }
0x2bb9   :  { %5394 = vrot.lane.b32.xlu1 %v9263_v2, %s8545_s5 }
0x2bd4   :  { %5390 = vadd.xlane.f32.xlu0 %v5389_v39 }
0x2bea   :  { %5559 = vrot.lane.b32.xlu0 %v9263_v2, %s8546_s6 }
0x2c2c   :  { %v5061_v9 = vpop.xlane.xlu0 %5060 }
0x2c2d   :  { %8445 = vrcp.f32 %v5061_v9  ;;  %v5226_v21 = vpop.xlane.xlu1 %5225 }
0x2c2e   :  { %8447 = vrcp.f32 %v5226_v21  ;;  %v9513_v21 = vld [vmem:[#allocation7_spill] sm:$0xff] }
0x2c30   :  { %v5065_v4 = vpop.permute.xlu0 %5064 }
0x2c31   :  { %7918 = vmatpush3.msra.mxu0 %v5065_v4 }
0x2c32   :  { %7927 = vmatprep.subr.mxu0 %v9511_v60 }
0x2c35   :  { %v5556_v26 = vpop.xlane.xlu1 %5555 }
0x2c37   :  { %v8446_v18 = vpop.eup %8445 }
0x2c38   :  { %v5063_v49 = vmul.f32 %v8446_v18, %v8438_v36  ;;  %v8448_v30 = vpop.eup %8447 }
0x2c39   :  { %v5228_v2 = vmul.f32 %v8448_v30, %v8440_v23  ;;  %v5395_v22 = vpop.permute.xlu1 %5394 }
0x2c3a   :  { %7920 = vmatmul.mubr.msk.f32.vlgmr.msra.gmra.mrb[62].mxu0 %vm216_vm4, %v5063_v49 }
0x2c3b   :  { %7928 = vmatpush3.msra.mxu0 %v5230_v1  ;;  %7929 = vmatprep.mubr.msk.f32.mxu0 %vm8534_vm0, %v9511_v60  ;;  %v9512_v1 = vld [vmem:[#allocation5_spill] sm:$0xff] }
0x2c3c   :  { %7937 = vmatprep.subr.mxu0 %v9511_v60 }
0x2c3e   :  { %7930 = vmatmul.mubr.msk.f32.vlgmr.msra.gmra.mrb[64].mxu0 %vm216_vm4, %v5228_v2 }
0x2c3f   :  { %7938 = vmatpush3.msra.mxu0 %v5395_v22  ;;  %7939 = vmatprep.mubr.msk.f32.mxu0 %vm8534_vm0, %v9511_v60 }
0x2c40   :  { %7947 = vmatprep.subr.mxu0 %v9511_v60 }
0x2c61   :  { %v5391_v24 = vpop.xlane.xlu0 %5390 }
0x2c62   :  { %8449 = vrcp.f32 %v5391_v24 }
0x2c63   :  { %8451 = vrcp.f32 %v5556_v26 }
0x2c65   :  { %v5560_v28 = vpop.permute.xlu0 %5559 }
0x2c6c   :  { %v8450_v38 = vpop.eup %8449 }
0x2c6d   :  { %v5393_v0 = vmul.f32 %v8450_v38, %v8444_v5  ;;  %v8452_v58 = vpop.eup %8451 }
0x2c6e   :  { %v5558_v34 = vmul.f32 %v8452_v58, %v8442_v3 }
0x2c6f   :  { %7940 = vmatmul.mubr.msk.f32.vlgmr.msra.gmra.mrb[66].mxu0 %vm216_vm4, %v5393_v0 }
0x2c70   :  { %7948 = vmatpush3.msra.mxu0 %v5560_v28  ;;  %7949 = vmatprep.mubr.msk.f32.mxu0 %vm8534_vm0, %v9511_v60 }
0x2c71   :  { %8243 = vmatprep.subr.bf16.mxu0 %v9509_v35 }
0x2c73   :  { %7950 = vmatmul.mubr.msk.f32.vlgmr.msra.gmra.mrb[68].mxu0 %vm216_vm4, %v5558_v34 }
0x2c74   :  { %8245 = vmatpush3.bf16.msra.mxu0 %v8701_v48  ;;  %7971 = vmatprep.mubr.msk.f32.mxu0 %vm8534_vm0, %v9511_v60 }
0x2c75   :  { %8246 = vmatprep.subr.bf16.mxu0 %v9509_v35 }
0x2c78   :  { %8248 = vmatpush3.bf16.msra.mxu0 %v8705_v51 }
0x2c79   :  { %8255 = vmatprep.subr.bf16.mxu0 %v9509_v35 }
0x2d0d   :  { %v5136_v45 = vpop.f32.mrb[62].mxu0 }
0x2d0e   :  { %v7921_v20 = vpop.f32.mrb[63].mxu0 }
0x2d11   :  { %v5301_v43 = vpop.f32.mrb[64].mxu0 }
0x2d12   :  { %5636 = vrot.lane.b32.xlu1 %v5301_v43, %s8532_s20  ;;  %v7931_v8 = vpop.f32.mrb[65].mxu0 }
0x2d13   :  { %v8486_v8 = vld [vmem:[#allocation2 + $0xfe] ss:$0 sm:$0xff] }
0x2d42   :  { %v5466_v11 = vpop.f32.mrb[66].mxu0 }
0x2d43   :  { %5640 = vrot.lane.b32.xlu0 %v5466_v11, %s8547_s7  ;;  %v7941_v59 = vpop.f32.mrb[67].mxu0 }
0x2d44   :  { %v8487_v59 = vld [vmem:[#allocation2 + $0xff] ss:$0 sm:$0xff] }
0x2d46   :  { %v5631_v48 = vpop.f32.mrb[68].mxu0 }
0x2d47   :  { %5644 = vrot.lane.b32.xlu1 %v5631_v48, %s8548_s8  ;;  %v7951_v27 = vpop.f32.mrb[69].mxu0 }
0x2d84   :  { %v5637_v33 = vpop.permute.xlu1 %5636 }
0x2d85   :  { %v5647_v51 = vsel %vm216_vm4, %v5136_v45, %v5637_v33  ;;  %v8488_v33 = vld [vmem:[#allocation2 + $0x180] ss:$0 sm:$0xff] }
0x2db5   :  { %v5641_v61 = vpop.permute.xlu0 %5640 }
0x2db6   :  { %v5648_v57 = vsel %vm886_vm5, %v5647_v51, %v5641_v61 }
0x2db9   :  { %v5645_v44 = vpop.permute.xlu1 %5644 }
0x2dba   :  { %v5649_v62 = vsel %vm888_vm6, %v5648_v57, %v5645_v44 }
0x2dbb   :  { %7961 = vmatmul.mubr.msk.f32.vlgmr.msra.gmra.mrb[62].mxu1 %vm139_vm3, %v5649_v62 }
0x2dbc   :  { %8251 = vmatpush3.bf16.xpose.msra.mxu1 %v8709_v53  ;;  %7982 = vmatprep.mubr.msk.f32.mxu1 %vm8534_vm0, %v9511_v60 }
0x2dbd   :  { %8252 = vmatprep.subr.bf16.mxu1 %v9509_v35 }
0x2dc4   :  { %8254 = vmatpush3.bf16.xpose.msra.mxu1 %v8713_v56 }
0x2dc5   :  { %8006 = vmatprep.subr.mxu1 %v9511_v60 }
0x2e8e   :  { %v5719_v13 = vpop.f32.mrb[62].mxu1 }
0x2e8f   :  { %v5720_v46 = vadd.f32 %v9059_v25, %v5719_v13  ;;  %v7962_v50 = vpop.f32.mrb[63].mxu1 }
0x2e91   :  { %v5723_v16 = vadd.f32 %v5720_v46, %v9256_v6 }
0x2e93   :  { %v5724_v36 = vsel %vm139_vm3, %v5723_v16, 0.0  ;;  %v5728_v23 = vmul.f32 %v5723_v16, %v5723_v16 }
0x2e94   :  { %5725 = vadd.xlane.f32.xlu0 %v5724_v36  ;;  %v9514_v36 = vld [vmem:[#allocation6_spill] sm:$0xff] }
0x2e95   :  { %v5729_v53 = vsel %vm139_vm3, %v5728_v23, 0.0 }
0x2e96   :  { %5730 = vadd.xlane.f32.xlu1 %v5729_v53 }
0x2f21   :  { %v5726_v17 = vpop.xlane.xlu0 %5725 }
0x2f22   :  { %v5727_v63 = vmul.f32 0.03125, %v5726_v17 }
0x2f23   :  { %v5731_v3 = vpop.xlane.xlu1 %5730 }
0x2f24   :  { %v5733_v14 = vmul.f32 %v5727_v63, %v5727_v63  ;;  %v5732_v56 = vmul.f32 0.03125, %v5731_v3  ;;  %v5735_v10 = vsub.f32 %v5723_v16, %v5727_v63 }
0x2f26   :  { %v5734_v29 = vsub.f32 %v5732_v56, %v5733_v14 }
0x2f28   :  { %v5736_v41 = vadd.f32 1e-05, %v5734_v29 }
0x2f2a   :  { %8453 = vrsqrt.f32 %v5736_v41 }
0x2f34   :  { %v8454_v25 = vpop.eup %8453 }
0x2f35   :  { %v5738_v5 = vmul.f32 %v8454_v25, %v5735_v10 }
0x2f37   :  { %v5739_v6 = vmul.f32 %v9065_v15, %v5738_v5 }
0x2f39   :  { %v5740_v39 = vadd.f32 %v9068_v32, %v5739_v6 }
0x2f3b   :  { %7972 = vmatmul.mubr.msk.f32.vlgmr.msra.gmra.mrb[70].mxu0 %vm139_vm3, %v5740_v39 }
0x2f3c   :  { %8257 = vmatpush3.bf16.msra.mxu0 %v8724_v31  ;;  %7993 = vmatprep.mubr.msk.f32.mxu0 %vm8534_vm0, %v9511_v60 }
0x2f3d   :  { %8258 = vmatprep.subr.bf16.mxu0 %v9509_v35 }
0x2f40   :  { %8260 = vmatpush3.bf16.msra.mxu0 %v9512_v1 }
0x2f41   :  { %7996 = vmatprep.subr.mxu0 %v9511_v60 }
0x300e   :  { %v5810_v9 = vpop.f32.mrb[70].mxu0 }
0x300f   :  { %v5811_v4 = vadd.f32 %v9513_v21, %v5810_v9  ;;  %v7973_v18 = vpop.f32.mrb[71].mxu0 }
0x3011   :  { %v5814_v15 = vmax.f32 %v5811_v4, 0.0 }
0x3013   :  { %7983 = vmatmul.mubr.f32.vlgmr.msra.gmra.mrb[64].mxu1 %v5814_v15 }
0x3014   :  { %8008 = vmatprep.mubr.msk.f32.mxu1 %vm8534_vm0, %v9511_v60 }
0x30e6   :  { %v5881_v32 = vpop.f32.mrb[64].mxu1 }
0x30e7   :  { %v5882_v31 = vadd.f32 %v9083_v55, %v5881_v32  ;;  %v7984_v49 = vpop.f32.mrb[65].mxu1 }
0x30e9   :  { %v5885_v26 = vadd.f32 %v5882_v31, %v5740_v39 }
0x30eb   :  { %v5886_v30 = vsel %vm139_vm3, %v5885_v26, 0.0  ;;  %v5890_v2 = vmul.f32 %v5885_v26, %v5885_v26 }
0x30ec   :  { %5887 = vadd.xlane.f32.xlu0 %v5886_v30 }
0x30ed   :  { %v5891_v22 = vsel %vm139_vm3, %v5890_v2, 0.0 }
0x30f0   :  { %5892 = vadd.xlane.f32.xlu0 %v5891_v22 }
0x3179   :  { %v5888_v24 = vpop.xlane.xlu0 %5887 }
0x317a   :  { %v5889_v38 = vmul.f32 0.03125, %v5888_v24 }
0x317c   :  { %v5895_v58 = vmul.f32 %v5889_v38, %v5889_v38  ;;  %v5897_v20 = vsub.f32 %v5885_v26, %v5889_v38 }
0x317d   :  { %v5893_v0 = vpop.xlane.xlu0 %5892 }
0x317e   :  { %v5894_v28 = vmul.f32 0.03125, %v5893_v0 }
0x3180   :  { %v5896_v34 = vsub.f32 %v5894_v28, %v5895_v58 }
0x3182   :  { %v5898_v45 = vadd.f32 1e-05, %v5896_v34 }
0x3184   :  { %8455 = vrsqrt.f32 %v5898_v45 }
0x318e   :  { %v8456_v43 = vpop.eup %8455 }
0x318f   :  { %v5900_v55 = vmul.f32 %v8456_v43, %v5897_v20 }
0x3191   :  { %v5901_v11 = vmul.f32 %v8486_v8, %v5900_v55 }
0x3193   :  { %v9372_v48 = vadd.f32 %v8487_v59, %v5901_v11 }
0x3195   :  { %7994 = vmatmul.mubr.msk.f32.vlgmr.msra.gmra.mrb[72].mxu0 %vm139_vm3, %v9372_v48 }
0x3196   :  { %7998 = vmatprep.mubr.msk.f32.mxu0 %vm8534_vm0, %v9511_v60 }
0x3268   :  { %v5972_v27 = vpop.f32.mrb[72].mxu0 }
0x3269   :  { %v9378_v61 = vadd.f32 %v8488_v33, %v5972_v27  ;;  %v7995_v51 = vpop.f32.mrb[73].mxu0 }
0x326b   :  { %6142 = vrot.lane.b32.xlu0 %v9378_v61, %s8539_s27  ;;  %5977 = vrot.lane.b32.xlu1 %v9378_v61, %s8537_s25 }
0x326f   :  { %6305 = vrot.lane.b32.xlu0 %v9378_v61, %s8541_s29  ;;  %6140 = vrot.lane.b32.xlu1 %v9378_v61, %s8536_s24 }
0x3273   :  { %6470 = vrot.lane.b32.xlu0 %v9378_v61, %s8542_s30  ;;  %6307 = vrot.lane.b32.xlu1 %v9378_v61, %s8538_s26 }
0x3277   :  { %6472 = vrot.lane.b32.xlu1 %v9378_v61, %s8540_s28 }
0x32dd   :  { %v6143_v57 = vpop.permute.xlu0 %6142  ;;  %v5978_v44 = vpop.permute.xlu1 %5977 }
0x32de   :  { %7997 = vmatpush3.xpose.msk.msra.mxu0 %vm216_vm4, %v5978_v44  ;;  %8007 = vmatpush3.xpose.msk.msra.mxu1 %vm216_vm4, %v6143_v57 }
0x32df   :  { %8016 = vmatprep.subr.mxu1 %v9511_v60  ;;  %8001 = vmatprep.subr.mxu0 %v9511_v60 }
0x32e1   :  { %7999 = vmatmul.mubr.msk.f32.vlgmr.msra.gmra.mrb[74].mxu0 %vm216_vm4, %v9378_v61  ;;  %v6141_v62 = vpop.permute.xlu1 %6140  ;;  %v6306_v46 = vpop.permute.xlu0 %6305 }
0x32e2   :  { %8009 = vmatmul.mubr.msk.f32.vlgmr.msra.gmra.mrb[66].mxu1 %vm216_vm4, %v6141_v62  ;;  %8003 = vmatprep.mubr.msk.f32.mxu0 %vm8534_vm0, %v9511_v60 }
0x32e3   :  { %8018 = vmatprep.mubr.msk.f32.mxu1 %vm8534_vm0, %v9511_v60 }
0x32e5   :  { %v6308_v13 = vpop.permute.xlu1 %6307  ;;  %v6471_v16 = vpop.permute.xlu0 %6470 }
0x32e6   :  { %8017 = vmatpush3.xpose.msk.msra.mxu1 %vm216_vm4, %v6308_v13 }
0x32e7   :  { %8026 = vmatprep.subr.mxu1 %v9511_v60 }
0x32e9   :  { %8019 = vmatmul.mubr.msk.f32.vlgmr.msra.gmra.mrb[68].mxu1 %vm216_vm4, %v6306_v46  ;;  %v6473_v50 = vpop.permute.xlu1 %6472 }
0x32ea   :  { %8027 = vmatpush3.xpose.msk.msra.mxu1 %vm216_vm4, %v6473_v50  ;;  %8028 = vmatprep.mubr.msk.f32.mxu1 %vm8534_vm0, %v9511_v60 }
0x32eb   :  { %8261 = vmatprep.subr.bf16.mxu1 %v9509_v35 }
0x32ed   :  { %8029 = vmatmul.mubr.msk.f32.vlgmr.msra.gmra.mrb[70].mxu1 %vm216_vm4, %v6471_v16 }
0x32ee   :  { %8263 = vmatpush3.bf16.msra.mxu1 %v8816_v7  ;;  %8044 = vmatprep.mubr.msk.f32.mxu1 %vm8534_vm0, %v9511_v60 }
0x32ef   :  { %8264 = vmatprep.subr.bf16.mxu1 %v9509_v35 }
0x32f2   :  { %8266 = vmatpush3.bf16.msra.mxu1 %v9514_v36 }
0x32f3   :  { %8273 = vmatprep.subr.bf16.mxu1 %v9509_v35 }
0x33b4   :  { %v6049_v23 = vpop.f32.mrb[74].mxu0 }
0x33b5   :  { %v8000_v53 = vpop.f32.mrb[75].mxu0  ;;  %v6214_v17 = vpop.f32.mrb[66].mxu1  ;;  %v6053_v63 = vsel %vm216_vm4, %v6049_v23, -inf }
0x33b6   :  { %6054 = vmax.xlane.f32.xlu1 %v6053_v63  ;;  %v8010_v3 = vpop.f32.mrb[67].mxu1  ;;  %v6218_v14 = vsel %vm216_vm4, %v6214_v17, -inf }
0x33b7   :  { %6219 = vmax.xlane.f32.xlu0 %v6218_v14 }
0x33bc   :  { %v6379_v7 = vpop.f32.mrb[68].mxu1 }
0x33bd   :  { %v8020_v56 = vpop.f32.mrb[69].mxu1  ;;  %v6383_v29 = vsel %vm216_vm4, %v6379_v7, -inf }
0x33be   :  { %6384 = vmax.xlane.f32.xlu0 %v6383_v29  ;;  %v8489_v29 = vld [vmem:[#allocation2 + $0x181] ss:$0 sm:$0xff] }
0x33c0   :  { %v6544_v41 = vpop.f32.mrb[70].mxu1 }
0x33c1   :  { %v8030_v10 = vpop.f32.mrb[71].mxu1  ;;  %v6548_v25 = vsel %vm216_vm4, %v6544_v41, -inf }
0x33c2   :  { %6549 = vmax.xlane.f32.xlu1 %v6548_v25 }
0x33d3   :  { %6229 = vrot.lane.b32.xlu1 %v9378_v61, %s8543_s3 }
0x3443   :  { %v6055_v5 = vpop.xlane.xlu1 %6054 }
0x3444   :  { %v6056_v6 = vsub.f32 %v6049_v23, %v6055_v5  ;;  %v6220_v39 = vpop.xlane.xlu0 %6219 }
0x3445   :  { %v6221_v1 = vsub.f32 %v6214_v17, %v6220_v39 }
0x3446   :  { %v6057_v9 = vmul.f32 1.442695, %v6056_v6 }
0x3447   :  { %v6222_v21 = vmul.f32 1.442695, %v6221_v1 }
0x3448   :  { %8457 = vpow2.f32 %v6057_v9 }
0x3449   :  { %8459 = vpow2.f32 %v6222_v21 }
0x344b   :  { %v6385_v22 = vpop.xlane.xlu0 %6384 }
0x344c   :  { %v6386_v24 = vsub.f32 %v6379_v7, %v6385_v22  ;;  %v8492_v22 = vld [vmem:[#allocation2 + $0x182] ss:$0 sm:$0xff] }
0x344e   :  { %v6387_v38 = vmul.f32 1.442695, %v6386_v24 }
0x344f   :  { %v6550_v4 = vpop.xlane.xlu1 %6549 }
0x3450   :  { %v6551_v18 = vsub.f32 %v6544_v41, %v6550_v4 }
0x3452   :  { %v8458_v15 = vpop.eup %8457  ;;  %v6552_v32 = vmul.f32 1.442695, %v6551_v18 }
0x3453   :  { %v8460_v31 = vpop.eup %8459  ;;  %v6059_v49 = vsel %vm216_vm4, %v8458_v15, 0.0  ;;  %v6230_v28 = vpop.permute.xlu1 %6229 }
0x3454   :  { %8461 = vpow2.f32 %v6552_v32  ;;  %6060 = vadd.xlane.f32.xlu0 %v6059_v49  ;;  %v6224_v26 = vsel %vm216_vm4, %v8460_v31, 0.0  ;;  %v8490_v49 = vld [vmem:[#allocation2 + $0x184] ss:$0 sm:$0xff] }
0x3455   :  { %6225 = vadd.xlane.f32.xlu1 %v6224_v26  ;;  %8463 = vpow2.f32 %v6387_v38  ;;  %v8491_v26 = vld [vmem:[#allocation2 + $0x185] ss:$0 sm:$0xff] }
0x345e   :  { %v8462_v30 = vpop.eup %8461 }
0x345f   :  { %v6554_v2 = vsel %vm216_vm4, %v8462_v30, 0.0  ;;  %v8464_v0 = vpop.eup %8463 }
0x3460   :  { %6555 = vadd.xlane.f32.xlu1 %v6554_v2  ;;  %v6389_v58 = vsel %vm216_vm4, %v8464_v0, 0.0 }
0x346a   :  { %6064 = vrot.lane.b32.xlu0 %v9378_v61, %s8544_s4 }
0x3471   :  { %6394 = vrot.lane.b32.xlu1 %v9378_v61, %s8545_s5 }
0x3489   :  { %6390 = vadd.xlane.f32.xlu0 %v6389_v58 }
0x349f   :  { %6559 = vrot.lane.b32.xlu0 %v9378_v61, %s8546_s6 }
0x34e1   :  { %v6061_v34 = vpop.xlane.xlu0 %6060 }
0x34e2   :  { %8465 = vrcp.f32 %v6061_v34  ;;  %v6226_v45 = vpop.xlane.xlu1 %6225 }
0x34e3   :  { %8467 = vrcp.f32 %v6226_v45 }
0x34e5   :  { %v6065_v20 = vpop.permute.xlu0 %6064 }
0x34e6   :  { %8002 = vmatpush3.msra.mxu0 %v6065_v20 }
0x34e7   :  { %8011 = vmatprep.subr.mxu0 %v9511_v60 }
0x34ec   :  { %v8466_v43 = vpop.eup %8465 }
0x34ed   :  { %v6063_v55 = vmul.f32 %v8466_v43, %v8458_v15  ;;  %v6556_v8 = vpop.xlane.xlu1 %6555  ;;  %v8468_v11 = vpop.eup %8467 }
0x34ee   :  { %v6228_v59 = vmul.f32 %v8468_v11, %v8460_v31 }
0x34ef   :  { %8004 = vmatmul.mubr.msk.f32.vlgmr.msra.gmra.mrb[76].mxu0 %vm216_vm4, %v6063_v55 }
0x34f0   :  { %8012 = vmatpush3.msra.mxu0 %v6230_v28  ;;  %8013 = vmatprep.mubr.msk.f32.mxu0 %vm8534_vm0, %v9511_v60  ;;  %v8493_v28 = vld [vmem:[#allocation2 + $0x183] ss:$0 sm:$0xff] }
0x34f1   :  { %v6395_v27 = vpop.permute.xlu1 %6394  ;;  %8021 = vmatprep.subr.mxu0 %v9511_v60 }
0x34f3   :  { %8014 = vmatmul.mubr.msk.f32.vlgmr.msra.gmra.mrb[78].mxu0 %vm216_vm4, %v6228_v59  ;;  %v8496_v59 = vld [vmem:[#allocation2 + $0x48] sm:$0xff] }
0x34f4   :  { %8022 = vmatpush3.msra.mxu0 %v6395_v27  ;;  %8023 = vmatprep.mubr.msk.f32.mxu0 %vm8534_vm0, %v9511_v60  ;;  %v8497_v27 = vld [vmem:[#allocation2 + $0x50] sm:$0xff] }
0x34f5   :  { %8031 = vmatprep.subr.mxu0 %v9511_v60 }
0x3516   :  { %v6391_v33 = vpop.xlane.xlu0 %6390 }
0x3517   :  { %8469 = vrcp.f32 %v6391_v33  ;;  %v8342_v33 = vpack.i.bf16 %v8497_v27, %v8496_v59 }
0x3518   :  { %8471 = vrcp.f32 %v6556_v8  ;;  %v8495_v8 = vld [vmem:[#allocation2 + $0x40] sm:$0xff] }
0x351a   :  { %v6560_v44 = vpop.permute.xlu0 %6559 }
0x3521   :  { %v8470_v61 = vpop.eup %8469 }
0x3522   :  { %v6393_v51 = vmul.f32 %v8470_v61, %v8464_v0  ;;  %v8472_v57 = vpop.eup %8471  ;;  %v8498_v61 = vld [vmem:[#allocation2 + $0x58] sm:$0xff] }
0x3523   :  { %v6558_v62 = vmul.f32 %v8472_v57, %v8462_v30 }
0x3524   :  { %8024 = vmatmul.mubr.msk.f32.vlgmr.msra.gmra.mrb[80].mxu0 %vm216_vm4, %v6393_v51  ;;  %v8499_v51 = vld [vmem:[#allocation2 + $0x60] sm:$0xff] }
0x3525   :  { %8032 = vmatpush3.msra.mxu0 %v6560_v44  ;;  %8033 = vmatprep.mubr.msk.f32.mxu0 %vm8534_vm0, %v9511_v60  ;;  %v8347_v57 = vpack.i.bf16 %v8499_v51, %v8498_v61  ;;  %v8500_v44 = vld [vmem:[#allocation2 + $0x68] sm:$0xff] }
0x3526   :  { %8267 = vmatprep.subr.bf16.mxu0 %v9509_v35 }
0x3528   :  { %8034 = vmatmul.mubr.msk.f32.vlgmr.msra.gmra.mrb[82].mxu0 %vm216_vm4, %v6558_v62  ;;  %v8501_v62 = vld [vmem:[#allocation2 + $0x70] sm:$0xff] }
0x3529   :  { %8269 = vmatpush3.bf16.msra.mxu0 %v8839_v42  ;;  %8055 = vmatprep.mubr.msk.f32.mxu0 %vm8534_vm0, %v9511_v60 }
0x352a   :  { %8270 = vmatprep.subr.bf16.mxu0 %v9509_v35 }
0x352d   :  { %8272 = vmatpush3.bf16.msra.mxu0 %v8843_v47 }
0x352e   :  { %8279 = vmatprep.subr.bf16.mxu0 %v9509_v35 }
0x35c2   :  { %v6136_v13 = vpop.f32.mrb[76].mxu0 }
0x35c3   :  { %v8005_v46 = vpop.f32.mrb[77].mxu0 }
0x35c4   :  { %v8502_v46 = vld [vmem:[#allocation2 + $0x5] ss:$0 sm:$0xff] }
0x35c6   :  { %v6301_v50 = vpop.f32.mrb[78].mxu0 }
0x35c7   :  { %6636 = vrot.lane.b32.xlu1 %v6301_v50, %s8532_s20  ;;  %v8015_v16 = vpop.f32.mrb[79].mxu0 }
0x35f7   :  { %v6466_v36 = vpop.f32.mrb[80].mxu0 }
0x35f8   :  { %6640 = vrot.lane.b32.xlu0 %v6466_v36, %s8547_s7  ;;  %v8025_v23 = vpop.f32.mrb[81].mxu0 }
0x35fb   :  { %v6631_v42 = vpop.f32.mrb[82].mxu0 }
0x35fc   :  { %6644 = vrot.lane.b32.xlu1 %v6631_v42, %s8548_s8  ;;  %v8035_v53 = vpop.f32.mrb[83].mxu0 }
0x3639   :  { %v6637_v17 = vpop.permute.xlu1 %6636 }
0x363a   :  { %v6647_v47 = vsel %vm216_vm4, %v6136_v13, %v6637_v17  ;;  %v8352_v13 = vpack.i.bf16 %v8501_v62, %v8500_v44 }
0x366a   :  { %v6641_v63 = vpop.permute.xlu0 %6640 }
0x366b   :  { %v6648_v3 = vsel %vm886_vm5, %v6647_v47, %v6641_v63 }
0x366e   :  { %v6645_v14 = vpop.permute.xlu1 %6644 }
0x366f   :  { %v6649_v7 = vsel %vm888_vm6, %v6648_v3, %v6645_v14 }
0x3670   :  { %8045 = vmatmul.mubr.msk.f32.vlgmr.msra.gmra.mrb[72].mxu1 %vm139_vm3, %v6649_v7 }
0x3671   :  { %8275 = vmatpush3.bf16.xpose.msra.mxu1 %v8847_v54  ;;  %8066 = vmatprep.mubr.msk.f32.mxu1 %vm8534_vm0, %v9511_v60 }
0x3672   :  { %8276 = vmatprep.subr.bf16.mxu1 %v9509_v35 }
0x3679   :  { %8278 = vmatpush3.bf16.xpose.msra.mxu1 %v8851_v52 }
0x3743   :  { %v6719_v56 = vpop.f32.mrb[72].mxu1 }
0x3744   :  { %v6720_v41 = vadd.f32 %v8489_v29, %v6719_v56  ;;  %v8046_v10 = vpop.f32.mrb[73].mxu1  ;;  %v8503_v29 = vld [vmem:[#allocation2 + $0x186] ss:$0 sm:$0xff] }
0x3746   :  { %v6723_v25 = vadd.f32 %v6720_v41, %v9372_v48 }
0x3748   :  { %v6724_v5 = vsel %vm139_vm3, %v6723_v25, 0.0  ;;  %v6728_v6 = vmul.f32 %v6723_v25, %v6723_v25 }
0x3749   :  { %6725 = vadd.xlane.f32.xlu0 %v6724_v5 }
0x374a   :  { %v6729_v39 = vsel %vm139_vm3, %v6728_v6, 0.0 }
0x374b   :  { %6730 = vadd.xlane.f32.xlu1 %v6729_v39 }
0x37d6   :  { %v6726_v54 = vpop.xlane.xlu0 %6725 }
0x37d7   :  { %v6727_v1 = vmul.f32 0.03125, %v6726_v54 }
0x37d8   :  { %v6731_v9 = vpop.xlane.xlu1 %6730 }
0x37d9   :  { %v6733_v21 = vmul.f32 %v6727_v1, %v6727_v1  ;;  %v6732_v4 = vmul.f32 0.03125, %v6731_v9  ;;  %v6735_v15 = vsub.f32 %v6723_v25, %v6727_v1  ;;  %v8504_v25 = vld [vmem:[#allocation2 + $0x187] ss:$0 sm:$0xff] }
0x37db   :  { %v6734_v18 = vsub.f32 %v6732_v4, %v6733_v21 }
0x37dd   :  { %v6736_v52 = vadd.f32 1e-05, %v6734_v18 }
0x37df   :  { %8473 = vrsqrt.f32 %v6736_v52 }
0x37e9   :  { %v8474_v32 = vpop.eup %8473 }
0x37ea   :  { %v6738_v31 = vmul.f32 %v8474_v32, %v6735_v15 }
0x37ec   :  { %v6739_v48 = vmul.f32 %v8490_v49, %v6738_v31 }
0x37ee   :  { %v6740_v30 = vadd.f32 %v8491_v26, %v6739_v48  ;;  %v8505_v48 = vld [vmem:[#allocation2 + $0x4] ss:$0 sm:$0xff] }
0x37f0   :  { %8056 = vmatmul.mubr.msk.f32.vlgmr.msra.gmra.mrb[84].mxu0 %vm139_vm3, %v6740_v30 }
0x37f1   :  { %8281 = vmatpush3.bf16.msra.mxu0 %v8876_v37  ;;  %8077 = vmatprep.mubr.msk.f32.mxu0 %vm8534_vm0, %v9511_v60 }
0x37f2   :  { %8282 = vmatprep.subr.bf16.mxu0 %v9509_v35 }
0x37f5   :  { %8284 = vmatpush3.bf16.msra.mxu0 %v8879_v40  ;;  %v8494_v40 = vld [vmem:[#allocation2 + $0x38] sm:$0xff] }
0x37f6   :  { %8285 = vmatprep.subr.bf16.mxu0 %v9509_v35  ;;  %v8337_v11 = vpack.i.bf16 %v8495_v8, %v8494_v40 }
0x37f8   :  { %8338 = vrot.lane.b32.xlu1 %v8337_v11, %s8541_s29 }
0x37fc   :  { %8348 = vrot.lane.b32.xlu1 %v8347_v57, %s8541_s29 }
0x3800   :  { %8353 = vrot.lane.b32.xlu1 %v8352_v13, %s8541_s29 }
0x386a   :  { %v8339_v47 = vpop.permute.xlu1 %8338 }
0x386b   :  { %v8341_v7 = vunpack.i.h.bf16 %v8339_v47  ;;  %v8340_v56 = vunpack.i.l.bf16 %v8339_v47 }
0x386d   :  { %v8286_v39 = vpack.c.bf16 %v8341_v7, %v8340_v56 }
0x386e   :  { %v8349_v6 = vpop.permute.xlu1 %8348 }
0x386f   :  { %v8351_v4 = vunpack.i.h.bf16 %v8349_v6  ;;  %v8350_v18 = vunpack.i.l.bf16 %v8349_v6 }
0x3871   :  { %v8292_v15 = vpack.c.bf16 %v8351_v4, %v8350_v18 }
0x3872   :  { %v8354_v52 = vpop.permute.xlu1 %8353 }
0x3873   :  { %v8356_v32 = vunpack.i.h.bf16 %v8354_v52  ;;  %v8355_v31 = vunpack.i.l.bf16 %v8354_v52 }
0x3875   :  { %v8295_v49 = vpack.c.bf16 %v8356_v32, %v8355_v31 }
0x38c3   :  { %v6810_v2 = vpop.f32.mrb[84].mxu0 }
0x38c4   :  { %v6811_v24 = vadd.f32 %v8492_v22, %v6810_v2  ;;  %v8057_v38 = vpop.f32.mrb[85].mxu0 }
0x38c6   :  { %v6814_v0 = vmax.f32 %v6811_v24, 0.0 }
0x38c8   :  { %8067 = vmatmul.mubr.f32.vlgmr.msra.gmra.mrb[74].mxu1 %v6814_v0 }
0x399b   :  { %v6881_v58 = vpop.f32.mrb[74].mxu1 }
0x399c   :  { %v6882_v34 = vadd.f32 %v8493_v28, %v6881_v58  ;;  %v8068_v45 = vpop.f32.mrb[75].mxu1 }
0x399e   :  { %v6885_v37 = vadd.f32 %v6882_v34, %v6740_v30 }
0x39a0   :  { %v6886_v20 = vsel %vm139_vm3, %v6885_v37, 0.0  ;;  %v6890_v43 = vmul.f32 %v6885_v37, %v6885_v37 }
0x39a1   :  { %6887 = vadd.xlane.f32.xlu0 %v6886_v20 }
0x39a2   :  { %v6891_v55 = vsel %vm139_vm3, %v6890_v43, 0.0 }
0x39a5   :  { %6892 = vadd.xlane.f32.xlu0 %v6891_v55 }
0x39bb   :  { %8343 = vrot.lane.b32.xlu0 %v8342_v33, %s8541_s29 }
0x39bf   :  { %7002 = vrot.lane.b32.xlu0 %v8502_v46, %s8541_s29 }
0x3a2e   :  { %v6888_v50 = vpop.xlane.xlu0 %6887 }
0x3a2f   :  { %v6889_v16 = vmul.f32 0.03125, %v6888_v50 }
0x3a31   :  { %v6895_v23 = vmul.f32 %v6889_v16, %v6889_v16  ;;  %v6897_v63 = vsub.f32 %v6885_v37, %v6889_v16 }
0x3a32   :  { %v6893_v36 = vpop.xlane.xlu0 %6892 }
0x3a33   :  { %v6894_v42 = vmul.f32 0.03125, %v6893_v36 }
0x3a35   :  { %v6896_v53 = vsub.f32 %v6894_v42, %v6895_v23 }
0x3a36   :  { %v8344_v10 = vpop.permute.xlu0 %8343 }
0x3a37   :  { %v6898_v17 = vadd.f32 1e-05, %v6896_v53  ;;  %v8346_v54 = vunpack.i.h.bf16 %v8344_v10  ;;  %v8345_v1 = vunpack.i.l.bf16 %v8344_v10 }
0x3a39   :  { %8475 = vrsqrt.f32 %v6898_v17  ;;  %v8289_v21 = vpack.c.bf16 %v8346_v54, %v8345_v1 }
0x3a43   :  { %v8476_v3 = vpop.eup %8475 }
0x3a44   :  { %v6900_v14 = vmul.f32 %v8476_v3, %v6897_v63 }
0x3a46   :  { %v6901_v41 = vmul.f32 %v8503_v29, %v6900_v14 }
0x3a48   :  { %v6902_v5 = vadd.f32 %v8504_v25, %v6901_v41 }
0x3a4a   :  { %v6903_v9 = vadd.f32 %v6902_v5, %v9252_v19 }
0x3a4c   :  { %8078 = vmatmul.mubr.msk.f32.vlgmr.msra.gmra.mrb[86].mxu0 %vm139_vm3, %v6903_v9 }
0x3a4d   :  { %8287 = vmatpush3.bf16.msra.mxu0 %v8286_v39  ;;  %8096 = vmatprep.mubr.msk.f32.mxu0 %vm8534_vm0, %v9511_v60  ;;  %v7003_v60 = vpop.permute.xlu0 %7002 }
0x3a4e   :  { %8288 = vmatprep.subr.bf16.mxu0 %v9509_v35 }
0x3a51   :  { %8290 = vmatpush3.bf16.msra.mxu0 %v8289_v21 }
0x3a52   :  { %8291 = vmatprep.subr.bf16.mxu0 %v9509_v35 }
0x3a55   :  { %8293 = vmatpush3.bf16.msra.mxu0 %v8292_v15 }
0x3a56   :  { %8294 = vmatprep.subr.bf16.mxu0 %v9509_v35 }
0x3a59   :  { %8296 = vmatpush3.bf16.msra.mxu0 %v8295_v49 }
0x3b1f   :  { %v6973_v19 = vpop.f32.mrb[86].mxu0 }
0x3b20   :  { %v6974_v26 = vadd.f32 %v8505_v48, %v6973_v19  ;;  %v8079_v30 = vpop.f32.mrb[87].mxu0 }
0x3b22   :  { %v6977_v2 = vmax.f32 %v6974_v26, 0.0 }
0x3b24   :  { %8097 = vmatmul.mubr.msk.f32.vlgmr.msra.gmra.mrb[88].mxu0 %vm2330_vm7, %v6977_v2 }
0x3bf7   :  { %v7074_v22 = vpop.f32.mrb[88].mxu0 }
0x3bf8   :  { %v7075_v24 = vadd.f32 %v7074_v22, %v7003_v60  ;;  %v8098_v38 = vpop.f32.mrb[89].mxu0 }
0x3bfa   :  { %v7078_v0 = vadd.f32 %v7075_v24, %v9236_v12 }
0x3bfc   :  { %v7079_v58 = vsel %vm216_vm4, %v7078_v0, 0.0 }
0x3bfd   :  { %7080 = vst [vmem:[%s9499_s2] sm:$0xff] %v7079_v58 }
0x3bfe   :  { %7085 = vsyncpa [#allocation3], 1 }

</bundles_post_ra>
